<compile_context>
chip_gen: v7x
topology: tpu7x:2x2x1
jax: 0.10.0
libtpu: 0.0.40
codegen_flags: <defaults>
</compile_context>

<pallas_src>
import jax
import jax.numpy as jnp
from jax import lax
from jax.experimental import pallas as pl
from jax.experimental.pallas import tpu as pltpu

BN_EPS = 1e-4


# ----------------------------------------------------------------------------
# Fused kernel: conv1(3x3)+BN+ReLU -> conv2(3x3)+BN+ReLU -> 2x2 max-pool.
# ----------------------------------------------------------------------------
def _conv3x3_relu(src_pad_ref, w_ref, shift_ref, H, W):
    """3x3 conv (stride 1) over a zero-padded (H+2, W+2, Cin) VMEM ref.

    Returns relu(conv + shift) as an (H*W, Cout) f32 value.  Each of the 9
    taps is a single (H*W, Cin) @ (Cin, Cout) MXU matmul, statically unrolled.
    """
    cin = src_pad_ref.shape[-1]
    acc = None
    for kh in range(3):
        for kw in range(3):
            patch = src_pad_ref[pl.ds(kh, H), pl.ds(kw, W), :]      # (H, W, cin)
            term = jnp.dot(patch.reshape(H * W, cin), w_ref[kh, kw],
                           preferred_element_type=jnp.float32)      # (H*W, cout)
            acc = term if acc is None else acc + term
    return jnp.maximum(acc + shift_ref[...], 0.0)                   # (H*W, cout)


def stack_encoder_kernel(x_ref, w1_ref, b1_ref, w2_ref, b2_ref,
                         y_ref, ys_ref,
                         xpad_ref, ypad_ref, pool_ref):
    # x_ref:    (1, H, W, Cx)     NHWC input tile (one batch element)
    # w*_ref:   (3, 3, Cin, Cout) HWIO weights, BN scale pre-folded
    # b*_ref:   (1, Cout)         BN shift
    # y_ref:    (1, Cy, H*W)      conv2 output, channel-major / spatially flat
    # ys_ref:   (1, Cy, Ho*Wo)    2x2 max-pooled output
    # xpad_ref: (H+2, W+2, Cx)    VMEM scratch with zero halo
    # ypad_ref: (H+2, W+2, Cy)    VMEM scratch with zero halo
    # pool_ref: (Ho, W, Cy)       VMEM scratch for W-pair pooling
    _, H, W, _ = x_ref.shape
    Cy = w1_ref.shape[-1]
    Ho, Wo = H // 2, W // 2

    # Zero the halos (interiors are fully overwritten below).  Done every
    # grid step so it stays correct when the grid is sharded across cores.
    xpad_ref[...] = jnp.zeros_like(xpad_ref)
    ypad_ref[...] = jnp.zeros_like(ypad_ref)

    # conv1 + bn + relu  (activation stays resident in VMEM).
    xpad_ref[pl.ds(1, H), pl.ds(1, W), :] = x_ref[0].astype(jnp.float32)
    y1 = _conv3x3_relu(xpad_ref, w1_ref, b1_ref, H, W)              # (H*W, Cy)
    ypad_ref[pl.ds(1, H), pl.ds(1, W), :] = y1.reshape(H, W, Cy)

    # conv2 + bn + relu.
    y2 = _conv3x3_relu(ypad_ref, w2_ref, b2_ref, H, W)              # (H*W, Cy)

    # y output: (Cy, H*W) lane-dense store; wrapper reshape to NCHW is free.
    y_ref[0] = y2.T.astype(y_ref.dtype)

    # 2x2 max pool, stride 2.
    #   H pairs: split the leading dim and reduce (pure VPU max).
    #   W pairs: stride-2 sublane loads from a small VMEM scratch.
    rows = jnp.max(y2.reshape(Ho, 2, W, Cy), axis=1)                # (Ho, W, Cy)
    pool_ref[...] = rows
    even = pool_ref[:, pl.ds(0, Wo, 2), :]                          # cols 0,2,...
    odd = pool_ref[:, pl.ds(1, Wo, 2), :]                           # cols 1,3,...
    pooled = jnp.maximum(even, odd)                                 # (Ho, Wo, Cy)
    ys_ref[0] = pooled.reshape(Ho * Wo, Cy).T.astype(ys_ref.dtype)


# ----------------------------------------------------------------------------
# Wrapper: NCHW in / (y, y_small) NCHW out, matching the PyTorch module.
# ----------------------------------------------------------------------------
def stack_encoder_forward(x_nchw, params):
    N, Cx, H, W = x_nchw.shape
    Cy = params["w1"].shape[-1]
    Ho, Wo = H // 2, W // 2

    x_nhwc = jnp.transpose(x_nchw, (0, 2, 3, 1))   # channels-last for matmuls

    y_flat, ys_flat = pl.pallas_call(
        stack_encoder_kernel,
        out_shape=(
            jax.ShapeDtypeStruct((N, Cy, H * W), x_nchw.dtype),
            jax.ShapeDtypeStruct((N, Cy, Ho * Wo), x_nchw.dtype),
        ),
        grid=(N,),
        in_specs=[
            pl.BlockSpec((1, H, W, Cx), lambda n: (n, 0, 0, 0)),
            pl.BlockSpec((3, 3, Cx, Cy), lambda n: (0, 0, 0, 0)),
            pl.BlockSpec((1, Cy), lambda n: (0, 0)),
            pl.BlockSpec((3, 3, Cy, Cy), lambda n: (0, 0, 0, 0)),
            pl.BlockSpec((1, Cy), lambda n: (0, 0)),
        ],
        out_specs=(
            pl.BlockSpec((1, Cy, H * W), lambda n: (n, 0, 0)),
            pl.BlockSpec((1, Cy, Ho * Wo), lambda n: (n, 0, 0)),
        ),
        scratch_shapes=[
            pltpu.VMEM((H + 2, W + 2, Cx), jnp.float32),
            pltpu.VMEM((H + 2, W + 2, Cy), jnp.float32),
            pltpu.VMEM((Ho, W, Cy), jnp.float32),
        ],
        compiler_params=pltpu.CompilerParams(
            dimension_semantics=("parallel",)),
    )(x_nhwc, params["w1"], params["shift1"], params["w2"], params["shift2"])

    return (y_flat.reshape(N, Cy, H, W), ys_flat.reshape(N, Cy, Ho, Wo))


def fold_bn_into_conv(w_oihw, gamma, beta, mean, var, eps=BN_EPS):
    """Fold inference-mode BN into the conv weights (HWIO) and a shift."""
    scale = gamma / jnp.sqrt(var + eps)              # (Cout,)
    shift = beta - mean * scale                      # (Cout,)
    w_hwio = jnp.transpose(w_oihw, (2, 3, 1, 0))     # OIHW -> HWIO
    w_folded = (w_hwio * scale[None, None, None, :]).astype(jnp.float32)
    return w_folded, shift.reshape(1, -1).astype(jnp.float32)


# ----------------------------------------------------------------------------
# Pure-JAX reference (unfused conv / BN / pool) for correctness checking.
# ----------------------------------------------------------------------------
def ref_forward(x_nchw, w1_oihw, s1, sh1, w2_oihw, s2, sh2):
    def cbr(x, w, scale, shift):
        y = lax.conv_general_dilated(
            x, w, window_strides=(1, 1), padding=((1, 1), (1, 1)),
            dimension_numbers=("NCHW", "OIHW", "NCHW"))
        y = y * scale.reshape(1, -1, 1, 1) + shift.reshape(1, -1, 1, 1)
        return jnp.maximum(y, 0.0)

    y = cbr(cbr(x_nchw, w1_oihw, s1, sh1), w2_oihw, s2, sh2)
    y_small = lax.reduce_window(y, -jnp.inf, lax.max,
                                (1, 1, 2, 2), (1, 1, 2, 2), "VALID")
    return y, y_small


if __name__ == "__main__":
    key = jax.random.PRNGKey(0)
    ks = jax.random.split(key, 11)

    N, Cx, Cy, H, W = 2, 4, 8, 16, 16

    x = jax.random.normal(ks[0], (N, Cx, H, W), jnp.float32)

    # Conv weights (PyTorch OIHW), deterministic init.
    w1_oihw = 0.1 * jax.random.normal(ks[1], (Cy, Cx, 3, 3), jnp.float32)
    w2_oihw = 0.1 * jax.random.normal(ks[2], (Cy, Cy, 3, 3), jnp.float32)

    # BatchNorm (inference) parameters, deterministic init.
    def bn_params(kg, kb, km, kv):
        gamma = 1.0 + 0.1 * jax.random.normal(kg, (Cy,), jnp.float32)
        beta = 0.1 * jax.random.normal(kb, (Cy,), jnp.float32)
        mean = 0.1 * jax.random.normal(km, (Cy,), jnp.float32)
        var = jnp.abs(jax.random.normal(kv, (Cy,), jnp.float32)) + 0.5
        return gamma, beta, mean, var

    g1, b1, m1, v1 = bn_params(ks[3], ks[4], ks[5], ks[6])
    g2, b2, m2, v2 = bn_params(ks[7], ks[8], ks[9], ks[10])

    w1f, sh1 = fold_bn_into_conv(w1_oihw, g1, b1, m1, v1)
    w2f, sh2 = fold_bn_into_conv(w2_oihw, g2, b2, m2, v2)
    params = {"w1": w1f, "shift1": sh1, "w2": w2f, "shift2": sh2}

    y, y_small = stack_encoder_forward(x, params)
    y = jax.block_until_ready(y)
    y_small = jax.block_until_ready(y_small)

    # Correctness check against the pure-JAX reference (unfolded BN).
    scale1 = g1 / jnp.sqrt(v1 + BN_EPS)
    shift1 = b1 - m1 * scale1
    scale2 = g2 / jnp.sqrt(v2 + BN_EPS)
    shift2 = b2 - m2 * scale2
    y_expected, ys_expected = ref_forward(x, w1_oihw, scale1, shift1,
                                          w2_oihw, scale2, shift2)

    assert y.shape == (N, Cy, H, W) and y_small.shape == (N, Cy, H // 2, W // 2)
    assert jnp.allclose(y, y_expected, rtol=1e-3, atol=1e-3), \
        f"y mismatch: max err {jnp.max(jnp.abs(y - y_expected))}"
    assert jnp.allclose(y_small, ys_expected, rtol=1e-3, atol=1e-3), \
        f"y_small mismatch: max err {jnp.max(jnp.abs(y_small - ys_expected))}"

    print("KERNEL_OK")
</pallas_src>

<mosaic_0001>
module attributes {stable_mosaic.version = 11 : i64} {
  func.func @stack_encoder_kernel(%arg0: i32, %arg1: memref<1x16x16x4xf32, #tpu.memory_space<vmem>>, %arg2: memref<3x3x4x8xf32, #tpu.memory_space<vmem>>, %arg3: memref<1x8xf32, #tpu.memory_space<vmem>>, %arg4: memref<3x3x8x8xf32, #tpu.memory_space<vmem>>, %arg5: memref<1x8xf32, #tpu.memory_space<vmem>>, %arg6: memref<1x8x256xf32, #tpu.memory_space<vmem>>, %arg7: memref<1x8x64xf32, #tpu.memory_space<vmem>>, %arg8: memref<18x18x4xf32, #tpu.memory_space<vmem>>, %arg9: memref<18x18x8xf32, #tpu.memory_space<vmem>>, %arg10: memref<8x16x8xf32, #tpu.memory_space<vmem>>) attributes {dimension_semantics = [#tpu.dimension_semantics<parallel>], iteration_bounds = array<i64: 2>, scalar_prefetch = 0 : i64, scratch_operands = 3 : i64, tpu.core_type = #tpu.core_type<tc>, window_params = [{transform_indices = @transform_0, window_bounds = array<i64: 1, 16, 16, 4>}, {pipeline_mode = #tpu.pipeline_mode<synchronous>, transform_indices = @transform_1, window_bounds = array<i64: 3, 3, 4, 8>}, {pipeline_mode = #tpu.pipeline_mode<synchronous>, transform_indices = @transform_2, window_bounds = array<i64: 1, 8>}, {pipeline_mode = #tpu.pipeline_mode<synchronous>, transform_indices = @transform_3, window_bounds = array<i64: 3, 3, 8, 8>}, {pipeline_mode = #tpu.pipeline_mode<synchronous>, transform_indices = @transform_4, window_bounds = array<i64: 1, 8>}, {transform_indices = @transform_5, window_bounds = array<i64: 1, 8, 256>}, {transform_indices = @transform_6, window_bounds = array<i64: 1, 8, 64>}]} {
    %cst = arith.constant 0.000000e+00 : f32
    %0 = vector.broadcast %cst : f32 to vector<18x18x4xf32>
    %c0 = arith.constant 0 : index
    %c0_0 = arith.constant 0 : index
    %c0_1 = arith.constant 0 : index
    %1 = vector.load %arg8[%c0, %c0_0, %c0_1] : memref<18x18x4xf32, #tpu.memory_space<vmem>>, vector<18x18x4xf32>
    tpu.vector_store %arg8[%c0, %c0_0, %c0_1], %0 {strides = array<i32>} : memref<18x18x4xf32, #tpu.memory_space<vmem>>, vector<18x18x4xf32>,
    %cst_2 = arith.constant 0.000000e+00 : f32
    %2 = vector.broadcast %cst_2 : f32 to vector<18x18x8xf32>
    %c0_3 = arith.constant 0 : index
    %c0_4 = arith.constant 0 : index
    %c0_5 = arith.constant 0 : index
    %3 = vector.load %arg9[%c0_3, %c0_4, %c0_5] : memref<18x18x8xf32, #tpu.memory_space<vmem>>, vector<18x18x8xf32>
    tpu.vector_store %arg9[%c0_3, %c0_4, %c0_5], %2 {strides = array<i32>} : memref<18x18x8xf32, #tpu.memory_space<vmem>>, vector<18x18x8xf32>,
    %c0_6 = arith.constant 0 : index
    %c0_7 = arith.constant 0 : index
    %c0_8 = arith.constant 0 : index
    %c0_9 = arith.constant 0 : index
    %4 = vector.load %arg1[%c0_6, %c0_7, %c0_8, %c0_9] : memref<1x16x16x4xf32, #tpu.memory_space<vmem>>, vector<1x16x16x4xf32>
    %5 = vector.shape_cast %4 : vector<1x16x16x4xf32> to vector<16x16x4xf32>
    %c1 = arith.constant 1 : index
    %c1_10 = arith.constant 1 : index
    %c0_11 = arith.constant 0 : index
    %6 = vector.load %arg8[%c1, %c1_10, %c0_11] : memref<18x18x4xf32, #tpu.memory_space<vmem>>, vector<16x16x4xf32>
    tpu.vector_store %arg8[%c1, %c1_10, %c0_11], %5 {strides = array<i32>} : memref<18x18x4xf32, #tpu.memory_space<vmem>>, vector<16x16x4xf32>,
    %c0_12 = arith.constant 0 : index
    %c0_13 = arith.constant 0 : index
    %c0_14 = arith.constant 0 : index
    %7 = vector.load %arg8[%c0_12, %c0_13, %c0_14] : memref<18x18x4xf32, #tpu.memory_space<vmem>>, vector<16x16x4xf32>
    %8 = vector.shape_cast %7 : vector<16x16x4xf32> to vector<256x4xf32>
    %c0_15 = arith.constant 0 : index
    %c0_16 = arith.constant 0 : index
    %c0_17 = arith.constant 0 : index
    %c0_18 = arith.constant 0 : index
    %9 = vector.load %arg2[%c0_15, %c0_16, %c0_17, %c0_18] : memref<3x3x4x8xf32, #tpu.memory_space<vmem>>, vector<1x1x4x8xf32>
    %10 = vector.shape_cast %9 : vector<1x1x4x8xf32> to vector<4x8xf32>
    %cst_19 = arith.constant dense<0.000000e+00> : vector<256x8xf32>
    %11 = tpu.matmul %8, %10, %cst_19 {dimension_numbers = #tpu.dot_dimension_numbers<[1], [0], [0], [1], [0, 0, 1, 1], [], []>} : vector<256x4xf32>, vector<4x8xf32>, vector<256x8xf32> -> vector<256x8xf32>
    %c0_20 = arith.constant 0 : index
    %c1_21 = arith.constant 1 : index
    %c0_22 = arith.constant 0 : index
    %12 = vector.load %arg8[%c0_20, %c1_21, %c0_22] : memref<18x18x4xf32, #tpu.memory_space<vmem>>, vector<16x16x4xf32>
    %13 = vector.shape_cast %12 : vector<16x16x4xf32> to vector<256x4xf32>
    %c0_23 = arith.constant 0 : index
    %c1_24 = arith.constant 1 : index
    %c0_25 = arith.constant 0 : index
    %c0_26 = arith.constant 0 : index
    %14 = vector.load %arg2[%c0_23, %c1_24, %c0_25, %c0_26] : memref<3x3x4x8xf32, #tpu.memory_space<vmem>>, vector<1x1x4x8xf32>
    %15 = vector.shape_cast %14 : vector<1x1x4x8xf32> to vector<4x8xf32>
    %cst_27 = arith.constant dense<0.000000e+00> : vector<256x8xf32>
    %16 = tpu.matmul %13, %15, %cst_27 {dimension_numbers = #tpu.dot_dimension_numbers<[1], [0], [0], [1], [0, 0, 1, 1], [], []>} : vector<256x4xf32>, vector<4x8xf32>, vector<256x8xf32> -> vector<256x8xf32>
    %17 = arith.addf %11, %16 : vector<256x8xf32>
    %c0_28 = arith.constant 0 : index
    %c2 = arith.constant 2 : index
    %c0_29 = arith.constant 0 : index
    %18 = vector.load %arg8[%c0_28, %c2, %c0_29] : memref<18x18x4xf32, #tpu.memory_space<vmem>>, vector<16x16x4xf32>
    %19 = vector.shape_cast %18 : vector<16x16x4xf32> to vector<256x4xf32>
    %c0_30 = arith.constant 0 : index
    %c2_31 = arith.constant 2 : index
    %c0_32 = arith.constant 0 : index
    %c0_33 = arith.constant 0 : index
    %20 = vector.load %arg2[%c0_30, %c2_31, %c0_32, %c0_33] : memref<3x3x4x8xf32, #tpu.memory_space<vmem>>, vector<1x1x4x8xf32>
    %21 = vector.shape_cast %20 : vector<1x1x4x8xf32> to vector<4x8xf32>
    %cst_34 = arith.constant dense<0.000000e+00> : vector<256x8xf32>
    %22 = tpu.matmul %19, %21, %cst_34 {dimension_numbers = #tpu.dot_dimension_numbers<[1], [0], [0], [1], [0, 0, 1, 1], [], []>} : vector<256x4xf32>, vector<4x8xf32>, vector<256x8xf32> -> vector<256x8xf32>
    %23 = arith.addf %17, %22 : vector<256x8xf32>
    %c1_35 = arith.constant 1 : index
    %c0_36 = arith.constant 0 : index
    %c0_37 = arith.constant 0 : index
    %24 = vector.load %arg8[%c1_35, %c0_36, %c0_37] : memref<18x18x4xf32, #tpu.memory_space<vmem>>, vector<16x16x4xf32>
    %25 = vector.shape_cast %24 : vector<16x16x4xf32> to vector<256x4xf32>
    %c1_38 = arith.constant 1 : index
    %c0_39 = arith.constant 0 : index
    %c0_40 = arith.constant 0 : index
    %c0_41 = arith.constant 0 : index
    %26 = vector.load %arg2[%c1_38, %c0_39, %c0_40, %c0_41] : memref<3x3x4x8xf32, #tpu.memory_space<vmem>>, vector<1x1x4x8xf32>
    %27 = vector.shape_cast %26 : vector<1x1x4x8xf32> to vector<4x8xf32>
    %cst_42 = arith.constant dense<0.000000e+00> : vector<256x8xf32>
    %28 = tpu.matmul %25, %27, %cst_42 {dimension_numbers = #tpu.dot_dimension_numbers<[1], [0], [0], [1], [0, 0, 1, 1], [], []>} : vector<256x4xf32>, vector<4x8xf32>, vector<256x8xf32> -> vector<256x8xf32>
    %29 = arith.addf %23, %28 : vector<256x8xf32>
    %c1_43 = arith.constant 1 : index
    %c1_44 = arith.constant 1 : index
    %c0_45 = arith.constant 0 : index
    %30 = vector.load %arg8[%c1_43, %c1_44, %c0_45] : memref<18x18x4xf32, #tpu.memory_space<vmem>>, vector<16x16x4xf32>
    %31 = vector.shape_cast %30 : vector<16x16x4xf32> to vector<256x4xf32>
    %c1_46 = arith.constant 1 : index
    %c1_47 = arith.constant 1 : index
    %c0_48 = arith.constant 0 : index
    %c0_49 = arith.constant 0 : index
    %32 = vector.load %arg2[%c1_46, %c1_47, %c0_48, %c0_49] : memref<3x3x4x8xf32, #tpu.memory_space<vmem>>, vector<1x1x4x8xf32>
    %33 = vector.shape_cast %32 : vector<1x1x4x8xf32> to vector<4x8xf32>
    %cst_50 = arith.constant dense<0.000000e+00> : vector<256x8xf32>
    %34 = tpu.matmul %31, %33, %cst_50 {dimension_numbers = #tpu.dot_dimension_numbers<[1], [0], [0], [1], [0, 0, 1, 1], [], []>} : vector<256x4xf32>, vector<4x8xf32>, vector<256x8xf32> -> vector<256x8xf32>
    %35 = arith.addf %29, %34 : vector<256x8xf32>
    %c1_51 = arith.constant 1 : index
    %c2_52 = arith.constant 2 : index
    %c0_53 = arith.constant 0 : index
    %36 = vector.load %arg8[%c1_51, %c2_52, %c0_53] : memref<18x18x4xf32, #tpu.memory_space<vmem>>, vector<16x16x4xf32>
    %37 = vector.shape_cast %36 : vector<16x16x4xf32> to vector<256x4xf32>
    %c1_54 = arith.constant 1 : index
    %c2_55 = arith.constant 2 : index
    %c0_56 = arith.constant 0 : index
    %c0_57 = arith.constant 0 : index
    %38 = vector.load %arg2[%c1_54, %c2_55, %c0_56, %c0_57] : memref<3x3x4x8xf32, #tpu.memory_space<vmem>>, vector<1x1x4x8xf32>
    %39 = vector.shape_cast %38 : vector<1x1x4x8xf32> to vector<4x8xf32>
    %cst_58 = arith.constant dense<0.000000e+00> : vector<256x8xf32>
    %40 = tpu.matmul %37, %39, %cst_58 {dimension_numbers = #tpu.dot_dimension_numbers<[1], [0], [0], [1], [0, 0, 1, 1], [], []>} : vector<256x4xf32>, vector<4x8xf32>, vector<256x8xf32> -> vector<256x8xf32>
    %41 = arith.addf %35, %40 : vector<256x8xf32>
    %c2_59 = arith.constant 2 : index
    %c0_60 = arith.constant 0 : index
    %c0_61 = arith.constant 0 : index
    %42 = vector.load %arg8[%c2_59, %c0_60, %c0_61] : memref<18x18x4xf32, #tpu.memory_space<vmem>>, vector<16x16x4xf32>
    %43 = vector.shape_cast %42 : vector<16x16x4xf32> to vector<256x4xf32>
    %c2_62 = arith.constant 2 : index
    %c0_63 = arith.constant 0 : index
    %c0_64 = arith.constant 0 : index
    %c0_65 = arith.constant 0 : index
    %44 = vector.load %arg2[%c2_62, %c0_63, %c0_64, %c0_65] : memref<3x3x4x8xf32, #tpu.memory_space<vmem>>, vector<1x1x4x8xf32>
    %45 = vector.shape_cast %44 : vector<1x1x4x8xf32> to vector<4x8xf32>
    %cst_66 = arith.constant dense<0.000000e+00> : vector<256x8xf32>
    %46 = tpu.matmul %43, %45, %cst_66 {dimension_numbers = #tpu.dot_dimension_numbers<[1], [0], [0], [1], [0, 0, 1, 1], [], []>} : vector<256x4xf32>, vector<4x8xf32>, vector<256x8xf32> -> vector<256x8xf32>
    %47 = arith.addf %41, %46 : vector<256x8xf32>
    %c2_67 = arith.constant 2 : index
    %c1_68 = arith.constant 1 : index
    %c0_69 = arith.constant 0 : index
    %48 = vector.load %arg8[%c2_67, %c1_68, %c0_69] : memref<18x18x4xf32, #tpu.memory_space<vmem>>, vector<16x16x4xf32>
    %49 = vector.shape_cast %48 : vector<16x16x4xf32> to vector<256x4xf32>
    %c2_70 = arith.constant 2 : index
    %c1_71 = arith.constant 1 : index
    %c0_72 = arith.constant 0 : index
    %c0_73 = arith.constant 0 : index
    %50 = vector.load %arg2[%c2_70, %c1_71, %c0_72, %c0_73] : memref<3x3x4x8xf32, #tpu.memory_space<vmem>>, vector<1x1x4x8xf32>
    %51 = vector.shape_cast %50 : vector<1x1x4x8xf32> to vector<4x8xf32>
    %cst_74 = arith.constant dense<0.000000e+00> : vector<256x8xf32>
    %52 = tpu.matmul %49, %51, %cst_74 {dimension_numbers = #tpu.dot_dimension_numbers<[1], [0], [0], [1], [0, 0, 1, 1], [], []>} : vector<256x4xf32>, vector<4x8xf32>, vector<256x8xf32> -> vector<256x8xf32>
    %53 = arith.addf %47, %52 : vector<256x8xf32>
    %c2_75 = arith.constant 2 : index
    %c2_76 = arith.constant 2 : index
    %c0_77 = arith.constant 0 : index
    %54 = vector.load %arg8[%c2_75, %c2_76, %c0_77] : memref<18x18x4xf32, #tpu.memory_space<vmem>>, vector<16x16x4xf32>
    %55 = vector.shape_cast %54 : vector<16x16x4xf32> to vector<256x4xf32>
    %c2_78 = arith.constant 2 : index
    %c2_79 = arith.constant 2 : index
    %c0_80 = arith.constant 0 : index
    %c0_81 = arith.constant 0 : index
    %56 = vector.load %arg2[%c2_78, %c2_79, %c0_80, %c0_81] : memref<3x3x4x8xf32, #tpu.memory_space<vmem>>, vector<1x1x4x8xf32>
    %57 = vector.shape_cast %56 : vector<1x1x4x8xf32> to vector<4x8xf32>
    %cst_82 = arith.constant dense<0.000000e+00> : vector<256x8xf32>
    %58 = tpu.matmul %55, %57, %cst_82 {dimension_numbers = #tpu.dot_dimension_numbers<[1], [0], [0], [1], [0, 0, 1, 1], [], []>} : vector<256x4xf32>, vector<4x8xf32>, vector<256x8xf32> -> vector<256x8xf32>
    %59 = arith.addf %53, %58 : vector<256x8xf32>
    %c0_83 = arith.constant 0 : index
    %c0_84 = arith.constant 0 : index
    %60 = vector.load %arg3[%c0_83, %c0_84] : memref<1x8xf32, #tpu.memory_space<vmem>>, vector<1x8xf32>
    %61 = vector.broadcast %60 : vector<1x8xf32> to vector<256x8xf32>
    %62 = arith.addf %59, %61 : vector<256x8xf32>
    %cst_85 = arith.constant 0.000000e+00 : f32
    %63 = vector.broadcast %cst_85 : f32 to vector<256x8xf32>
    %64 = arith.maximumf %62, %63 : vector<256x8xf32>
    %65 = vector.shape_cast %64 : vector<256x8xf32> to vector<16x16x8xf32>
    %c1_86 = arith.constant 1 : index
    %c1_87 = arith.constant 1 : index
    %c0_88 = arith.constant 0 : index
    %66 = vector.load %arg9[%c1_86, %c1_87, %c0_88] : memref<18x18x8xf32, #tpu.memory_space<vmem>>, vector<16x16x8xf32>
    tpu.vector_store %arg9[%c1_86, %c1_87, %c0_88], %65 {strides = array<i32>} : memref<18x18x8xf32, #tpu.memory_space<vmem>>, vector<16x16x8xf32>,
    %c0_89 = arith.constant 0 : index
    %c0_90 = arith.constant 0 : index
    %c0_91 = arith.constant 0 : index
    %67 = vector.load %arg9[%c0_89, %c0_90, %c0_91] : memref<18x18x8xf32, #tpu.memory_space<vmem>>, vector<16x16x8xf32>
    %68 = vector.shape_cast %67 : vector<16x16x8xf32> to vector<256x8xf32>
    %c0_92 = arith.constant 0 : index
    %c0_93 = arith.constant 0 : index
    %c0_94 = arith.constant 0 : index
    %c0_95 = arith.constant 0 : index
    %69 = vector.load %arg4[%c0_92, %c0_93, %c0_94, %c0_95] : memref<3x3x8x8xf32, #tpu.memory_space<vmem>>, vector<1x1x8x8xf32>
    %70 = vector.shape_cast %69 : vector<1x1x8x8xf32> to vector<8x8xf32>
    %cst_96 = arith.constant dense<0.000000e+00> : vector<256x8xf32>
    %71 = tpu.matmul %68, %70, %cst_96 {dimension_numbers = #tpu.dot_dimension_numbers<[1], [0], [0], [1], [0, 0, 1, 1], [], []>} : vector<256x8xf32>, vector<8x8xf32>, vector<256x8xf32> -> vector<256x8xf32>
    %c0_97 = arith.constant 0 : index
    %c1_98 = arith.constant 1 : index
    %c0_99 = arith.constant 0 : index
    %72 = vector.load %arg9[%c0_97, %c1_98, %c0_99] : memref<18x18x8xf32, #tpu.memory_space<vmem>>, vector<16x16x8xf32>
    %73 = vector.shape_cast %72 : vector<16x16x8xf32> to vector<256x8xf32>
    %c0_100 = arith.constant 0 : index
    %c1_101 = arith.constant 1 : index
    %c0_102 = arith.constant 0 : index
    %c0_103 = arith.constant 0 : index
    %74 = vector.load %arg4[%c0_100, %c1_101, %c0_102, %c0_103] : memref<3x3x8x8xf32, #tpu.memory_space<vmem>>, vector<1x1x8x8xf32>
    %75 = vector.shape_cast %74 : vector<1x1x8x8xf32> to vector<8x8xf32>
    %cst_104 = arith.constant dense<0.000000e+00> : vector<256x8xf32>
    %76 = tpu.matmul %73, %75, %cst_104 {dimension_numbers = #tpu.dot_dimension_numbers<[1], [0], [0], [1], [0, 0, 1, 1], [], []>} : vector<256x8xf32>, vector<8x8xf32>, vector<256x8xf32> -> vector<256x8xf32>
    %77 = arith.addf %71, %76 : vector<256x8xf32>
    %c0_105 = arith.constant 0 : index
    %c2_106 = arith.constant 2 : index
    %c0_107 = arith.constant 0 : index
    %78 = vector.load %arg9[%c0_105, %c2_106, %c0_107] : memref<18x18x8xf32, #tpu.memory_space<vmem>>, vector<16x16x8xf32>
    %79 = vector.shape_cast %78 : vector<16x16x8xf32> to vector<256x8xf32>
    %c0_108 = arith.constant 0 : index
    %c2_109 = arith.constant 2 : index
    %c0_110 = arith.constant 0 : index
    %c0_111 = arith.constant 0 : index
    %80 = vector.load %arg4[%c0_108, %c2_109, %c0_110, %c0_111] : memref<3x3x8x8xf32, #tpu.memory_space<vmem>>, vector<1x1x8x8xf32>
    %81 = vector.shape_cast %80 : vector<1x1x8x8xf32> to vector<8x8xf32>
    %cst_112 = arith.constant dense<0.000000e+00> : vector<256x8xf32>
    %82 = tpu.matmul %79, %81, %cst_112 {dimension_numbers = #tpu.dot_dimension_numbers<[1], [0], [0], [1], [0, 0, 1, 1], [], []>} : vector<256x8xf32>, vector<8x8xf32>, vector<256x8xf32> -> vector<256x8xf32>
    %83 = arith.addf %77, %82 : vector<256x8xf32>
    %c1_113 = arith.constant 1 : index
    %c0_114 = arith.constant 0 : index
    %c0_115 = arith.constant 0 : index
    %84 = vector.load %arg9[%c1_113, %c0_114, %c0_115] : memref<18x18x8xf32, #tpu.memory_space<vmem>>, vector<16x16x8xf32>
    %85 = vector.shape_cast %84 : vector<16x16x8xf32> to vector<256x8xf32>
    %c1_116 = arith.constant 1 : index
    %c0_117 = arith.constant 0 : index
    %c0_118 = arith.constant 0 : index
    %c0_119 = arith.constant 0 : index
    %86 = vector.load %arg4[%c1_116, %c0_117, %c0_118, %c0_119] : memref<3x3x8x8xf32, #tpu.memory_space<vmem>>, vector<1x1x8x8xf32>
    %87 = vector.shape_cast %86 : vector<1x1x8x8xf32> to vector<8x8xf32>
    %cst_120 = arith.constant dense<0.000000e+00> : vector<256x8xf32>
    %88 = tpu.matmul %85, %87, %cst_120 {dimension_numbers = #tpu.dot_dimension_numbers<[1], [0], [0], [1], [0, 0, 1, 1], [], []>} : vector<256x8xf32>, vector<8x8xf32>, vector<256x8xf32> -> vector<256x8xf32>
    %89 = arith.addf %83, %88 : vector<256x8xf32>
    %c1_121 = arith.constant 1 : index
    %c1_122 = arith.constant 1 : index
    %c0_123 = arith.constant 0 : index
    %90 = vector.load %arg9[%c1_121, %c1_122, %c0_123] : memref<18x18x8xf32, #tpu.memory_space<vmem>>, vector<16x16x8xf32>
    %91 = vector.shape_cast %90 : vector<16x16x8xf32> to vector<256x8xf32>
    %c1_124 = arith.constant 1 : index
    %c1_125 = arith.constant 1 : index
    %c0_126 = arith.constant 0 : index
    %c0_127 = arith.constant 0 : index
    %92 = vector.load %arg4[%c1_124, %c1_125, %c0_126, %c0_127] : memref<3x3x8x8xf32, #tpu.memory_space<vmem>>, vector<1x1x8x8xf32>
    %93 = vector.shape_cast %92 : vector<1x1x8x8xf32> to vector<8x8xf32>
    %cst_128 = arith.constant dense<0.000000e+00> : vector<256x8xf32>
    %94 = tpu.matmul %91, %93, %cst_128 {dimension_numbers = #tpu.dot_dimension_numbers<[1], [0], [0], [1], [0, 0, 1, 1], [], []>} : vector<256x8xf32>, vector<8x8xf32>, vector<256x8xf32> -> vector<256x8xf32>
    %95 = arith.addf %89, %94 : vector<256x8xf32>
    %c1_129 = arith.constant 1 : index
    %c2_130 = arith.constant 2 : index
    %c0_131 = arith.constant 0 : index
    %96 = vector.load %arg9[%c1_129, %c2_130, %c0_131] : memref<18x18x8xf32, #tpu.memory_space<vmem>>, vector<16x16x8xf32>
    %97 = vector.shape_cast %96 : vector<16x16x8xf32> to vector<256x8xf32>
    %c1_132 = arith.constant 1 : index
    %c2_133 = arith.constant 2 : index
    %c0_134 = arith.constant 0 : index
    %c0_135 = arith.constant 0 : index
    %98 = vector.load %arg4[%c1_132, %c2_133, %c0_134, %c0_135] : memref<3x3x8x8xf32, #tpu.memory_space<vmem>>, vector<1x1x8x8xf32>
    %99 = vector.shape_cast %98 : vector<1x1x8x8xf32> to vector<8x8xf32>
    %cst_136 = arith.constant dense<0.000000e+00> : vector<256x8xf32>
    %100 = tpu.matmul %97, %99, %cst_136 {dimension_numbers = #tpu.dot_dimension_numbers<[1], [0], [0], [1], [0, 0, 1, 1], [], []>} : vector<256x8xf32>, vector<8x8xf32>, vector<256x8xf32> -> vector<256x8xf32>
    %101 = arith.addf %95, %100 : vector<256x8xf32>
    %c2_137 = arith.constant 2 : index
    %c0_138 = arith.constant 0 : index
    %c0_139 = arith.constant 0 : index
    %102 = vector.load %arg9[%c2_137, %c0_138, %c0_139] : memref<18x18x8xf32, #tpu.memory_space<vmem>>, vector<16x16x8xf32>
    %103 = vector.shape_cast %102 : vector<16x16x8xf32> to vector<256x8xf32>
    %c2_140 = arith.constant 2 : index
    %c0_141 = arith.constant 0 : index
    %c0_142 = arith.constant 0 : index
    %c0_143 = arith.constant 0 : index
    %104 = vector.load %arg4[%c2_140, %c0_141, %c0_142, %c0_143] : memref<3x3x8x8xf32, #tpu.memory_space<vmem>>, vector<1x1x8x8xf32>
    %105 = vector.shape_cast %104 : vector<1x1x8x8xf32> to vector<8x8xf32>
    %cst_144 = arith.constant dense<0.000000e+00> : vector<256x8xf32>
    %106 = tpu.matmul %103, %105, %cst_144 {dimension_numbers = #tpu.dot_dimension_numbers<[1], [0], [0], [1], [0, 0, 1, 1], [], []>} : vector<256x8xf32>, vector<8x8xf32>, vector<256x8xf32> -> vector<256x8xf32>
    %107 = arith.addf %101, %106 : vector<256x8xf32>
    %c2_145 = arith.constant 2 : index
    %c1_146 = arith.constant 1 : index
    %c0_147 = arith.constant 0 : index
    %108 = vector.load %arg9[%c2_145, %c1_146, %c0_147] : memref<18x18x8xf32, #tpu.memory_space<vmem>>, vector<16x16x8xf32>
    %109 = vector.shape_cast %108 : vector<16x16x8xf32> to vector<256x8xf32>
    %c2_148 = arith.constant 2 : index
    %c1_149 = arith.constant 1 : index
    %c0_150 = arith.constant 0 : index
    %c0_151 = arith.constant 0 : index
    %110 = vector.load %arg4[%c2_148, %c1_149, %c0_150, %c0_151] : memref<3x3x8x8xf32, #tpu.memory_space<vmem>>, vector<1x1x8x8xf32>
    %111 = vector.shape_cast %110 : vector<1x1x8x8xf32> to vector<8x8xf32>
    %cst_152 = arith.constant dense<0.000000e+00> : vector<256x8xf32>
    %112 = tpu.matmul %109, %111, %cst_152 {dimension_numbers = #tpu.dot_dimension_numbers<[1], [0], [0], [1], [0, 0, 1, 1], [], []>} : vector<256x8xf32>, vector<8x8xf32>, vector<256x8xf32> -> vector<256x8xf32>
    %113 = arith.addf %107, %112 : vector<256x8xf32>
    %c2_153 = arith.constant 2 : index
    %c2_154 = arith.constant 2 : index
    %c0_155 = arith.constant 0 : index
    %114 = vector.load %arg9[%c2_153, %c2_154, %c0_155] : memref<18x18x8xf32, #tpu.memory_space<vmem>>, vector<16x16x8xf32>
    %115 = vector.shape_cast %114 : vector<16x16x8xf32> to vector<256x8xf32>
    %c2_156 = arith.constant 2 : index
    %c2_157 = arith.constant 2 : index
    %c0_158 = arith.constant 0 : index
    %c0_159 = arith.constant 0 : index
    %116 = vector.load %arg4[%c2_156, %c2_157, %c0_158, %c0_159] : memref<3x3x8x8xf32, #tpu.memory_space<vmem>>, vector<1x1x8x8xf32>
    %117 = vector.shape_cast %116 : vector<1x1x8x8xf32> to vector<8x8xf32>
    %cst_160 = arith.constant dense<0.000000e+00> : vector<256x8xf32>
    %118 = tpu.matmul %115, %117, %cst_160 {dimension_numbers = #tpu.dot_dimension_numbers<[1], [0], [0], [1], [0, 0, 1, 1], [], []>} : vector<256x8xf32>, vector<8x8xf32>, vector<256x8xf32> -> vector<256x8xf32>
    %119 = arith.addf %113, %118 : vector<256x8xf32>
    %c0_161 = arith.constant 0 : index
    %c0_162 = arith.constant 0 : index
    %120 = vector.load %arg5[%c0_161, %c0_162] : memref<1x8xf32, #tpu.memory_space<vmem>>, vector<1x8xf32>
    %121 = vector.broadcast %120 : vector<1x8xf32> to vector<256x8xf32>
    %122 = arith.addf %119, %121 : vector<256x8xf32>
    %cst_163 = arith.constant 0.000000e+00 : f32
    %123 = vector.broadcast %cst_163 : f32 to vector<256x8xf32>
    %124 = arith.maximumf %122, %123 : vector<256x8xf32>
    %125 = tpu.transpose %124, [1, 0] : vector<256x8xf32> -> vector<8x256xf32>
    %c0_164 = arith.constant 0 : index
    %c0_165 = arith.constant 0 : index
    %c0_166 = arith.constant 0 : index
    %126 = vector.load %arg6[%c0_164, %c0_165, %c0_166] : memref<1x8x256xf32, #tpu.memory_space<vmem>>, vector<1x8x256xf32>
    %127 = vector.shape_cast %126 : vector<1x8x256xf32> to vector<8x256xf32>
    %128 = vector.shape_cast %125 : vector<8x256xf32> to vector<1x8x256xf32>
    tpu.vector_store %arg6[%c0_164, %c0_165, %c0_166], %128 {strides = array<i32>} : memref<1x8x256xf32, #tpu.memory_space<vmem>>, vector<1x8x256xf32>,
    %129 = vector.shape_cast %124 : vector<256x8xf32> to vector<8x2x16x8xf32>
    %cst_167 = arith.constant dense<0xFF800000> : vector<8x16x8xf32>
    %130 = vector.multi_reduction <maximumf>, %129, %cst_167 [1] : vector<8x2x16x8xf32> to vector<8x16x8xf32>
    %c0_168 = arith.constant 0 : index
    %c0_169 = arith.constant 0 : index
    %c0_170 = arith.constant 0 : index
    %131 = vector.load %arg10[%c0_168, %c0_169, %c0_170] : memref<8x16x8xf32, #tpu.memory_space<vmem>>, vector<8x16x8xf32>
    tpu.vector_store %arg10[%c0_168, %c0_169, %c0_170], %130 {strides = array<i32>} : memref<8x16x8xf32, #tpu.memory_space<vmem>>, vector<8x16x8xf32>,
    %c0_171 = arith.constant 0 : index
    %c0_172 = arith.constant 0 : index
    %c0_173 = arith.constant 0 : index
    %132 = tpu.strided_load %arg10[%c0_171, %c0_172, %c0_173] {strides = array<i32: 1, 2, 1>} : memref<8x16x8xf32, #tpu.memory_space<vmem>>, vector<8x8x8xf32>
    %c0_174 = arith.constant 0 : index
    %c1_175 = arith.constant 1 : index
    %c0_176 = arith.constant 0 : index
    %133 = tpu.strided_load %arg10[%c0_174, %c1_175, %c0_176] {strides = array<i32: 1, 2, 1>} : memref<8x16x8xf32, #tpu.memory_space<vmem>>, vector<8x8x8xf32>
    %134 = arith.maximumf %132, %133 : vector<8x8x8xf32>
    %135 = vector.shape_cast %134 : vector<8x8x8xf32> to vector<64x8xf32>
    %136 = tpu.transpose %135, [1, 0] : vector<64x8xf32> -> vector<8x64xf32>
    %c0_177 = arith.constant 0 : index
    %c0_178 = arith.constant 0 : index
    %c0_179 = arith.constant 0 : index
    %137 = vector.load %arg7[%c0_177, %c0_178, %c0_179] : memref<1x8x64xf32, #tpu.memory_space<vmem>>, vector<1x8x64xf32>
    %138 = vector.shape_cast %137 : vector<1x8x64xf32> to vector<8x64xf32>
    %139 = vector.shape_cast %136 : vector<8x64xf32> to vector<1x8x64xf32>
    tpu.vector_store %arg7[%c0_177, %c0_178, %c0_179], %139 {strides = array<i32>} : memref<1x8x64xf32, #tpu.memory_space<vmem>>, vector<1x8x64xf32>,
    return
  }
  func.func @transform_0(%arg0: i32) -> (i32, i32, i32, i32) {
    %c0_i32 = arith.constant 0 : i32
    %c0_i32_0 = arith.constant 0 : i32
    %c0_i32_1 = arith.constant 0 : i32
    %c0_i32_2 = arith.constant 0 : i32
    return %arg0, %c0_i32, %c0_i32_0, %c0_i32_1 : i32, i32, i32, i32
  }
  func.func @transform_1(%arg0: i32) -> (i32, i32, i32, i32) {
    %c0_i32 = arith.constant 0 : i32
    %c0_i32_0 = arith.constant 0 : i32
    %c0_i32_1 = arith.constant 0 : i32
    %c0_i32_2 = arith.constant 0 : i32
    %c0_i32_3 = arith.constant 0 : i32
    return %c0_i32, %c0_i32_0, %c0_i32_1, %c0_i32_2 : i32, i32, i32, i32
  }
  func.func @transform_2(%arg0: i32) -> (i32, i32) {
    %c0_i32 = arith.constant 0 : i32
    %c0_i32_0 = arith.constant 0 : i32
    %c0_i32_1 = arith.constant 0 : i32
    return %c0_i32, %c0_i32_0 : i32, i32
  }
  func.func @transform_3(%arg0: i32) -> (i32, i32, i32, i32) {
    %c0_i32 = arith.constant 0 : i32
    %c0_i32_0 = arith.constant 0 : i32
    %c0_i32_1 = arith.constant 0 : i32
    %c0_i32_2 = arith.constant 0 : i32
    %c0_i32_3 = arith.constant 0 : i32
    return %c0_i32, %c0_i32_0, %c0_i32_1, %c0_i32_2 : i32, i32, i32, i32
  }
  func.func @transform_4(%arg0: i32) -> (i32, i32) {
    %c0_i32 = arith.constant 0 : i32
    %c0_i32_0 = arith.constant 0 : i32
    %c0_i32_1 = arith.constant 0 : i32
    return %c0_i32, %c0_i32_0 : i32, i32
  }
  func.func @transform_5(%arg0: i32) -> (i32, i32, i32) {
    %c0_i32 = arith.constant 0 : i32
    %c0_i32_0 = arith.constant 0 : i32
    %c0_i32_1 = arith.constant 0 : i32
    return %arg0, %c0_i32, %c0_i32_0 : i32, i32, i32
  }
  func.func @transform_6(%arg0: i32) -> (i32, i32, i32) {
    %c0_i32 = arith.constant 0 : i32
    %c0_i32_0 = arith.constant 0 : i32
    %c0_i32_1 = arith.constant 0 : i32
    return %arg0, %c0_i32, %c0_i32_0 : i32, i32, i32
  }
}

</mosaic_0001>

<bundles_post_ra>
// kernel: tpu_custom_call.1
= control target key start
LH: loop header
LB: loop body
LE: loop exit
PB: predicated region body
PF: predicated region fallthrough
CT: control target
= control target key end

     0   :  { %12 = vsyncpa [#allocation6], 0  ;;  %s12834_s0 = inlined_call_operand.vmem [shape: f32[2,16,16,4], index: 0, kind: input, shape index: {}]   ;;  %s12835_s1 = inlined_call_operand.vmem [shape: f32[3,3,4,8], index: 1, kind: input, shape index: {}]   ;;  %s12836_s2 = inlined_call_operand.vmem [shape: f32[1,8], index: 2, kind: input, shape index: {}]   ;;  %s12837_s3 = inlined_call_operand.vmem [shape: f32[3,3,8,8], index: 3, kind: input, shape index: {}]   ;;  %s12838_s4 = inlined_call_operand.vmem [shape: f32[1,8], index: 4, kind: input, shape index: {}]   ;;  %s12839_s5 = inlined_call_operand.hbm [shape: f32[2,8,256], index: 5, kind: output, shape index: {0}]   ;;  %s12840_s6 = inlined_call_operand.hbm [shape: f32[2,8,64], index: 6, kind: output, shape index: {1}]  }
   0x1   :  { %14 = vsyncpa [#allocation6 + $0x1], 0 }
   0x2   :  { %15 = vsyncpa [#allocation8], 0 }
   0x3   :  { %17 = vsyncpa [#allocation8 + $0x1], 0  ;;  %s10611_s21 = smov 0   ;;  %s10613_s22 = smov 0  }
   0x4   :  { %s10615_s23 = smov 0   ;;  %s10617_s24 = smov 0  }
   0x5 LB: > { %s10632_s25 = sadd.s32 4294967295, %s10571_s24   ;;  %s7806_s26 = sadd.s32 4294967294, %s10571_s24   ;;  %s10571_s24 = sphi %s10617_s24, %s13121_s24   ;;  %s10567_s23 = sphi %s10615_s23, %s13120_s23   ;;  %s10563_s22 = sphi %s10613_s22, %s13119_s22   ;;  %s10559_s21 = sphi %s10611_s21, %s13118_s21  }
   0x6   : > { %s10636_s27 = sadd.s32 1, %s10571_s24   ;;  %s140_s28 = sadd.s32 1, %s10567_s23 }
   0x7   : > { %s137_s29 = ssub.s32 %s10571_s24, %s10636_s27  ;;  %p150_p0 = scmp.ne.s32.totalorder %s10567_s23, %s10563_s22 }
   0x8   : > { %p138_p1 = scmp.eq.s32.totalorder %s137_s29, 0  ;;  %p151_p2 = scmp.eq.s32.totalorder %s10632_s25, 1 }
   0x9   : > { %p156_p3 = scmp.ne.s32.totalorder %s10563_s22, %s10559_s21  ;;  %p157_p4 = scmp.eq.s32.totalorder %s7806_s26, 1 }
   0xa   : > { %s10647_s30 = scalar_select %p138_p1, %s10567_s23, %s140_s28  }
   0xb   : > { %p10649_p5 = por %p151_p2, %p150_p0  ;;  %p10653_p6 = por %p157_p4, %p156_p3 }
   0xc   : > { %p7809_p7 = scmp.ge.s32.totalorder %s10571_s24, 1  ;;  %p221_p8 = scmp.lt.s32.totalorder %s10571_s24, 3 }
   0xe   : > { %p222_p9 = pnand %p7809_p7, %p221_p8 }
  0x10   : > { %225 = sbr.rel (%p222_p9) target bundleno = 1726 (0x6be), region = 40 }
  0x17   : > { %v7814_v0 = vld [vmem:[%s12835_s1 + $0x4] sm:$0xf]  ;;  %vm601_vm0 = vcmask 1043456   ;;  %vm261_vm1 = vcmask 31744   ;;  %vm264_vm2 = vcmask 25600   ;;  %v12841_v1 = vmov 0.0  }
  0x18   : > { %9020 = vmatprep.subr.msk.mxu0 %vm601_vm0, %v7814_v0  ;;  %262 = vst.msk [vmem:[#allocation2] sm:$0xff] %vm261_vm1, %v12841_v1  ;;  %263 = vst.msk [vmem:[#allocation2 + $0x8] sm:$0xff] %vm261_vm1, %v12841_v1  ;;  %v470_v2 = vld [vmem:[%s12835_s1] sm:$0xf]  ;;  %p256_p10 = scmp.lt.s32.totalorder %s10632_s25, 1  ;;  %vm317_vm3 = vcmask 64512  }
  0x19   : > { %266 = vst.msk [vmem:[#allocation2 + $0x18] sm:$0xff] %vm261_vm1, %v12841_v1  ;;  %267 = vst.msk [vmem:[#allocation2 + $0x20] sm:$0xff] %vm261_vm1, %v12841_v1  ;;  %9021 = vmatpush3.msk.msra.mxu0 %vm601_vm0, %v7814_v0  ;;  %v10789_v6 = vld [vmem:[%s12835_s1 + $0x8] sm:$0xf]  ;;  %vm320_vm4 = vcmask 58368   ;;  %s12753_s9 = sand.u32 1, %s10563_s22  }
  0x1a   : > { %269 = vst.msk [vmem:[#allocation2 + $0x30] sm:$0xff] %vm261_vm1, %v12841_v1  ;;  %270 = vst.msk [vmem:[#allocation2 + $0x38] sm:$0xff] %vm261_vm1, %v12841_v1  ;;  %9070 = vmatprep.subr.msk.mxu0 %vm601_vm0, %v470_v2  ;;  %s257_s13 = scalar_select %p256_p10, %s10632_s25, 1 }
  0x1b   : > { %272 = vst.msk [vmem:[#allocation2 + $0x48] sm:$0xff] %vm261_vm1, %v12841_v1  ;;  %273 = vst.msk [vmem:[#allocation2 + $0x50] sm:$0xff] %vm261_vm1, %v12841_v1  ;;  %s7810_s10 = sshll.u32 %s12753_s9, 4  ;;  %s10574_s19 = smov [#allocation5]  }
  0x1c   : > { %275 = vst.msk [vmem:[#allocation2 + $0x60] sm:$0xff] %vm261_vm1, %v12841_v1  ;;  %276 = vst.msk [vmem:[#allocation2 + $0x68] sm:$0xff] %vm261_vm1, %v12841_v1  ;;  %s8424_s14 = sshll.u32 %s257_s13, 8  ;;  %s248_s11 = scalar_lea.vmem [#allocation5], %s7810_s10 }
  0x1d   : > { %278 = vst.msk [vmem:[#allocation2 + $0x78] sm:$0xff] %vm261_vm1, %v12841_v1  ;;  %279 = vst.msk [vmem:[#allocation2 + $0x80] sm:$0xff] %vm261_vm1, %v12841_v1  ;;  %s10781_s17 = scalar_lea.vmem %s12834_s0, %s8424_s14  ;;  %s7702_s12 = sshll.u32 %s248_s11, 4  ;;  %s12757_s12 = int_to_ptr.vmem [resolvable:$true] %s7702_s12 }
  0x1e   : > { %281 = vst.msk [vmem:[#allocation2 + $0x90] sm:$0xff] %vm261_vm1, %v12841_v1  ;;  %282 = vst.msk [vmem:[#allocation2 + $0x98] sm:$0xff] %vm261_vm1, %v12841_v1  ;;  %v373_v3 = vld [vmem:[%s10781_s17] sm:$0xff]  ;;  %v374_v4 = vld [vmem:[%s10781_s17 + $0x8] sm:$0xff]  ;;  %s8425_s13 = sshll.u32 %s10632_s25, 8  ;;  %s10477_s18 = scalar_lea.vmem %s12757_s12, 256 }
  0x1f   : > { %284 = vst.msk [vmem:[#allocation2 + $0xa8] sm:$0xff] %vm261_vm1, %v12841_v1  ;;  %285 = vst.msk [vmem:[#allocation2 + $0xb0] sm:$0xff] %vm261_vm1, %v12841_v1  ;;  %v375_v5 = vld [vmem:[%s10781_s17 + $0x10] sm:$0xff]  ;;  %v471_v7 = vld [vmem:[#allocation2 + $0x1] sm:$0xff]  ;;  %s12762_s16 = scalar_lea.hbm %s12839_s5, %s8425_s13  ;;  %p10478_p11 = scmp.ne.s32.totalorder %s12757_s12, %s10477_s18 }
  0x20   : > { %287 = vst.msk [vmem:[#allocation2 + $0xc0] sm:$0xff] %vm261_vm1, %v12841_v1  ;;  %288 = vst.msk [vmem:[#allocation2 + $0xc8] sm:$0xff] %vm261_vm1, %v12841_v1  ;;  %v376_v9 = vld [vmem:[%s10781_s17 + $0x18] sm:$0xff]  ;;  %9022 = vmatprep.mubr.msk.f32.mxu0 %vm261_vm1, %v471_v7  ;;  %v377_v10 = vld [vmem:[%s10781_s17 + $0x20] sm:$0xff]  ;;  %s10481_s20 = sshll.u32 %s10574_s19, 4  ;;  %s10482_s20 = int_to_ptr.vmem [resolvable:$false] %s10481_s20 }
  0x21   : > { %290 = vst.msk [vmem:[#allocation2 + $0xd8] sm:$0xff] %vm261_vm1, %v12841_v1  ;;  %291 = vst.msk [vmem:[#allocation2 + $0xe0] sm:$0xff] %vm261_vm1, %v12841_v1  ;;  %v378_v11 = vld [vmem:[%s10781_s17 + $0x28] sm:$0xff]  ;;  %v379_v12 = vld [vmem:[%s10781_s17 + $0x30] sm:$0xff]  ;;  %p10479_p12 = pnand %p10478_p11, %p10649_p5  ;;  %s10483_s26 = scalar_lea.vmem %s10482_s20, 512 }
  0x22   : > { %293 = vst.msk [vmem:[#allocation2 + $0xf0] sm:$0xff] %vm261_vm1, %v12841_v1  ;;  %294 = vst.msk [vmem:[#allocation2 + $0xf8] sm:$0xff] %vm261_vm1, %v12841_v1  ;;  %v380_v13 = vld [vmem:[%s10781_s17 + $0x38] sm:$0xff]  ;;  %v381_v14 = vld [vmem:[%s10781_s17 + $0x40] sm:$0xff]  ;;  %p10484_p0 = scmp.lt.s32.totalorder %s12757_s12, %s10482_s20  ;;  %p10485_p1 = scmp.lt.s32.totalorder %s10483_s26, %s10477_s18 }
  0x23   : > { %296 = vst.msk [vmem:[#allocation2 + $0x108] sm:$0xff] %vm261_vm1, %v12841_v1  ;;  %297 = vst.msk [vmem:[#allocation2 + $0x110] sm:$0xff] %vm261_vm1, %v12841_v1  ;;  %v382_v15 = vld [vmem:[%s10781_s17 + $0x48] sm:$0xff]  ;;  %v383_v16 = vld [vmem:[%s10781_s17 + $0x50] sm:$0xff]  ;;  %p10480_p13 = pneg %p10479_p12 }
  0x24   : > { %299 = vst.msk [vmem:[#allocation2 + $0x120] sm:$0xff] %vm261_vm1, %v12841_v1  ;;  %300 = vst.msk [vmem:[#allocation2 + $0x128] sm:$0xff] %vm261_vm1, %v12841_v1  ;;  %v384_v17 = vld [vmem:[%s10781_s17 + $0x58] sm:$0xff]  ;;  %v385_v18 = vld [vmem:[%s10781_s17 + $0x60] sm:$0xff]  ;;  %p10486_p2 = por %p10485_p1, %p10484_p0 }
  0x25   : > { %302 = vst.msk [vmem:[#allocation2 + $0x138] sm:$0xff] %vm261_vm1, %v12841_v1  ;;  %303 = vst.msk [vmem:[#allocation2 + $0x140] sm:$0xff] %vm261_vm1, %v12841_v1  ;;  %v386_v19 = vld [vmem:[%s10781_s17 + $0x68] sm:$0xff]  ;;  %v387_v20 = vld [vmem:[%s10781_s17 + $0x70] sm:$0xff] }
  0x26   : > { %305 = vst.msk [vmem:[#allocation2 + $0x150] sm:$0xff] %vm261_vm1, %v12841_v1  ;;  %306 = vst.msk [vmem:[#allocation2 + $0x158] sm:$0xff] %vm261_vm1, %v12841_v1  ;;  %v388_v21 = vld [vmem:[%s10781_s17 + $0x78] sm:$0xff]  ;;  %v389_v22 = vld [vmem:[%s10781_s17 + $0x80] sm:$0xff]  ;;  %p10487_p3 = pnand %p10486_p2, %p10480_p13 }
  0x27   : > { %308 = vst.msk [vmem:[#allocation2 + $0x168] sm:$0xff] %vm261_vm1, %v12841_v1  ;;  %309 = vst.msk [vmem:[#allocation2 + $0x170] sm:$0xff] %vm261_vm1, %v12841_v1  ;;  %v390_v23 = vld [vmem:[%s10781_s17 + $0x88] sm:$0xff]  ;;  %v391_v24 = vld [vmem:[%s10781_s17 + $0x90] sm:$0xff] }
  0x28   : > { %311 = vst.msk [vmem:[#allocation2 + $0x180] sm:$0xff] %vm261_vm1, %v12841_v1  ;;  %312 = vst.msk [vmem:[#allocation2 + $0x188] sm:$0xff] %vm261_vm1, %v12841_v1  ;;  %v392_v25 = vld [vmem:[%s10781_s17 + $0x98] sm:$0xff]  ;;  %v393_v26 = vld [vmem:[%s10781_s17 + $0xa0] sm:$0xff] }
  0x29   : > { %314 = vst.msk [vmem:[#allocation2 + $0x198] sm:$0xff] %vm261_vm1, %v12841_v1  ;;  %315 = vst.msk [vmem:[#allocation2 + $0x1a0] sm:$0xff] %vm261_vm1, %v12841_v1  ;;  %v394_v27 = vld [vmem:[%s10781_s17 + $0xa8] sm:$0xff]  ;;  %v395_v31 = vld [vmem:[%s10781_s17 + $0xb0] sm:$0xff] }
  0x2a   : > { %265 = vst.msk [vmem:[#allocation2 + $0x10] sm:$0x3] %vm264_vm2, %v12841_v1  ;;  %268 = vst.msk [vmem:[#allocation2 + $0x28] sm:$0x3] %vm264_vm2, %v12841_v1  ;;  %v396_v32 = vld [vmem:[%s10781_s17 + $0xb8] sm:$0xff]  ;;  %v397_v37 = vld [vmem:[%s10781_s17 + $0xc0] sm:$0xff] }
  0x2b   : > { %271 = vst.msk [vmem:[#allocation2 + $0x40] sm:$0x3] %vm264_vm2, %v12841_v1  ;;  %274 = vst.msk [vmem:[#allocation2 + $0x58] sm:$0x3] %vm264_vm2, %v12841_v1  ;;  %v398_v38 = vld [vmem:[%s10781_s17 + $0xc8] sm:$0xff]  ;;  %v399_v39 = vld [vmem:[%s10781_s17 + $0xd0] sm:$0xff] }
  0x2c   : > { %277 = vst.msk [vmem:[#allocation2 + $0x70] sm:$0x3] %vm264_vm2, %v12841_v1  ;;  %280 = vst.msk [vmem:[#allocation2 + $0x88] sm:$0x3] %vm264_vm2, %v12841_v1  ;;  %v400_v40 = vld [vmem:[%s10781_s17 + $0xd8] sm:$0xff]  ;;  %v401_v41 = vld [vmem:[%s10781_s17 + $0xe0] sm:$0xff] }
  0x2d   : > { %283 = vst.msk [vmem:[#allocation2 + $0xa0] sm:$0x3] %vm264_vm2, %v12841_v1  ;;  %286 = vst.msk [vmem:[#allocation2 + $0xb8] sm:$0x3] %vm264_vm2, %v12841_v1  ;;  %v402_v42 = vld [vmem:[%s10781_s17 + $0xe8] sm:$0xff] }
  0x2e   : > { %289 = vst.msk [vmem:[#allocation2 + $0xd0] sm:$0x3] %vm264_vm2, %v12841_v1  ;;  %292 = vst.msk [vmem:[#allocation2 + $0xe8] sm:$0x3] %vm264_vm2, %v12841_v1  ;;  %v10979_v7 = vld [vmem:[%s12835_s1 + $0xc] sm:$0xf] }
  0x2f   : > { %295 = vst.msk [vmem:[#allocation2 + $0x100] sm:$0x3] %vm264_vm2, %v12841_v1  ;;  %298 = vst.msk [vmem:[#allocation2 + $0x118] sm:$0x3] %vm264_vm2, %v12841_v1 }
  0x30   : > { %301 = vst.msk [vmem:[#allocation2 + $0x130] sm:$0x3] %vm264_vm2, %v12841_v1  ;;  %304 = vst.msk [vmem:[#allocation2 + $0x148] sm:$0x3] %vm264_vm2, %v12841_v1 }
  0x31   : > { %307 = vst.msk [vmem:[#allocation2 + $0x160] sm:$0x3] %vm264_vm2, %v12841_v1  ;;  %310 = vst.msk [vmem:[#allocation2 + $0x178] sm:$0x3] %vm264_vm2, %v12841_v1  ;;  %v472_v8 = vld [vmem:[#allocation2 + $0x9] sm:$0xff] }
  0x32   : > { %313 = vst.msk [vmem:[#allocation2 + $0x190] sm:$0x3] %vm264_vm2, %v12841_v1  ;;  %316 = vst.msk [vmem:[#allocation2 + $0x1a8] sm:$0x3] %vm264_vm2, %v12841_v1  ;;  %9023 = vmatmul.mubr.msk.f32.vlgmr.msra.gmra.mrb[0].mxu0 %vm261_vm1, %v472_v8 }
  0x33   : > { %406 = vst.msk [vmem:[#allocation2 + $0x19] sm:$0xff] %vm261_vm1, %v373_v3  ;;  %407 = vst.msk [vmem:[#allocation2 + $0x21] sm:$0xff] %vm261_vm1, %v374_v4  ;;  %9071 = vmatpush3.msk.msra.mxu0 %vm601_vm0, %v470_v2  ;;  %v438_v3 = vld [vmem:[#allocation2] sm:$0xff]  ;;  %v439_v4 = vld [vmem:[#allocation2 + $0x8] sm:$0xff] }
  0x34   : > { %408 = vst.msk [vmem:[#allocation2 + $0x31] sm:$0xff] %vm261_vm1, %v375_v5  ;;  %409 = vst.msk [vmem:[#allocation2 + $0x39] sm:$0xff] %vm261_vm1, %v376_v9  ;;  %9120 = vmatprep.subr.msk.mxu0 %vm601_vm0, %v10789_v6 }
  0x35   : > { %410 = vst.msk [vmem:[#allocation2 + $0x49] sm:$0xff] %vm261_vm1, %v377_v10  ;;  %411 = vst.msk [vmem:[#allocation2 + $0x51] sm:$0xff] %vm261_vm1, %v378_v11 }
  0x36   : > { %412 = vst.msk [vmem:[#allocation2 + $0x61] sm:$0xff] %vm261_vm1, %v379_v12  ;;  %413 = vst.msk [vmem:[#allocation2 + $0x69] sm:$0xff] %vm261_vm1, %v380_v13 }
  0x37   : > { %414 = vst.msk [vmem:[#allocation2 + $0x79] sm:$0xff] %vm261_vm1, %v381_v14  ;;  %415 = vst.msk [vmem:[#allocation2 + $0x81] sm:$0xff] %vm261_vm1, %v382_v15 }
  0x38   : > { %416 = vst.msk [vmem:[#allocation2 + $0x91] sm:$0xff] %vm261_vm1, %v383_v16  ;;  %417 = vst.msk [vmem:[#allocation2 + $0x99] sm:$0xff] %vm261_vm1, %v384_v17 }
  0x39   : > { %418 = vst.msk [vmem:[#allocation2 + $0xa9] sm:$0xff] %vm261_vm1, %v385_v18  ;;  %419 = vst.msk [vmem:[#allocation2 + $0xb1] sm:$0xff] %vm261_vm1, %v386_v19 }
  0x3a   : > { %420 = vst.msk [vmem:[#allocation2 + $0xc1] sm:$0xff] %vm261_vm1, %v387_v20  ;;  %421 = vst.msk [vmem:[#allocation2 + $0xc9] sm:$0xff] %vm261_vm1, %v388_v21  ;;  %v10834_v28 = vld [vmem:[#allocation2 + $0x19] sm:$0xff]  ;;  %v10836_v29 = vld [vmem:[#allocation2 + $0x21] sm:$0xff] }
  0x3b   : > { %422 = vst.msk [vmem:[#allocation2 + $0xd9] sm:$0xff] %vm261_vm1, %v389_v22  ;;  %423 = vst.msk [vmem:[#allocation2 + $0xe1] sm:$0xff] %vm261_vm1, %v390_v23  ;;  %v10838_v30 = vld [vmem:[#allocation2 + $0x31] sm:$0xff]  ;;  %9025 = vmatprep.mubr.msk.f32.mxu0 %vm261_vm1, %v10834_v28  ;;  %v10853_v33 = vld [vmem:[#allocation2 + $0x39] sm:$0xff] }
  0x3c   : > { %424 = vst.msk [vmem:[#allocation2 + $0xf1] sm:$0xff] %vm261_vm1, %v391_v24  ;;  %425 = vst.msk [vmem:[#allocation2 + $0xf9] sm:$0xff] %vm261_vm1, %v392_v25  ;;  %9026 = vmatmul.mubr.msk.f32.gmra.mrb[2].mxu0 %vm261_vm1, %v10836_v29  ;;  %v10855_v34 = vld [vmem:[#allocation2 + $0x49] sm:$0xff]  ;;  %v10861_v35 = vld [vmem:[#allocation2 + $0x51] sm:$0xff] }
  0x3d   : > { %426 = vst.msk [vmem:[#allocation2 + $0x109] sm:$0xff] %vm261_vm1, %v393_v26  ;;  %427 = vst.msk [vmem:[#allocation2 + $0x111] sm:$0xff] %vm261_vm1, %v394_v27  ;;  %9028 = vmatprep.mubr.msk.f32.mxu0 %vm261_vm1, %v10838_v30  ;;  %v10863_v36 = vld [vmem:[#allocation2 + $0x61] sm:$0xff]  ;;  %v10879_v43 = vld [vmem:[#allocation2 + $0x69] sm:$0xff] }
  0x3e   : > { %428 = vst.msk [vmem:[#allocation2 + $0x121] sm:$0xff] %vm261_vm1, %v395_v31  ;;  %429 = vst.msk [vmem:[#allocation2 + $0x129] sm:$0xff] %vm261_vm1, %v396_v32  ;;  %v10883_v44 = vld [vmem:[#allocation2 + $0x79] sm:$0xff]  ;;  %v10889_v45 = vld [vmem:[#allocation2 + $0x81] sm:$0xff] }
  0x3f   : > { %430 = vst.msk [vmem:[#allocation2 + $0x139] sm:$0xff] %vm261_vm1, %v397_v37  ;;  %431 = vst.msk [vmem:[#allocation2 + $0x141] sm:$0xff] %vm261_vm1, %v398_v38  ;;  %v10891_v46 = vld [vmem:[#allocation2 + $0x91] sm:$0xff]  ;;  %v10897_v47 = vld [vmem:[#allocation2 + $0x99] sm:$0xff] }
  0x40   : > { %9029 = vmatmul.mubr.msk.f32.gmra.mrb[4].mxu0 %vm261_vm1, %v10853_v33  ;;  %432 = vst.msk [vmem:[#allocation2 + $0x151] sm:$0xff] %vm261_vm1, %v399_v39  ;;  %433 = vst.msk [vmem:[#allocation2 + $0x159] sm:$0xff] %vm261_vm1, %v400_v40  ;;  %v10899_v48 = vld [vmem:[#allocation2 + $0xa9] sm:$0xff]  ;;  %v10905_v49 = vld [vmem:[#allocation2 + $0xb1] sm:$0xff] }
  0x41   : > { %9031 = vmatprep.mubr.msk.f32.mxu0 %vm261_vm1, %v10855_v34  ;;  %434 = vst.msk [vmem:[#allocation2 + $0x169] sm:$0xff] %vm261_vm1, %v401_v41  ;;  %435 = vst.msk [vmem:[#allocation2 + $0x171] sm:$0xff] %vm261_vm1, %v402_v42  ;;  %v10907_v50 = vld [vmem:[#allocation2 + $0xc1] sm:$0xff]  ;;  %v10913_v51 = vld [vmem:[#allocation2 + $0xc9] sm:$0xff] }
  0x42   : > { %v10915_v52 = vld [vmem:[#allocation2 + $0xd9] sm:$0xff]  ;;  %v10921_v53 = vld [vmem:[#allocation2 + $0xe1] sm:$0xff]  ;;  %v10988_v9 = vld [vmem:[#allocation2 + $0x30] sm:$0xff] }
  0x43   : > { %v10923_v54 = vld [vmem:[#allocation2 + $0xf1] sm:$0xff]  ;;  %v10929_v55 = vld [vmem:[#allocation2 + $0xf9] sm:$0xff]  ;;  %v10998_v11 = vld [vmem:[#allocation2 + $0x48] sm:$0xff] }
  0x44   : > { %9032 = vmatmul.mubr.msk.f32.gmra.mrb[6].mxu0 %vm261_vm1, %v10861_v35  ;;  %v10931_v56 = vld [vmem:[#allocation2 + $0x109] sm:$0xff]  ;;  %v10937_v57 = vld [vmem:[#allocation2 + $0x111] sm:$0xff]  ;;  %v10986_v8 = vld [vmem:[#allocation2 + $0x20] sm:$0xff] }
  0x45   : > { %9034 = vmatprep.mubr.msk.f32.mxu0 %vm261_vm1, %v10863_v36  ;;  %v10939_v58 = vld [vmem:[#allocation2 + $0x121] sm:$0xff]  ;;  %v10945_v59 = vld [vmem:[#allocation2 + $0x129] sm:$0xff]  ;;  %v10974_v5 = vld [vmem:[#allocation2 + $0x18] sm:$0xff] }
  0x46   : > { %v10947_v60 = vld [vmem:[#allocation2 + $0x139] sm:$0xff]  ;;  %v10953_v61 = vld [vmem:[#allocation2 + $0x141] sm:$0xff]  ;;  %v11022_v16 = vld [vmem:[#allocation2 + $0x90] sm:$0xff] }
  0x47   : > { %v10955_v62 = vld [vmem:[#allocation2 + $0x151] sm:$0xff]  ;;  %v10961_v63 = vld [vmem:[#allocation2 + $0x159] sm:$0xff]  ;;  %v11012_v13 = vld [vmem:[#allocation2 + $0x68] sm:$0xff] }
  0x48   : > { %9035 = vmatmul.mubr.msk.f32.gmra.mrb[8].mxu0 %vm261_vm1, %v10879_v43  ;;  %12958 = vst [vmem:[#allocation11_spill] sm:$0xff] %v10955_v62  ;;  %12959 = vst [vmem:[#allocation12_spill] sm:$0xff] %v10961_v63  ;;  %v10963_v0 = vld [vmem:[#allocation2 + $0x169] sm:$0xff]  ;;  %v10969_v2 = vld [vmem:[#allocation2 + $0x171] sm:$0xff] }
  0x49   : > { %9037 = vmatprep.mubr.msk.f32.mxu0 %vm261_vm1, %v10883_v44  ;;  %12960 = vst [vmem:[#allocation13_spill] sm:$0xff] %v10963_v0  ;;  %12961 = vst [vmem:[#allocation14_spill] sm:$0xff] %v10969_v2  ;;  %v10996_v10 = vld [vmem:[#allocation2 + $0x38] sm:$0xff]  ;;  %v11006_v12 = vld [vmem:[#allocation2 + $0x60] sm:$0xff] }
  0x4a   : > { %v11014_v14 = vld [vmem:[#allocation2 + $0x78] sm:$0xff]  ;;  %v11020_v15 = vld [vmem:[#allocation2 + $0x80] sm:$0xff]  ;;  %v11030_v18 = vld [vmem:[#allocation2 + $0xa8] sm:$0xff] }
  0x4b   : > { %v11028_v17 = vld [vmem:[#allocation2 + $0x98] sm:$0xff]  ;;  %v11036_v19 = vld [vmem:[#allocation2 + $0xb0] sm:$0xff]  ;;  %v11038_v20 = vld [vmem:[#allocation2 + $0xc0] sm:$0xff] }
  0x4c   : > { %9038 = vmatmul.mubr.msk.f32.gmra.mrb[10].mxu0 %vm261_vm1, %v10889_v45  ;;  %v11044_v21 = vld [vmem:[#allocation2 + $0xc8] sm:$0xff]  ;;  %v11046_v22 = vld [vmem:[#allocation2 + $0xd8] sm:$0xff]  ;;  %v11052_v23 = vld [vmem:[#allocation2 + $0xe0] sm:$0xff] }
  0x4d   : > { %9040 = vmatprep.mubr.msk.f32.mxu0 %vm261_vm1, %v10891_v46  ;;  %v11054_v24 = vld [vmem:[#allocation2 + $0xf0] sm:$0xff]  ;;  %v11060_v25 = vld [vmem:[#allocation2 + $0xf8] sm:$0xff]  ;;  %v11062_v26 = vld [vmem:[#allocation2 + $0x108] sm:$0xff] }
  0x4e   : > { %v11068_v27 = vld [vmem:[#allocation2 + $0x110] sm:$0xff]  ;;  %v11070_v31 = vld [vmem:[#allocation2 + $0x120] sm:$0xff]  ;;  %v11076_v32 = vld [vmem:[#allocation2 + $0x128] sm:$0xff] }
  0x4f   : > { %v11078_v37 = vld [vmem:[#allocation2 + $0x138] sm:$0xff]  ;;  %v11084_v38 = vld [vmem:[#allocation2 + $0x140] sm:$0xff]  ;;  %v11086_v39 = vld [vmem:[#allocation2 + $0x150] sm:$0xff] }
  0x50   : > { %9041 = vmatmul.mubr.msk.f32.gmra.mrb[12].mxu0 %vm261_vm1, %v10897_v47  ;;  %v403_v40 = vld [vmem:[%s10781_s17 + $0xf0] sm:$0xff]  ;;  %v404_v41 = vld [vmem:[%s10781_s17 + $0xf8] sm:$0xff]  ;;  %s7683_s17 = scalar_lea.sflag [#allocation6], %s12753_s9 }
  0x51   : > { %9043 = vmatprep.mubr.msk.f32.mxu0 %vm261_vm1, %v10899_v48  ;;  %436 = vst.msk [vmem:[#allocation2 + $0x181] sm:$0xff] %vm261_vm1, %v403_v40  ;;  %437 = vst.msk [vmem:[#allocation2 + $0x189] sm:$0xff] %vm261_vm1, %v404_v41  ;;  %v11096_v42 = vld [vmem:[#allocation2 + $0x158] sm:$0xff]  ;;  %v1154_v40 = vld [vmem:[#allocation2 + $0x2] sm:$0xff] }
  0x52   : > { %v1155_v41 = vld [vmem:[#allocation2 + $0xa] sm:$0xff]  ;;  %v11109_v1 = vld [vmem:[#allocation2 + $0x1a] sm:$0xff] }
  0x53   : > { %12962 = vst [vmem:[#allocation15_spill] sm:$0xff] %v11109_v1 }
  0x54   : > { %9044 = vmatmul.mubr.msk.f32.gmra.mrb[14].mxu0 %vm261_vm1, %v10905_v49 }
  0x55   : > { %9046 = vmatprep.mubr.msk.f32.mxu0 %vm261_vm1, %v10907_v50 }
  0x58   : > { %9047 = vmatmul.mubr.msk.f32.gmra.mrb[16].mxu0 %vm261_vm1, %v10913_v51 }
  0x59   : > { %9049 = vmatprep.mubr.msk.f32.mxu0 %vm261_vm1, %v10915_v52 }
  0x5c   : > { %9050 = vmatmul.mubr.msk.f32.gmra.mrb[18].mxu0 %vm261_vm1, %v10921_v53 }
  0x5d   : > { %9052 = vmatprep.mubr.msk.f32.mxu0 %vm261_vm1, %v10923_v54 }
  0x60   : > { %9053 = vmatmul.mubr.msk.f32.gmra.mrb[20].mxu0 %vm261_vm1, %v10929_v55 }
  0x61   : > { %9055 = vmatprep.mubr.msk.f32.mxu0 %vm261_vm1, %v10931_v56 }
  0x64   : > { %9056 = vmatmul.mubr.msk.f32.gmra.mrb[22].mxu0 %vm261_vm1, %v10937_v57 }
  0x65   : > { %9058 = vmatprep.mubr.msk.f32.mxu0 %vm261_vm1, %v10939_v58 }
  0x68   : > { %9059 = vmatmul.mubr.msk.f32.gmra.mrb[24].mxu0 %vm261_vm1, %v10945_v59 }
  0x69   : > { %9061 = vmatprep.mubr.msk.f32.mxu0 %vm261_vm1, %v10947_v60 }
  0x6c   : > { %9062 = vmatmul.mubr.msk.f32.gmra.mrb[26].mxu0 %vm261_vm1, %v10953_v61 }
  0x6d   : > { %9064 = vmatprep.mubr.msk.f32.mxu0 %vm261_vm1, %v10955_v62 }
  0x70   : > { %9065 = vmatmul.mubr.msk.f32.gmra.mrb[28].mxu0 %vm261_vm1, %v10961_v63  ;;  %v11123_v63 = vld [vmem:[#allocation2 + $0x32] sm:$0xff] }
  0x71   : > { %9067 = vmatprep.mubr.msk.f32.mxu0 %vm261_vm1, %v10963_v0  ;;  %v11121_v0 = vld [vmem:[#allocation2 + $0x22] sm:$0xff]  ;;  %12964 = vst [vmem:[#allocation17_spill] sm:$0xff] %v11123_v63 }
  0x72   : > { %12963 = vst [vmem:[#allocation16_spill] sm:$0xff] %v11121_v0 }
  0x74   : > { %9068 = vmatmul.mubr.msk.f32.gmra.mrb[30].mxu0 %vm261_vm1, %v10969_v2  ;;  %v11114_v2 = vld [vmem:[%s12835_s1 + $0x10] sm:$0xf] }
  0x75   : > { %9072 = vmatprep.mubr.msk.f32.mxu0 %vm261_vm1, %v438_v3  ;;  %v11098_v3 = vld [vmem:[#allocation2 + $0x168] sm:$0xff] }
  0x78   : > { %9073 = vmatmul.mubr.msk.f32.vlgmr.msra.gmra.mrb[0].mxu0 %vm261_vm1, %v439_v4  ;;  %v11104_v4 = vld [vmem:[#allocation2 + $0x170] sm:$0xff] }
  0x79   : > { %9121 = vmatpush3.msk.msra.mxu0 %vm601_vm0, %v10789_v6  ;;  %9075 = vmatprep.mubr.msk.f32.mxu0 %vm261_vm1, %v10974_v5  ;;  %v11004_v6 = vld [vmem:[#allocation2 + $0x50] sm:$0xff] }
  0x7a   : > { %9170 = vmatprep.subr.msk.mxu0 %vm601_vm0, %v10979_v7 }
  0x7c   : > { %9076 = vmatmul.mubr.msk.f32.gmra.mrb[2].mxu0 %vm261_vm1, %v10986_v8 }
  0x7d   : > { %9078 = vmatprep.mubr.msk.f32.mxu0 %vm261_vm1, %v10988_v9 }
  0x80   : > { %9079 = vmatmul.mubr.msk.f32.gmra.mrb[4].mxu0 %vm261_vm1, %v10996_v10 }
  0x81   : > { %9081 = vmatprep.mubr.msk.f32.mxu0 %vm261_vm1, %v10998_v11 }
  0x84   : > { %9082 = vmatmul.mubr.msk.f32.gmra.mrb[6].mxu0 %vm261_vm1, %v11004_v6 }
  0x85   : > { %9084 = vmatprep.mubr.msk.f32.mxu0 %vm261_vm1, %v11006_v12 }
  0x88   : > { %9085 = vmatmul.mubr.msk.f32.gmra.mrb[8].mxu0 %vm261_vm1, %v11012_v13 }
  0x89   : > { %9087 = vmatprep.mubr.msk.f32.mxu0 %vm261_vm1, %v11014_v14 }
  0x8c   : > { %9088 = vmatmul.mubr.msk.f32.gmra.mrb[10].mxu0 %vm261_vm1, %v11020_v15 }
  0x8d   : > { %9090 = vmatprep.mubr.msk.f32.mxu0 %vm261_vm1, %v11022_v16 }
  0x90   : > { %9091 = vmatmul.mubr.msk.f32.gmra.mrb[12].mxu0 %vm261_vm1, %v11028_v17 }
  0x91   : > { %9093 = vmatprep.mubr.msk.f32.mxu0 %vm261_vm1, %v11030_v18 }
  0x94   : > { %9094 = vmatmul.mubr.msk.f32.gmra.mrb[14].mxu0 %vm261_vm1, %v11036_v19 }
  0x95   : > { %9096 = vmatprep.mubr.msk.f32.mxu0 %vm261_vm1, %v11038_v20 }
  0x98   : > { %9097 = vmatmul.mubr.msk.f32.gmra.mrb[16].mxu0 %vm261_vm1, %v11044_v21 }
  0x99   : > { %9099 = vmatprep.mubr.msk.f32.mxu0 %vm261_vm1, %v11046_v22 }
  0x9c   : > { %9100 = vmatmul.mubr.msk.f32.gmra.mrb[18].mxu0 %vm261_vm1, %v11052_v23 }
  0x9d   : > { %9102 = vmatprep.mubr.msk.f32.mxu0 %vm261_vm1, %v11054_v24 }
  0xa0   : > { %9103 = vmatmul.mubr.msk.f32.gmra.mrb[20].mxu0 %vm261_vm1, %v11060_v25 }
  0xa1   : > { %9105 = vmatprep.mubr.msk.f32.mxu0 %vm261_vm1, %v11062_v26 }
  0xa4   : > { %9106 = vmatmul.mubr.msk.f32.gmra.mrb[22].mxu0 %vm261_vm1, %v11068_v27 }
  0xa5   : > { %9108 = vmatprep.mubr.msk.f32.mxu0 %vm261_vm1, %v11070_v31 }
  0xa8   : > { %9109 = vmatmul.mubr.msk.f32.gmra.mrb[24].mxu0 %vm261_vm1, %v11076_v32 }
  0xa9   : > { %9111 = vmatprep.mubr.msk.f32.mxu0 %vm261_vm1, %v11078_v37 }
  0xac   : > { %9112 = vmatmul.mubr.msk.f32.gmra.mrb[26].mxu0 %vm261_vm1, %v11084_v38 }
  0xad   : > { %9114 = vmatprep.mubr.msk.f32.mxu0 %vm261_vm1, %v11086_v39 }
  0xb0   : > { %9115 = vmatmul.mubr.msk.f32.gmra.mrb[28].mxu0 %vm261_vm1, %v11096_v42 }
  0xb1   : > { %9117 = vmatprep.mubr.msk.f32.mxu0 %vm261_vm1, %v11098_v3 }
  0xb4   : > { %9118 = vmatmul.mubr.msk.f32.gmra.mrb[30].mxu0 %vm261_vm1, %v11104_v4 }
  0xb5   : > { %9122 = vmatprep.mubr.msk.f32.mxu0 %vm261_vm1, %v1154_v40  ;;  %v11131_v40 = vld [vmem:[#allocation2 + $0x3a] sm:$0xff] }
  0xb6   : > { %12965 = vst [vmem:[#allocation18_spill] sm:$0xff] %v11131_v40 }
  0xb8   : > { %9123 = vmatmul.mubr.msk.f32.vlgmr.msra.gmra.mrb[0].mxu0 %vm261_vm1, %v1155_v41  ;;  %v11133_v41 = vld [vmem:[#allocation2 + $0x4a] sm:$0xff] }
  0xb9   : > { %9171 = vmatpush3.msk.msra.mxu0 %vm601_vm0, %v10979_v7  ;;  %9125 = vmatprep.mubr.msk.f32.mxu0 %vm261_vm1, %v11109_v1  ;;  %12966 = vst [vmem:[#allocation19_spill] sm:$0xff] %v11133_v41  ;;  %v11139_v7 = vld [vmem:[#allocation2 + $0x52] sm:$0xff]  ;;  %v11141_v1 = vld [vmem:[#allocation2 + $0x62] sm:$0xff] }
  0xba   : > { %9220 = vmatprep.subr.msk.mxu0 %vm601_vm0, %v11114_v2  ;;  %12967 = vst [vmem:[#allocation20_spill] sm:$0xff] %v11139_v7  ;;  %12968 = vst [vmem:[#allocation21_spill] sm:$0xff] %v11141_v1 }
  0xbc   : > { %9126 = vmatmul.mubr.msk.f32.gmra.mrb[2].mxu0 %vm261_vm1, %v11121_v0  ;;  %v11149_v0 = vld [vmem:[#allocation2 + $0x7a] sm:$0xff] }
  0xbd   : > { %9128 = vmatprep.mubr.msk.f32.mxu0 %vm261_vm1, %v11123_v63  ;;  %v11147_v63 = vld [vmem:[#allocation2 + $0x6a] sm:$0xff]  ;;  %12970 = vst [vmem:[#allocation23_spill] sm:$0xff] %v11149_v0 }
  0xbe   : > { %12969 = vst [vmem:[#allocation22_spill] sm:$0xff] %v11147_v63 }
  0xc0   : > { %9129 = vmatmul.mubr.msk.f32.gmra.mrb[4].mxu0 %vm261_vm1, %v11131_v40  ;;  %v11157_v40 = vld [vmem:[#allocation2 + $0x92] sm:$0xff] }
  0xc1   : > { %9131 = vmatprep.mubr.msk.f32.mxu0 %vm261_vm1, %v11133_v41  ;;  %v11155_v41 = vld [vmem:[#allocation2 + $0x82] sm:$0xff]  ;;  %12972 = vst [vmem:[#allocation25_spill] sm:$0xff] %v11157_v40 }
  0xc2   : > { %12971 = vst [vmem:[#allocation24_spill] sm:$0xff] %v11155_v41 }
  0xc4   : > { %9132 = vmatmul.mubr.msk.f32.gmra.mrb[6].mxu0 %vm261_vm1, %v11139_v7  ;;  %v11165_v7 = vld [vmem:[#allocation2 + $0xaa] sm:$0xff] }
  0xc5   : > { %9134 = vmatprep.mubr.msk.f32.mxu0 %vm261_vm1, %v11141_v1  ;;  %v11163_v1 = vld [vmem:[#allocation2 + $0x9a] sm:$0xff]  ;;  %12974 = vst [vmem:[#allocation27_spill] sm:$0xff] %v11165_v7 }
  0xc6   : > { %12973 = vst [vmem:[#allocation26_spill] sm:$0xff] %v11163_v1 }
  0xc8   : > { %9135 = vmatmul.mubr.msk.f32.gmra.mrb[8].mxu0 %vm261_vm1, %v11147_v63  ;;  %v11173_v63 = vld [vmem:[#allocation2 + $0xc2] sm:$0xff] }
  0xc9   : > { %9137 = vmatprep.mubr.msk.f32.mxu0 %vm261_vm1, %v11149_v0  ;;  %v11171_v0 = vld [vmem:[#allocation2 + $0xb2] sm:$0xff]  ;;  %12976 = vst [vmem:[#allocation29_spill] sm:$0xff] %v11173_v63 }
  0xca   : > { %12975 = vst [vmem:[#allocation28_spill] sm:$0xff] %v11171_v0 }
  0xcc   : > { %9138 = vmatmul.mubr.msk.f32.gmra.mrb[10].mxu0 %vm261_vm1, %v11155_v41  ;;  %v11181_v41 = vld [vmem:[#allocation2 + $0xda] sm:$0xff] }
  0xcd   : > { %9140 = vmatprep.mubr.msk.f32.mxu0 %vm261_vm1, %v11157_v40  ;;  %v11179_v40 = vld [vmem:[#allocation2 + $0xca] sm:$0xff]  ;;  %12978 = vst [vmem:[#allocation31_spill] sm:$0xff] %v11181_v41 }
  0xce   : > { %12977 = vst [vmem:[#allocation30_spill] sm:$0xff] %v11179_v40 }
  0xd0   : > { %9141 = vmatmul.mubr.msk.f32.gmra.mrb[12].mxu0 %vm261_vm1, %v11163_v1  ;;  %v11189_v1 = vld [vmem:[#allocation2 + $0xf2] sm:$0xff] }
  0xd1   : > { %9143 = vmatprep.mubr.msk.f32.mxu0 %vm261_vm1, %v11165_v7  ;;  %v11187_v7 = vld [vmem:[#allocation2 + $0xe2] sm:$0xff]  ;;  %12980 = vst [vmem:[#allocation33_spill] sm:$0xff] %v11189_v1 }
  0xd2   : > { %12979 = vst [vmem:[#allocation32_spill] sm:$0xff] %v11187_v7 }
  0xd4   : > { %9144 = vmatmul.mubr.msk.f32.gmra.mrb[14].mxu0 %vm261_vm1, %v11171_v0  ;;  %v11197_v0 = vld [vmem:[#allocation2 + $0x10a] sm:$0xff] }
  0xd5   : > { %9146 = vmatprep.mubr.msk.f32.mxu0 %vm261_vm1, %v11173_v63  ;;  %v11195_v63 = vld [vmem:[#allocation2 + $0xfa] sm:$0xff]  ;;  %12982 = vst [vmem:[#allocation35_spill] sm:$0xff] %v11197_v0 }
  0xd6   : > { %12981 = vst [vmem:[#allocation34_spill] sm:$0xff] %v11195_v63 }
  0xd8   : > { %9147 = vmatmul.mubr.msk.f32.gmra.mrb[16].mxu0 %vm261_vm1, %v11179_v40  ;;  %v11205_v40 = vld [vmem:[#allocation2 + $0x122] sm:$0xff] }
  0xd9   : > { %9149 = vmatprep.mubr.msk.f32.mxu0 %vm261_vm1, %v11181_v41  ;;  %v11203_v41 = vld [vmem:[#allocation2 + $0x112] sm:$0xff]  ;;  %12984 = vst [vmem:[#allocation37_spill] sm:$0xff] %v11205_v40 }
  0xda   : > { %12983 = vst [vmem:[#allocation36_spill] sm:$0xff] %v11203_v41 }
  0xdc   : > { %9150 = vmatmul.mubr.msk.f32.gmra.mrb[18].mxu0 %vm261_vm1, %v11187_v7  ;;  %v11213_v7 = vld [vmem:[#allocation2 + $0x13a] sm:$0xff] }
  0xdd   : > { %9152 = vmatprep.mubr.msk.f32.mxu0 %vm261_vm1, %v11189_v1  ;;  %v11211_v1 = vld [vmem:[#allocation2 + $0x12a] sm:$0xff]  ;;  %12985 = vst [vmem:[#allocation38_spill] sm:$0xff] %v11213_v7 }
  0xe0   : > { %9153 = vmatmul.mubr.msk.f32.gmra.mrb[20].mxu0 %vm261_vm1, %v11195_v63  ;;  %v11221_v63 = vld [vmem:[#allocation2 + $0x152] sm:$0xff] }
  0xe1   : > { %9155 = vmatprep.mubr.msk.f32.mxu0 %vm261_vm1, %v11197_v0  ;;  %v11219_v0 = vld [vmem:[#allocation2 + $0x142] sm:$0xff]  ;;  %12986 = vst [vmem:[#allocation39_spill] sm:$0xff] %v11221_v63 }
  0xe4   : > { %9156 = vmatmul.mubr.msk.f32.gmra.mrb[22].mxu0 %vm261_vm1, %v11203_v41  ;;  %v11229_v41 = vld [vmem:[#allocation2 + $0x16a] sm:$0xff] }
  0xe5   : > { %9158 = vmatprep.mubr.msk.f32.mxu0 %vm261_vm1, %v11205_v40  ;;  %v11227_v40 = vld [vmem:[#allocation2 + $0x15a] sm:$0xff]  ;;  %12987 = vst [vmem:[#allocation40_spill] sm:$0xff] %v11229_v41 }
  0xe8   : > { %9159 = vmatmul.mubr.msk.f32.gmra.mrb[24].mxu0 %vm261_vm1, %v11211_v1 }
  0xe9   : > { %9161 = vmatprep.mubr.msk.f32.mxu0 %vm261_vm1, %v11213_v7  ;;  %v11235_v7 = vld [vmem:[#allocation2 + $0x172] sm:$0xff] }
  0xec   : > { %9162 = vmatmul.mubr.msk.f32.gmra.mrb[26].mxu0 %vm261_vm1, %v11219_v0 }
  0xed   : > { %9164 = vmatprep.mubr.msk.f32.mxu0 %vm261_vm1, %v11221_v63  ;;  %v7983_v63 = vld [vmem:[%s12835_s1 + $0x14] sm:$0xf] }
  0xf0   : > { %9165 = vmatmul.mubr.msk.f32.gmra.mrb[28].mxu0 %vm261_vm1, %v11227_v40 }
  0xf1   : > { %9167 = vmatprep.mubr.msk.f32.mxu0 %vm261_vm1, %v11229_v41 }
  0xf4   : > { %9168 = vmatmul.mubr.msk.f32.gmra.mrb[30].mxu0 %vm261_vm1, %v11235_v7 }
  0xf5   : > { %9172 = vmatprep.mubr.msk.f32.mxu0 %vm261_vm1, %v10974_v5  ;;  %v11309_v5 = vld [vmem:[#allocation2 + $0x188] sm:$0xff] }
  0xf8   : > { %9173 = vmatmul.mubr.msk.f32.vlgmr.msra.gmra.mrb[0].mxu0 %vm261_vm1, %v10986_v8  ;;  %v8017_v8 = vld [vmem:[%s12835_s1 + $0x18] sm:$0xf] }
  0xf9   : > { %9221 = vmatpush3.msk.msra.mxu0 %vm601_vm0, %v11114_v2  ;;  %9175 = vmatprep.mubr.msk.f32.mxu0 %vm261_vm1, %v10988_v9  ;;  %v11303_v2 = vld [vmem:[#allocation2 + $0x180] sm:$0xff] }
  0xfa   : > { %9270 = vmatprep.subr.msk.mxu0 %vm601_vm0, %v7983_v63 }
  0xfc   : > { %9176 = vmatmul.mubr.msk.f32.gmra.mrb[2].mxu0 %vm261_vm1, %v10996_v10 }
  0xfd   : > { %9178 = vmatprep.mubr.msk.f32.mxu0 %vm261_vm1, %v10998_v11 }
 0x100   : > { %9179 = vmatmul.mubr.msk.f32.gmra.mrb[4].mxu0 %vm261_vm1, %v11004_v6 }
 0x101   : > { %9181 = vmatprep.mubr.msk.f32.mxu0 %vm261_vm1, %v11006_v12 }
 0x104   : > { %9182 = vmatmul.mubr.msk.f32.gmra.mrb[6].mxu0 %vm261_vm1, %v11012_v13 }
 0x105   : > { %9184 = vmatprep.mubr.msk.f32.mxu0 %vm261_vm1, %v11014_v14 }
 0x108   : > { %9185 = vmatmul.mubr.msk.f32.gmra.mrb[8].mxu0 %vm261_vm1, %v11020_v15 }
 0x109   : > { %9187 = vmatprep.mubr.msk.f32.mxu0 %vm261_vm1, %v11022_v16 }
 0x10c   : > { %9188 = vmatmul.mubr.msk.f32.gmra.mrb[10].mxu0 %vm261_vm1, %v11028_v17 }
 0x10d   : > { %9190 = vmatprep.mubr.msk.f32.mxu0 %vm261_vm1, %v11030_v18 }
 0x110   : > { %9191 = vmatmul.mubr.msk.f32.gmra.mrb[12].mxu0 %vm261_vm1, %v11036_v19 }
 0x111   : > { %9193 = vmatprep.mubr.msk.f32.mxu0 %vm261_vm1, %v11038_v20 }
 0x114   : > { %9194 = vmatmul.mubr.msk.f32.gmra.mrb[14].mxu0 %vm261_vm1, %v11044_v21 }
 0x115   : > { %9196 = vmatprep.mubr.msk.f32.mxu0 %vm261_vm1, %v11046_v22 }
 0x118   : > { %9197 = vmatmul.mubr.msk.f32.gmra.mrb[16].mxu0 %vm261_vm1, %v11052_v23 }
 0x119   : > { %9199 = vmatprep.mubr.msk.f32.mxu0 %vm261_vm1, %v11054_v24 }
 0x11c   : > { %9200 = vmatmul.mubr.msk.f32.gmra.mrb[18].mxu0 %vm261_vm1, %v11060_v25 }
 0x11d   : > { %9202 = vmatprep.mubr.msk.f32.mxu0 %vm261_vm1, %v11062_v26 }
 0x120   : > { %9203 = vmatmul.mubr.msk.f32.gmra.mrb[20].mxu0 %vm261_vm1, %v11068_v27 }
 0x121   : > { %9205 = vmatprep.mubr.msk.f32.mxu0 %vm261_vm1, %v11070_v31 }
 0x124   : > { %9206 = vmatmul.mubr.msk.f32.gmra.mrb[22].mxu0 %vm261_vm1, %v11076_v32 }
 0x125   : > { %9208 = vmatprep.mubr.msk.f32.mxu0 %vm261_vm1, %v11078_v37 }
 0x128   : > { %9209 = vmatmul.mubr.msk.f32.gmra.mrb[24].mxu0 %vm261_vm1, %v11084_v38 }
 0x129   : > { %9211 = vmatprep.mubr.msk.f32.mxu0 %vm261_vm1, %v11086_v39 }
 0x12c   : > { %9212 = vmatmul.mubr.msk.f32.gmra.mrb[26].mxu0 %vm261_vm1, %v11096_v42 }
 0x12d   : > { %9214 = vmatprep.mubr.msk.f32.mxu0 %vm261_vm1, %v11098_v3 }
 0x130   : > { %9215 = vmatmul.mubr.msk.f32.gmra.mrb[28].mxu0 %vm261_vm1, %v11104_v4 }
 0x131   : > { %9217 = vmatprep.mubr.msk.f32.mxu0 %vm261_vm1, %v11303_v2 }
 0x134   : > { %9218 = vmatmul.mubr.msk.f32.gmra.mrb[30].mxu0 %vm261_vm1, %v11309_v5 }
 0x135   : > { %9222 = vmatprep.mubr.msk.f32.mxu0 %vm261_vm1, %v10834_v28  ;;  %v12988_v28 = vld [vmem:[#allocation12_spill] sm:$0xff] }
 0x138   : > { %9223 = vmatmul.mubr.msk.f32.vlgmr.msra.gmra.mrb[0].mxu0 %vm261_vm1, %v10836_v29  ;;  %v12989_v29 = vld [vmem:[#allocation13_spill] sm:$0xff] }
 0x139   : > { %9271 = vmatpush3.msk.msra.mxu0 %vm601_vm0, %v7983_v63  ;;  %9225 = vmatprep.mubr.msk.f32.mxu0 %vm261_vm1, %v10838_v30  ;;  %v11376_v30 = vld [vmem:[#allocation2 + $0x181] sm:$0xff]  ;;  %v8051_v63 = vld [vmem:[%s12835_s1 + $0x1c] sm:$0xf] }
 0x13a   : > { %9320 = vmatprep.subr.msk.mxu0 %vm601_vm0, %v8017_v8  ;;  %12990 = vst [vmem:[#allocation41_spill] sm:$0xff] %v11376_v30 }
 0x13c   : > { %9226 = vmatmul.mubr.msk.f32.gmra.mrb[2].mxu0 %vm261_vm1, %v10853_v33  ;;  %v12991_v33 = vld [vmem:[#allocation14_spill] sm:$0xff] }
 0x13d   : > { %9228 = vmatprep.mubr.msk.f32.mxu0 %vm261_vm1, %v10855_v34  ;;  %v11382_v34 = vld [vmem:[#allocation2 + $0x189] sm:$0xff] }
 0x13e   : > { %12992 = vst [vmem:[#allocation42_spill] sm:$0xff] %v11382_v34 }
 0x140   : > { %9229 = vmatmul.mubr.msk.f32.gmra.mrb[4].mxu0 %vm261_vm1, %v10861_v35  ;;  %v12993_v35 = vld [vmem:[#allocation15_spill] sm:$0xff] }
 0x141   : > { %9231 = vmatprep.mubr.msk.f32.mxu0 %vm261_vm1, %v10863_v36 }
 0x144   : > { %9232 = vmatmul.mubr.msk.f32.gmra.mrb[6].mxu0 %vm261_vm1, %v10879_v43 }
 0x145   : > { %9234 = vmatprep.mubr.msk.f32.mxu0 %vm261_vm1, %v10883_v44 }
 0x148   : > { %9235 = vmatmul.mubr.msk.f32.gmra.mrb[8].mxu0 %vm261_vm1, %v10889_v45 }
 0x149   : > { %9237 = vmatprep.mubr.msk.f32.mxu0 %vm261_vm1, %v10891_v46 }
 0x14c   : > { %9238 = vmatmul.mubr.msk.f32.gmra.mrb[10].mxu0 %vm261_vm1, %v10897_v47 }
 0x14d   : > { %9240 = vmatprep.mubr.msk.f32.mxu0 %vm261_vm1, %v10899_v48 }
 0x150   : > { %9241 = vmatmul.mubr.msk.f32.gmra.mrb[12].mxu0 %vm261_vm1, %v10905_v49 }
 0x151   : > { %9243 = vmatprep.mubr.msk.f32.mxu0 %vm261_vm1, %v10907_v50 }
 0x154   : > { %9244 = vmatmul.mubr.msk.f32.gmra.mrb[14].mxu0 %vm261_vm1, %v10913_v51 }
 0x155   : > { %9246 = vmatprep.mubr.msk.f32.mxu0 %vm261_vm1, %v10915_v52 }
 0x158   : > { %9247 = vmatmul.mubr.msk.f32.gmra.mrb[16].mxu0 %vm261_vm1, %v10921_v53 }
 0x159   : > { %9249 = vmatprep.mubr.msk.f32.mxu0 %vm261_vm1, %v10923_v54 }
 0x15c   : > { %9250 = vmatmul.mubr.msk.f32.gmra.mrb[18].mxu0 %vm261_vm1, %v10929_v55 }
 0x15d   : > { %9252 = vmatprep.mubr.msk.f32.mxu0 %vm261_vm1, %v10931_v56 }
 0x160   : > { %9253 = vmatmul.mubr.msk.f32.gmra.mrb[20].mxu0 %vm261_vm1, %v10937_v57 }
 0x161   : > { %9255 = vmatprep.mubr.msk.f32.mxu0 %vm261_vm1, %v10939_v58 }
 0x164   : > { %9256 = vmatmul.mubr.msk.f32.gmra.mrb[22].mxu0 %vm261_vm1, %v10945_v59 }
 0x165   : > { %9258 = vmatprep.mubr.msk.f32.mxu0 %vm261_vm1, %v10947_v60 }
 0x168   : > { %9259 = vmatmul.mubr.msk.f32.gmra.mrb[24].mxu0 %vm261_vm1, %v10953_v61 }
 0x169   : > { %9261 = vmatprep.mubr.msk.f32.mxu0 %vm261_vm1, %v10955_v62  ;;  %v13003_v62 = vld [vmem:[#allocation25_spill] sm:$0xff] }
 0x16c   : > { %9262 = vmatmul.mubr.msk.f32.gmra.mrb[26].mxu0 %vm261_vm1, %v12988_v28  ;;  %v12999_v28 = vld [vmem:[#allocation21_spill] sm:$0xff] }
 0x16d   : > { %9264 = vmatprep.mubr.msk.f32.mxu0 %vm261_vm1, %v12989_v29  ;;  %v12994_v29 = vld [vmem:[#allocation16_spill] sm:$0xff] }
 0x170   : > { %9265 = vmatmul.mubr.msk.f32.gmra.mrb[28].mxu0 %vm261_vm1, %v12991_v33  ;;  %v12995_v33 = vld [vmem:[#allocation17_spill] sm:$0xff] }
 0x171   : > { %9267 = vmatprep.mubr.msk.f32.mxu0 %vm261_vm1, %v11376_v30  ;;  %v12996_v30 = vld [vmem:[#allocation18_spill] sm:$0xff] }
 0x174   : > { %9268 = vmatmul.mubr.msk.f32.gmra.mrb[30].mxu0 %vm261_vm1, %v11382_v34  ;;  %v12997_v34 = vld [vmem:[#allocation19_spill] sm:$0xff] }
 0x175   : > { %9272 = vmatprep.mubr.msk.f32.mxu0 %vm261_vm1, %v12993_v35  ;;  %v12998_v35 = vld [vmem:[#allocation20_spill] sm:$0xff] }
 0x178   : > { %9273 = vmatmul.mubr.msk.f32.vlgmr.msra.gmra.mrb[0].mxu0 %vm261_vm1, %v12994_v29  ;;  %v13000_v29 = vld [vmem:[#allocation22_spill] sm:$0xff] }
 0x179   : > { %9321 = vmatpush3.msk.msra.mxu0 %vm601_vm0, %v8017_v8  ;;  %9275 = vmatprep.mubr.msk.f32.mxu0 %vm261_vm1, %v12995_v33  ;;  %v13001_v8 = vld [vmem:[#allocation23_spill] sm:$0xff]  ;;  %v13002_v33 = vld [vmem:[#allocation24_spill] sm:$0xff] }
 0x17a   : > { %9370 = vmatprep.subr.msk.mxu0 %vm601_vm0, %v8051_v63 }
 0x17c   : > { %9276 = vmatmul.mubr.msk.f32.gmra.mrb[2].mxu0 %vm261_vm1, %v12996_v30  ;;  %v13004_v30 = vld [vmem:[#allocation26_spill] sm:$0xff] }
 0x17d   : > { %9278 = vmatprep.mubr.msk.f32.mxu0 %vm261_vm1, %v12997_v34  ;;  %v13005_v34 = vld [vmem:[#allocation27_spill] sm:$0xff] }
 0x180   : > { %9279 = vmatmul.mubr.msk.f32.gmra.mrb[4].mxu0 %vm261_vm1, %v12998_v35  ;;  %v13006_v35 = vld [vmem:[#allocation28_spill] sm:$0xff] }
 0x181   : > { %9281 = vmatprep.mubr.msk.f32.mxu0 %vm261_vm1, %v12999_v28  ;;  %v13007_v28 = vld [vmem:[#allocation29_spill] sm:$0xff] }
 0x184   : > { %9282 = vmatmul.mubr.msk.f32.gmra.mrb[6].mxu0 %vm261_vm1, %v13000_v29  ;;  %v13008_v29 = vld [vmem:[#allocation30_spill] sm:$0xff] }
 0x185   : > { %9284 = vmatprep.mubr.msk.f32.mxu0 %vm261_vm1, %v13001_v8  ;;  %v13009_v8 = vld [vmem:[#allocation31_spill] sm:$0xff] }
 0x188   : > { %9285 = vmatmul.mubr.msk.f32.gmra.mrb[8].mxu0 %vm261_vm1, %v13002_v33  ;;  %v13010_v33 = vld [vmem:[#allocation32_spill] sm:$0xff] }
 0x189   : > { %9287 = vmatprep.mubr.msk.f32.mxu0 %vm261_vm1, %v13003_v62  ;;  %v13011_v62 = vld [vmem:[#allocation33_spill] sm:$0xff] }
 0x18c   : > { %9288 = vmatmul.mubr.msk.f32.gmra.mrb[10].mxu0 %vm261_vm1, %v13004_v30  ;;  %v13012_v30 = vld [vmem:[#allocation34_spill] sm:$0xff] }
 0x18d   : > { %9290 = vmatprep.mubr.msk.f32.mxu0 %vm261_vm1, %v13005_v34  ;;  %v13013_v34 = vld [vmem:[#allocation35_spill] sm:$0xff] }
 0x190   : > { %9291 = vmatmul.mubr.msk.f32.gmra.mrb[12].mxu0 %vm261_vm1, %v13006_v35  ;;  %v13014_v35 = vld [vmem:[#allocation36_spill] sm:$0xff] }
 0x191   : > { %9293 = vmatprep.mubr.msk.f32.mxu0 %vm261_vm1, %v13007_v28  ;;  %v13015_v28 = vld [vmem:[#allocation37_spill] sm:$0xff] }
 0x194   : > { %9294 = vmatmul.mubr.msk.f32.gmra.mrb[14].mxu0 %vm261_vm1, %v13008_v29 }
 0x195   : > { %9296 = vmatprep.mubr.msk.f32.mxu0 %vm261_vm1, %v13009_v8  ;;  %v13016_v8 = vld [vmem:[#allocation38_spill] sm:$0xff] }
 0x198   : > { %9297 = vmatmul.mubr.msk.f32.gmra.mrb[16].mxu0 %vm261_vm1, %v13010_v33 }
 0x199   : > { %9299 = vmatprep.mubr.msk.f32.mxu0 %vm261_vm1, %v13011_v62  ;;  %v13017_v62 = vld [vmem:[#allocation39_spill] sm:$0xff] }
 0x19c   : > { %9300 = vmatmul.mubr.msk.f32.gmra.mrb[18].mxu0 %vm261_vm1, %v13012_v30 }
 0x19d   : > { %9302 = vmatprep.mubr.msk.f32.mxu0 %vm261_vm1, %v13013_v34 }
 0x1a0   : > { %9303 = vmatmul.mubr.msk.f32.gmra.mrb[20].mxu0 %vm261_vm1, %v13014_v35  ;;  %v11449_v35 = vld [vmem:[#allocation2 + $0x182] sm:$0xff] }
 0x1a1   : > { %9305 = vmatprep.mubr.msk.f32.mxu0 %vm261_vm1, %v13015_v28 }
 0x1a4   : > { %9306 = vmatmul.mubr.msk.f32.gmra.mrb[22].mxu0 %vm261_vm1, %v11211_v1 }
 0x1a5   : > { %9308 = vmatprep.mubr.msk.f32.mxu0 %vm261_vm1, %v13016_v8  ;;  %v11455_v8 = vld [vmem:[#allocation2 + $0x18a] sm:$0xff] }
 0x1a8   : > { %9309 = vmatmul.mubr.msk.f32.gmra.mrb[24].mxu0 %vm261_vm1, %v11219_v0 }
 0x1a9   : > { %9311 = vmatprep.mubr.msk.f32.mxu0 %vm261_vm1, %v13017_v62 }
 0x1ac   : > { %9312 = vmatmul.mubr.msk.f32.gmra.mrb[26].mxu0 %vm261_vm1, %v11227_v40 }
 0x1ad   : > { %9314 = vmatprep.mubr.msk.f32.mxu0 %vm261_vm1, %v11229_v41  ;;  %v11464_v41 = vld [vmem:[%s12835_s1 + $0x20] sm:$0xf] }
 0x1b0   : > { %9315 = vmatmul.mubr.msk.f32.gmra.mrb[28].mxu0 %vm261_vm1, %v11235_v7 }
 0x1b1   : > { %9317 = vmatprep.mubr.msk.f32.mxu0 %vm261_vm1, %v11449_v35 }
 0x1b4   : > { %9318 = vmatmul.mubr.msk.f32.gmra.mrb[30].mxu0 %vm261_vm1, %v11455_v8 }
 0x1b5   : > { %9322 = vmatprep.mubr.msk.f32.mxu0 %vm261_vm1, %v10988_v9  ;;  %v2745_v9 = vld [vmem:[#allocation2 + $0x198] sm:$0xff] }
 0x1b8   : > { %9323 = vmatmul.mubr.msk.f32.vlgmr.msra.gmra.mrb[0].mxu0 %vm261_vm1, %v10996_v10  ;;  %v2746_v10 = vld [vmem:[#allocation2 + $0x1a0] sm:$0xff] }
 0x1b9   : > { %9371 = vmatpush3.msk.msra.mxu0 %vm601_vm0, %v8051_v63  ;;  %9325 = vmatprep.mubr.msk.f32.mxu0 %vm261_vm1, %v10998_v11  ;;  %v3105_v11 = vld [vmem:[#allocation2 + $0x31] sm:$0xff] }
 0x1ba   : > { %9420 = vmatprep.subr.msk.mxu0 %vm601_vm0, %v11464_v41 }
 0x1bc   : > { %9326 = vmatmul.mubr.msk.f32.gmra.mrb[2].mxu0 %vm261_vm1, %v11004_v6  ;;  %v3106_v6 = vld [vmem:[#allocation2 + $0x39] sm:$0xff] }
 0x1bd   : > { %9328 = vmatprep.mubr.msk.f32.mxu0 %vm261_vm1, %v11006_v12  ;;  %v13018_v12 = vmov 0.0  }
 0x1be   : > { %323 = vst.msk [vmem:[#allocation3 + $0x20] sm:$0xff] %vm317_vm3, %v13018_v12  ;;  %318 = vst.msk [vmem:[#allocation3] sm:$0xff] %vm317_vm3, %v13018_v12 }
 0x1bf   : > { %324 = vst.msk [vmem:[#allocation3 + $0x28] sm:$0x3] %vm320_vm4, %v13018_v12  ;;  %321 = vst.msk [vmem:[#allocation3 + $0x10] sm:$0x3] %vm320_vm4, %v13018_v12 }
 0x1c0   : > { %9329 = vmatmul.mubr.msk.f32.gmra.mrb[4].mxu0 %vm261_vm1, %v11012_v13  ;;  %319 = vst.msk [vmem:[#allocation3 + $0x8] sm:$0xff] %vm317_vm3, %v13018_v12  ;;  %322 = vst.msk [vmem:[#allocation3 + $0x18] sm:$0xff] %vm317_vm3, %v13018_v12  ;;  %v3107_v13 = vld [vmem:[#allocation2 + $0x49] sm:$0xff] }
 0x1c1   : > { %9331 = vmatprep.mubr.msk.f32.mxu0 %vm261_vm1, %v11014_v14  ;;  %325 = vst.msk [vmem:[#allocation3 + $0x30] sm:$0xff] %vm317_vm3, %v13018_v12  ;;  %326 = vst.msk [vmem:[#allocation3 + $0x38] sm:$0xff] %vm317_vm3, %v13018_v12  ;;  %v3108_v14 = vld [vmem:[#allocation2 + $0x51] sm:$0xff] }
 0x1c2   : > { %327 = vst.msk [vmem:[#allocation3 + $0x40] sm:$0x3] %vm320_vm4, %v13018_v12  ;;  %330 = vst.msk [vmem:[#allocation3 + $0x58] sm:$0x3] %vm320_vm4, %v13018_v12 }
 0x1c3   : > { %328 = vst.msk [vmem:[#allocation3 + $0x48] sm:$0xff] %vm317_vm3, %v13018_v12  ;;  %329 = vst.msk [vmem:[#allocation3 + $0x50] sm:$0xff] %vm317_vm3, %v13018_v12 }
 0x1c4   : > { %9332 = vmatmul.mubr.msk.f32.gmra.mrb[6].mxu0 %vm261_vm1, %v11020_v15  ;;  %331 = vst.msk [vmem:[#allocation3 + $0x60] sm:$0xff] %vm317_vm3, %v13018_v12  ;;  %332 = vst.msk [vmem:[#allocation3 + $0x68] sm:$0xff] %vm317_vm3, %v13018_v12  ;;  %v13037_v15 = vld [vmem:[#allocation29_spill] sm:$0xff] }
 0x1c5   : > { %9334 = vmatprep.mubr.msk.f32.mxu0 %vm261_vm1, %v11022_v16  ;;  %333 = vst.msk [vmem:[#allocation3 + $0x70] sm:$0x3] %vm320_vm4, %v13018_v12  ;;  %336 = vst.msk [vmem:[#allocation3 + $0x88] sm:$0x3] %vm320_vm4, %v13018_v12  ;;  %v13038_v16 = vld [vmem:[#allocation31_spill] sm:$0xff] }
 0x1c6   : > { %334 = vst.msk [vmem:[#allocation3 + $0x78] sm:$0xff] %vm317_vm3, %v13018_v12  ;;  %335 = vst.msk [vmem:[#allocation3 + $0x80] sm:$0xff] %vm317_vm3, %v13018_v12 }
 0x1c7   : > { %337 = vst.msk [vmem:[#allocation3 + $0x90] sm:$0xff] %vm317_vm3, %v13018_v12  ;;  %338 = vst.msk [vmem:[#allocation3 + $0x98] sm:$0xff] %vm317_vm3, %v13018_v12 }
 0x1c8   : > { %9335 = vmatmul.mubr.msk.f32.gmra.mrb[8].mxu0 %vm261_vm1, %v11028_v17  ;;  %339 = vst.msk [vmem:[#allocation3 + $0xa0] sm:$0x3] %vm320_vm4, %v13018_v12  ;;  %342 = vst.msk [vmem:[#allocation3 + $0xb8] sm:$0x3] %vm320_vm4, %v13018_v12  ;;  %v13039_v17 = vld [vmem:[#allocation33_spill] sm:$0xff] }
 0x1c9   : > { %9337 = vmatprep.mubr.msk.f32.mxu0 %vm261_vm1, %v11030_v18  ;;  %340 = vst.msk [vmem:[#allocation3 + $0xa8] sm:$0xff] %vm317_vm3, %v13018_v12  ;;  %341 = vst.msk [vmem:[#allocation3 + $0xb0] sm:$0xff] %vm317_vm3, %v13018_v12  ;;  %v13040_v18 = vld [vmem:[#allocation36_spill] sm:$0xff] }
 0x1ca   : > { %343 = vst.msk [vmem:[#allocation3 + $0xc0] sm:$0xff] %vm317_vm3, %v13018_v12  ;;  %344 = vst.msk [vmem:[#allocation3 + $0xc8] sm:$0xff] %vm317_vm3, %v13018_v12 }
 0x1cb   : > { %345 = vst.msk [vmem:[#allocation3 + $0xd0] sm:$0x3] %vm320_vm4, %v13018_v12  ;;  %348 = vst.msk [vmem:[#allocation3 + $0xe8] sm:$0x3] %vm320_vm4, %v13018_v12 }
 0x1cc   : > { %9338 = vmatmul.mubr.msk.f32.gmra.mrb[10].mxu0 %vm261_vm1, %v11036_v19  ;;  %346 = vst.msk [vmem:[#allocation3 + $0xd8] sm:$0xff] %vm317_vm3, %v13018_v12  ;;  %347 = vst.msk [vmem:[#allocation3 + $0xe0] sm:$0xff] %vm317_vm3, %v13018_v12  ;;  %v13041_v19 = vld [vmem:[#allocation38_spill] sm:$0xff] }
 0x1cd   : > { %9340 = vmatprep.mubr.msk.f32.mxu0 %vm261_vm1, %v11038_v20  ;;  %349 = vst.msk [vmem:[#allocation3 + $0xf0] sm:$0xff] %vm317_vm3, %v13018_v12  ;;  %350 = vst.msk [vmem:[#allocation3 + $0xf8] sm:$0xff] %vm317_vm3, %v13018_v12  ;;  %v13042_v20 = vld [vmem:[#allocation40_spill] sm:$0xff] }
 0x1ce   : > { %351 = vst.msk [vmem:[#allocation3 + $0x100] sm:$0x3] %vm320_vm4, %v13018_v12  ;;  %354 = vst.msk [vmem:[#allocation3 + $0x118] sm:$0x3] %vm320_vm4, %v13018_v12 }
 0x1cf   : > { %352 = vst.msk [vmem:[#allocation3 + $0x108] sm:$0xff] %vm317_vm3, %v13018_v12  ;;  %353 = vst.msk [vmem:[#allocation3 + $0x110] sm:$0xff] %vm317_vm3, %v13018_v12 }
 0x1d0   : > { %9341 = vmatmul.mubr.msk.f32.gmra.mrb[12].mxu0 %vm261_vm1, %v11044_v21  ;;  %355 = vst.msk [vmem:[#allocation3 + $0x120] sm:$0xff] %vm317_vm3, %v13018_v12  ;;  %356 = vst.msk [vmem:[#allocation3 + $0x128] sm:$0xff] %vm317_vm3, %v13018_v12  ;;  %v4022_v21 = vld [vmem:[#allocation3 + $0x1] sm:$0xff] }
 0x1d1   : > { %9343 = vmatprep.mubr.msk.f32.mxu0 %vm261_vm1, %v11046_v22  ;;  %357 = vst.msk [vmem:[#allocation3 + $0x130] sm:$0x3] %vm320_vm4, %v13018_v12  ;;  %360 = vst.msk [vmem:[#allocation3 + $0x148] sm:$0x3] %vm320_vm4, %v13018_v12  ;;  %9472 = vmatprep.mubr.msk.f32.mxu1 %vm317_vm3, %v4022_v21  ;;  %v4023_v22 = vld [vmem:[#allocation3 + $0x9] sm:$0xff] }
 0x1d2   : > { %358 = vst.msk [vmem:[#allocation3 + $0x138] sm:$0xff] %vm317_vm3, %v13018_v12  ;;  %359 = vst.msk [vmem:[#allocation3 + $0x140] sm:$0xff] %vm317_vm3, %v13018_v12 }
 0x1d3   : > { %361 = vst.msk [vmem:[#allocation3 + $0x150] sm:$0xff] %vm317_vm3, %v13018_v12  ;;  %362 = vst.msk [vmem:[#allocation3 + $0x158] sm:$0xff] %vm317_vm3, %v13018_v12 }
 0x1d4   : > { %9344 = vmatmul.mubr.msk.f32.gmra.mrb[14].mxu0 %vm261_vm1, %v11052_v23  ;;  %363 = vst.msk [vmem:[#allocation3 + $0x160] sm:$0x3] %vm320_vm4, %v13018_v12  ;;  %366 = vst.msk [vmem:[#allocation3 + $0x178] sm:$0x3] %vm320_vm4, %v13018_v12  ;;  %v4021_v23 = vld [vmem:[%s12837_s3] sm:$0xff] }
 0x1d5   : > { %9346 = vmatprep.mubr.msk.f32.mxu0 %vm261_vm1, %v11054_v24  ;;  %364 = vst.msk [vmem:[#allocation3 + $0x168] sm:$0xff] %vm317_vm3, %v13018_v12  ;;  %365 = vst.msk [vmem:[#allocation3 + $0x170] sm:$0xff] %vm317_vm3, %v13018_v12  ;;  %v11770_v24 = vld [vmem:[%s12837_s3 + $0x10] sm:$0xff] }
 0x1d6   : > { %367 = vst.msk [vmem:[#allocation3 + $0x180] sm:$0xff] %vm317_vm3, %v13018_v12  ;;  %368 = vst.msk [vmem:[#allocation3 + $0x188] sm:$0xff] %vm317_vm3, %v13018_v12 }
 0x1d7   : > { %369 = vst.msk [vmem:[#allocation3 + $0x190] sm:$0x3] %vm320_vm4, %v13018_v12  ;;  %372 = vst.msk [vmem:[#allocation3 + $0x1a8] sm:$0x3] %vm320_vm4, %v13018_v12 }
 0x1d8   : > { %9347 = vmatmul.mubr.msk.f32.gmra.mrb[16].mxu0 %vm261_vm1, %v11060_v25  ;;  %370 = vst.msk [vmem:[#allocation3 + $0x198] sm:$0xff] %vm317_vm3, %v13018_v12  ;;  %371 = vst.msk [vmem:[#allocation3 + $0x1a0] sm:$0xff] %vm317_vm3, %v13018_v12  ;;  %v11776_v25 = vld [vmem:[%s12836_s2] ss:$0 sm:$0xff] }
 0x1d9   : > { %9349 = vmatprep.mubr.msk.f32.mxu0 %vm261_vm1, %v11062_v26 }
 0x1dc   : > { %9350 = vmatmul.mubr.msk.f32.gmra.mrb[18].mxu0 %vm261_vm1, %v11068_v27 }
 0x1dd   : > { %9352 = vmatprep.mubr.msk.f32.mxu0 %vm261_vm1, %v11070_v31 }
 0x1e0   : > { %9353 = vmatmul.mubr.msk.f32.gmra.mrb[20].mxu0 %vm261_vm1, %v11076_v32 }
 0x1e1   : > { %9355 = vmatprep.mubr.msk.f32.mxu0 %vm261_vm1, %v11078_v37 }
 0x1e4   : > { %9356 = vmatmul.mubr.msk.f32.gmra.mrb[22].mxu0 %vm261_vm1, %v11084_v38 }
 0x1e5   : > { %9358 = vmatprep.mubr.msk.f32.mxu0 %vm261_vm1, %v11086_v39 }
 0x1e8   : > { %9359 = vmatmul.mubr.msk.f32.gmra.mrb[24].mxu0 %vm261_vm1, %v11096_v42 }
 0x1e9   : > { %9361 = vmatprep.mubr.msk.f32.mxu0 %vm261_vm1, %v11098_v3 }
 0x1ec   : > { %9362 = vmatmul.mubr.msk.f32.gmra.mrb[26].mxu0 %vm261_vm1, %v11104_v4 }
 0x1ed   : > { %9364 = vmatprep.mubr.msk.f32.mxu0 %vm261_vm1, %v11303_v2 }
 0x1f0   : > { %9365 = vmatmul.mubr.msk.f32.gmra.mrb[28].mxu0 %vm261_vm1, %v11309_v5 }
 0x1f1   : > { %9367 = vmatprep.mubr.msk.f32.mxu0 %vm261_vm1, %v2745_v9 }
 0x1f4   : > { %9368 = vmatmul.mubr.msk.f32.gmra.mrb[30].mxu0 %vm261_vm1, %v2746_v10 }
 0x1f5   : > { %9372 = vmatprep.mubr.msk.f32.mxu0 %vm261_vm1, %v3105_v11 }
 0x1f8   : > { %9373 = vmatmul.mubr.msk.f32.vlgmr.msra.gmra.mrb[0].mxu0 %vm261_vm1, %v3106_v6 }
 0x1f9   : > { %9421 = vmatpush3.msk.msra.mxu0 %vm601_vm0, %v11464_v41  ;;  %9375 = vmatprep.mubr.msk.f32.mxu0 %vm261_vm1, %v3107_v13 }
 0x1fc   : > { %9376 = vmatmul.mubr.msk.f32.gmra.mrb[2].mxu0 %vm261_vm1, %v3108_v14 }
 0x1fd   : > { %9378 = vmatprep.mubr.msk.f32.mxu0 %vm261_vm1, %v10863_v36  ;;  %v13019_v36 = vld [vmem:[#allocation11_spill] sm:$0xff] }
 0x200   : > { %9379 = vmatmul.mubr.msk.f32.gmra.mrb[4].mxu0 %vm261_vm1, %v10879_v43  ;;  %v13020_v43 = vld [vmem:[#allocation12_spill] sm:$0xff] }
 0x201   : > { %9381 = vmatprep.mubr.msk.f32.mxu0 %vm261_vm1, %v10883_v44  ;;  %v13021_v44 = vld [vmem:[#allocation13_spill] sm:$0xff] }
 0x204   : > { %9382 = vmatmul.mubr.msk.f32.gmra.mrb[6].mxu0 %vm261_vm1, %v10889_v45  ;;  %v13022_v45 = vld [vmem:[#allocation14_spill] sm:$0xff] }
 0x205   : > { %9384 = vmatprep.mubr.msk.f32.mxu0 %vm261_vm1, %v10891_v46  ;;  %v13023_v46 = vld [vmem:[#allocation41_spill] sm:$0xff] }
 0x208   : > { %9385 = vmatmul.mubr.msk.f32.gmra.mrb[8].mxu0 %vm261_vm1, %v10897_v47  ;;  %v3135_v47 = vld [vmem:[#allocation2 + $0x199] sm:$0xff] }
 0x209   : > { %9387 = vmatprep.mubr.msk.f32.mxu0 %vm261_vm1, %v10899_v48  ;;  %v13024_v48 = vld [vmem:[#allocation42_spill] sm:$0xff] }
 0x20c   : > { %9388 = vmatmul.mubr.msk.f32.gmra.mrb[10].mxu0 %vm261_vm1, %v10905_v49  ;;  %v3136_v49 = vld [vmem:[#allocation2 + $0x1a1] sm:$0xff] }
 0x20d   : > { %9390 = vmatprep.mubr.msk.f32.mxu0 %vm261_vm1, %v10907_v50  ;;  %v13025_v50 = vld [vmem:[#allocation17_spill] sm:$0xff] }
 0x210   : > { %9391 = vmatmul.mubr.msk.f32.gmra.mrb[12].mxu0 %vm261_vm1, %v10913_v51  ;;  %v13026_v51 = vld [vmem:[#allocation18_spill] sm:$0xff] }
 0x211   : > { %9393 = vmatprep.mubr.msk.f32.mxu0 %vm261_vm1, %v10915_v52  ;;  %v13027_v52 = vld [vmem:[#allocation19_spill] sm:$0xff] }
 0x214   : > { %9394 = vmatmul.mubr.msk.f32.gmra.mrb[14].mxu0 %vm261_vm1, %v10921_v53  ;;  %v13028_v53 = vld [vmem:[#allocation20_spill] sm:$0xff] }
 0x215   : > { %9396 = vmatprep.mubr.msk.f32.mxu0 %vm261_vm1, %v10923_v54  ;;  %v13029_v54 = vld [vmem:[#allocation21_spill] sm:$0xff] }
 0x218   : > { %9397 = vmatmul.mubr.msk.f32.gmra.mrb[16].mxu0 %vm261_vm1, %v10929_v55  ;;  %v13030_v55 = vld [vmem:[#allocation22_spill] sm:$0xff] }
 0x219   : > { %9399 = vmatprep.mubr.msk.f32.mxu0 %vm261_vm1, %v10931_v56  ;;  %v13031_v56 = vld [vmem:[#allocation23_spill] sm:$0xff] }
 0x21c   : > { %9400 = vmatmul.mubr.msk.f32.gmra.mrb[18].mxu0 %vm261_vm1, %v10937_v57  ;;  %v13032_v57 = vld [vmem:[#allocation24_spill] sm:$0xff] }
 0x21d   : > { %9402 = vmatprep.mubr.msk.f32.mxu0 %vm261_vm1, %v10939_v58  ;;  %v13033_v58 = vld [vmem:[#allocation25_spill] sm:$0xff] }
 0x220   : > { %9403 = vmatmul.mubr.msk.f32.gmra.mrb[20].mxu0 %vm261_vm1, %v10945_v59  ;;  %v13034_v59 = vld [vmem:[#allocation26_spill] sm:$0xff] }
 0x221   : > { %9405 = vmatprep.mubr.msk.f32.mxu0 %vm261_vm1, %v10947_v60  ;;  %v13035_v60 = vld [vmem:[#allocation27_spill] sm:$0xff] }
 0x224   : > { %9406 = vmatmul.mubr.msk.f32.gmra.mrb[22].mxu0 %vm261_vm1, %v10953_v61  ;;  %v13036_v61 = vld [vmem:[#allocation28_spill] sm:$0xff] }
 0x225   : > { %9408 = vmatprep.mubr.msk.f32.mxu0 %vm261_vm1, %v13019_v36 }
 0x228   : > { %9409 = vmatmul.mubr.msk.f32.gmra.mrb[24].mxu0 %vm261_vm1, %v13020_v43 }
 0x229   : > { %9411 = vmatprep.mubr.msk.f32.mxu0 %vm261_vm1, %v13021_v44 }
 0x22c   : > { %9412 = vmatmul.mubr.msk.f32.gmra.mrb[26].mxu0 %vm261_vm1, %v13022_v45 }
 0x22d   : > { %9414 = vmatprep.mubr.msk.f32.mxu0 %vm261_vm1, %v13023_v46 }
 0x230   : > { %9415 = vmatmul.mubr.msk.f32.gmra.mrb[28].mxu0 %vm261_vm1, %v13024_v48 }
 0x231   : > { %9417 = vmatprep.mubr.msk.f32.mxu0 %vm261_vm1, %v3135_v47 }
 0x234   : > { %9418 = vmatmul.mubr.msk.f32.gmra.mrb[30].mxu0 %vm261_vm1, %v3136_v49 }
 0x235   : > { %9422 = vmatprep.mubr.msk.f32.mxu0 %vm261_vm1, %v13025_v50 }
 0x238   : > { %9423 = vmatmul.mubr.msk.f32.vlgmr.msra.gmra.mrb[0].mxu0 %vm261_vm1, %v13026_v51 }
 0x239   : > { %9425 = vmatprep.mubr.msk.f32.mxu0 %vm261_vm1, %v13027_v52 }
 0x23c   : > { %9426 = vmatmul.mubr.msk.f32.gmra.mrb[2].mxu0 %vm261_vm1, %v13028_v53 }
 0x23d   : > { %9428 = vmatprep.mubr.msk.f32.mxu0 %vm261_vm1, %v13029_v54 }
 0x240   : > { %9429 = vmatmul.mubr.msk.f32.gmra.mrb[4].mxu0 %vm261_vm1, %v13030_v55 }
 0x241   : > { %9431 = vmatprep.mubr.msk.f32.mxu0 %vm261_vm1, %v13031_v56 }
 0x244   : > { %9432 = vmatmul.mubr.msk.f32.gmra.mrb[6].mxu0 %vm261_vm1, %v13032_v57 }
 0x245   : > { %9434 = vmatprep.mubr.msk.f32.mxu0 %vm261_vm1, %v13033_v58 }
 0x248   : > { %9435 = vmatmul.mubr.msk.f32.gmra.mrb[8].mxu0 %vm261_vm1, %v13034_v59 }
 0x249   : > { %9437 = vmatprep.mubr.msk.f32.mxu0 %vm261_vm1, %v13035_v60 }
 0x24c   : > { %9438 = vmatmul.mubr.msk.f32.gmra.mrb[10].mxu0 %vm261_vm1, %v13036_v61 }
 0x24d   : > { %9440 = vmatprep.mubr.msk.f32.mxu0 %vm261_vm1, %v13037_v15 }
 0x250   : > { %9441 = vmatmul.mubr.msk.f32.gmra.mrb[12].mxu0 %vm261_vm1, %v13008_v29 }
 0x251   : > { %9443 = vmatprep.mubr.msk.f32.mxu0 %vm261_vm1, %v13038_v16 }
 0x254   : > { %9444 = vmatmul.mubr.msk.f32.gmra.mrb[14].mxu0 %vm261_vm1, %v13010_v33 }
 0x255   : > { %9446 = vmatprep.mubr.msk.f32.mxu0 %vm261_vm1, %v13039_v17 }
 0x258   : > { %9447 = vmatmul.mubr.msk.f32.gmra.mrb[16].mxu0 %vm261_vm1, %v13012_v30 }
 0x259   : > { %9449 = vmatprep.mubr.msk.f32.mxu0 %vm261_vm1, %v13013_v34 }
 0x25c   : > { %9450 = vmatmul.mubr.msk.f32.gmra.mrb[18].mxu0 %vm261_vm1, %v13040_v18 }
 0x25d   : > { %9452 = vmatprep.mubr.msk.f32.mxu0 %vm261_vm1, %v13015_v28 }
 0x260   : > { %9453 = vmatmul.mubr.msk.f32.gmra.mrb[20].mxu0 %vm261_vm1, %v11211_v1  ;;  %v3525_v1 = vld [vmem:[#allocation2 + $0x19a] sm:$0xff] }
 0x261   : > { %9455 = vmatprep.mubr.msk.f32.mxu0 %vm261_vm1, %v13041_v19 }
 0x264   : > { %9456 = vmatmul.mubr.msk.f32.gmra.mrb[22].mxu0 %vm261_vm1, %v11219_v0  ;;  %v3526_v0 = vld [vmem:[#allocation2 + $0x1a2] sm:$0xff] }
 0x265   : > { %9458 = vmatprep.mubr.msk.f32.mxu0 %vm261_vm1, %v13017_v62  ;;  %v8120_v62 = vld [vmem:[%s12837_s3 + $0x8] sm:$0xff] }
 0x266   : > { %9470 = vmatprep.subr.mxu1 %v8120_v62 }
 0x267   : > { %9471 = vmatpush3.msra.mxu1 %v8120_v62 }
 0x268   : > { %9459 = vmatmul.mubr.msk.f32.gmra.mrb[24].mxu0 %vm261_vm1, %v11227_v40  ;;  %9473 = vmatmul.mubr.msk.f32.vlgmr.msra.gmra.mrb[0].mxu1 %vm317_vm3, %v4023_v22 }
 0x269   : > { %9461 = vmatprep.mubr.msk.f32.mxu0 %vm261_vm1, %v13042_v20  ;;  %9520 = vmatprep.subr.mxu1 %v4021_v23 }
 0x26a   : > { %9521 = vmatpush3.msra.mxu1 %v4021_v23 }
 0x26b   : > { %9570 = vmatprep.subr.mxu1 %v11770_v24 }
 0x26c   : > { %9462 = vmatmul.mubr.msk.f32.gmra.mrb[26].mxu0 %vm261_vm1, %v11235_v7 }
 0x26d   : > { %9464 = vmatprep.mubr.msk.f32.mxu0 %vm261_vm1, %v11449_v35 }
 0x270   : > { %9465 = vmatmul.mubr.msk.f32.gmra.mrb[28].mxu0 %vm261_vm1, %v11455_v8 }
 0x271   : > { %9467 = vmatprep.mubr.msk.f32.mxu0 %vm261_vm1, %v3525_v1 }
 0x274   : > { %9468 = vmatmul.mubr.msk.f32.gmra.mrb[30].mxu0 %vm261_vm1, %v3526_v0 }
 0x30b   : > { %v9424_v26 = vpop.f32.mrb[0].mxu0 }
 0x30c   : > { %v3893_v27 = vadd.f32 %v9424_v26, %v11776_v25  ;;  %v3694_v31 = vpop.f32.mrb[1].mxu0 }
 0x30d   : > { %v3892_v32 = vadd.f32 %v11776_v25, %v3694_v31 }
 0x30e   : > { %v3925_v37 = vmax.f32 %v3893_v27, 0.0 }
 0x30f   : > { %v3924_v38 = vmax.f32 %v3892_v32, 0.0  ;;  %v9427_v39 = vpop.f32.mrb[2].mxu0 }
 0x310   : > { %3958 = vst.msk [vmem:[#allocation3 + $0x21] sm:$0xff] %vm317_vm3, %v3925_v37  ;;  %v3895_v42 = vadd.f32 %v9427_v39, %v11776_v25  ;;  %v3704_v3 = vpop.f32.mrb[3].mxu0 }
 0x311   : > { %3957 = vst.msk [vmem:[#allocation3 + $0x19] sm:$0xff] %vm317_vm3, %v3924_v38  ;;  %v3894_v4 = vadd.f32 %v11776_v25, %v3704_v3 }
 0x312   : > { %v3927_v40 = vmax.f32 %v3895_v42, 0.0 }
 0x313   : > { %v3926_v41 = vmax.f32 %v3894_v4, 0.0  ;;  %v9430_v7 = vpop.f32.mrb[4].mxu0 }
 0x314   : > { %3960 = vst.msk [vmem:[#allocation3 + $0x39] sm:$0xff] %vm317_vm3, %v3927_v40  ;;  %v3897_v2 = vadd.f32 %v9430_v7, %v11776_v25  ;;  %v3714_v5 = vpop.f32.mrb[5].mxu0 }
 0x315   : > { %3959 = vst.msk [vmem:[#allocation3 + $0x31] sm:$0xff] %vm317_vm3, %v3926_v41  ;;  %v3896_v28 = vadd.f32 %v11776_v25, %v3714_v5 }
 0x316   : > { %v3929_v30 = vmax.f32 %v3897_v2, 0.0 }
 0x317   : > { %v3928_v33 = vmax.f32 %v3896_v28, 0.0  ;;  %v9433_v34 = vpop.f32.mrb[6].mxu0  ;;  %v11796_v9 = vld [vmem:[#allocation3 + $0x21] sm:$0xff] }
 0x318   : > { %3962 = vst.msk [vmem:[#allocation3 + $0x51] sm:$0xff] %vm317_vm3, %v3929_v30  ;;  %v3899_v63 = vadd.f32 %v9433_v34, %v11776_v25  ;;  %v3724_v35 = vpop.f32.mrb[7].mxu0  ;;  %v11790_v29 = vld [vmem:[#allocation3 + $0x19] sm:$0xff] }
 0x319   : > { %3961 = vst.msk [vmem:[#allocation3 + $0x49] sm:$0xff] %vm317_vm3, %v3928_v33  ;;  %v3898_v8 = vadd.f32 %v11776_v25, %v3724_v35  ;;  %9475 = vmatprep.mubr.msk.f32.mxu1 %vm317_vm3, %v11790_v29 }
 0x31a   : > { %v3931_v10 = vmax.f32 %v3899_v63, 0.0  ;;  %9476 = vmatmul.mubr.msk.f32.gmra.mrb[2].mxu1 %vm317_vm3, %v11796_v9 }
 0x31b   : > { %v3930_v11 = vmax.f32 %v3898_v8, 0.0  ;;  %v9436_v6 = vpop.f32.mrb[8].mxu0  ;;  %v11808_v43 = vld [vmem:[#allocation3 + $0x39] sm:$0xff] }
 0x31c   : > { %3964 = vst.msk [vmem:[#allocation3 + $0x69] sm:$0xff] %vm317_vm3, %v3931_v10  ;;  %v3901_v12 = vadd.f32 %v9436_v6, %v11776_v25  ;;  %v3734_v13 = vpop.f32.mrb[9].mxu0  ;;  %v11802_v14 = vld [vmem:[#allocation3 + $0x31] sm:$0xff] }
 0x31d   : > { %3963 = vst.msk [vmem:[#allocation3 + $0x61] sm:$0xff] %vm317_vm3, %v3930_v11  ;;  %v3900_v36 = vadd.f32 %v11776_v25, %v3734_v13  ;;  %9478 = vmatprep.mubr.msk.f32.mxu1 %vm317_vm3, %v11802_v14 }
 0x31e   : > { %v3933_v44 = vmax.f32 %v3901_v12, 0.0  ;;  %9479 = vmatmul.mubr.msk.f32.gmra.mrb[4].mxu1 %vm317_vm3, %v11808_v43 }
 0x31f   : > { %v3932_v45 = vmax.f32 %v3900_v36, 0.0  ;;  %v9439_v46 = vpop.f32.mrb[10].mxu0  ;;  %v11820_v51 = vld [vmem:[#allocation3 + $0x51] sm:$0xff] }
 0x320   : > { %3966 = vst.msk [vmem:[#allocation3 + $0x81] sm:$0xff] %vm317_vm3, %v3933_v44  ;;  %v3903_v47 = vadd.f32 %v9439_v46, %v11776_v25  ;;  %v3744_v48 = vpop.f32.mrb[11].mxu0  ;;  %v11814_v49 = vld [vmem:[#allocation3 + $0x49] sm:$0xff] }
 0x321   : > { %3965 = vst.msk [vmem:[#allocation3 + $0x79] sm:$0xff] %vm317_vm3, %v3932_v45  ;;  %v3902_v50 = vadd.f32 %v11776_v25, %v3744_v48  ;;  %9481 = vmatprep.mubr.msk.f32.mxu1 %vm317_vm3, %v11814_v49 }
 0x322   : > { %v3935_v52 = vmax.f32 %v3903_v47, 0.0  ;;  %9482 = vmatmul.mubr.msk.f32.gmra.mrb[6].mxu1 %vm317_vm3, %v11820_v51 }
 0x323   : > { %v3934_v53 = vmax.f32 %v3902_v50, 0.0  ;;  %v9442_v54 = vpop.f32.mrb[12].mxu0  ;;  %v11832_v59 = vld [vmem:[#allocation3 + $0x69] sm:$0xff] }
 0x324   : > { %3968 = vst.msk [vmem:[#allocation3 + $0x99] sm:$0xff] %vm317_vm3, %v3935_v52  ;;  %v3905_v55 = vadd.f32 %v9442_v54, %v11776_v25  ;;  %v3754_v56 = vpop.f32.mrb[13].mxu0  ;;  %v11826_v57 = vld [vmem:[#allocation3 + $0x61] sm:$0xff] }
 0x325   : > { %3967 = vst.msk [vmem:[#allocation3 + $0x91] sm:$0xff] %vm317_vm3, %v3934_v53  ;;  %v3904_v58 = vadd.f32 %v11776_v25, %v3754_v56  ;;  %9484 = vmatprep.mubr.msk.f32.mxu1 %vm317_vm3, %v11826_v57 }
 0x326   : > { %v3937_v60 = vmax.f32 %v3905_v55, 0.0  ;;  %9485 = vmatmul.mubr.msk.f32.gmra.mrb[8].mxu1 %vm317_vm3, %v11832_v59 }
 0x327   : > { %v3936_v61 = vmax.f32 %v3904_v58, 0.0  ;;  %v9445_v15 = vpop.f32.mrb[14].mxu0  ;;  %v11844_v20 = vld [vmem:[#allocation3 + $0x81] sm:$0xff] }
 0x328   : > { %3970 = vst.msk [vmem:[#allocation3 + $0xb1] sm:$0xff] %vm317_vm3, %v3937_v60  ;;  %v3907_v16 = vadd.f32 %v9445_v15, %v11776_v25  ;;  %v3764_v17 = vpop.f32.mrb[15].mxu0  ;;  %v11838_v18 = vld [vmem:[#allocation3 + $0x79] sm:$0xff] }
 0x329   : > { %3969 = vst.msk [vmem:[#allocation3 + $0xa9] sm:$0xff] %vm317_vm3, %v3936_v61  ;;  %v3906_v19 = vadd.f32 %v11776_v25, %v3764_v17  ;;  %9487 = vmatprep.mubr.msk.f32.mxu1 %vm317_vm3, %v11838_v18 }
 0x32a   : > { %v3939_v1 = vmax.f32 %v3907_v16, 0.0  ;;  %9488 = vmatmul.mubr.msk.f32.gmra.mrb[10].mxu1 %vm317_vm3, %v11844_v20 }
 0x32b   : > { %v3938_v0 = vmax.f32 %v3906_v19, 0.0  ;;  %v9448_v62 = vpop.f32.mrb[16].mxu0  ;;  %v11856_v27 = vld [vmem:[#allocation3 + $0x99] sm:$0xff] }
 0x32c   : > { %3972 = vst.msk [vmem:[#allocation3 + $0xc9] sm:$0xff] %vm317_vm3, %v3939_v1  ;;  %v3909_v21 = vadd.f32 %v9448_v62, %v11776_v25  ;;  %v3774_v22 = vpop.f32.mrb[17].mxu0  ;;  %v11850_v23 = vld [vmem:[#allocation3 + $0x91] sm:$0xff] }
 0x32d   : > { %3971 = vst.msk [vmem:[#allocation3 + $0xc1] sm:$0xff] %vm317_vm3, %v3938_v0  ;;  %v3908_v26 = vadd.f32 %v11776_v25, %v3774_v22  ;;  %9490 = vmatprep.mubr.msk.f32.mxu1 %vm317_vm3, %v11850_v23 }
 0x32e   : > { %v3941_v31 = vmax.f32 %v3909_v21, 0.0  ;;  %9491 = vmatmul.mubr.msk.f32.gmra.mrb[12].mxu1 %vm317_vm3, %v11856_v27 }
 0x32f   : > { %v3940_v32 = vmax.f32 %v3908_v26, 0.0  ;;  %v9451_v37 = vpop.f32.mrb[18].mxu0  ;;  %v11868_v4 = vld [vmem:[#allocation3 + $0xb1] sm:$0xff] }
 0x330   : > { %3974 = vst.msk [vmem:[#allocation3 + $0xe1] sm:$0xff] %vm317_vm3, %v3941_v31  ;;  %v3911_v38 = vadd.f32 %v9451_v37, %v11776_v25  ;;  %v3784_v39 = vpop.f32.mrb[19].mxu0  ;;  %v11862_v42 = vld [vmem:[#allocation3 + $0xa9] sm:$0xff] }
 0x331   : > { %3973 = vst.msk [vmem:[#allocation3 + $0xd9] sm:$0xff] %vm317_vm3, %v3940_v32  ;;  %v3910_v3 = vadd.f32 %v11776_v25, %v3784_v39  ;;  %9493 = vmatprep.mubr.msk.f32.mxu1 %vm317_vm3, %v11862_v42 }
 0x332   : > { %v3943_v40 = vmax.f32 %v3911_v38, 0.0  ;;  %9494 = vmatmul.mubr.msk.f32.gmra.mrb[14].mxu1 %vm317_vm3, %v11868_v4 }
 0x333   : > { %v3942_v41 = vmax.f32 %v3910_v3, 0.0  ;;  %v9454_v7 = vpop.f32.mrb[20].mxu0  ;;  %v11880_v33 = vld [vmem:[#allocation3 + $0xc9] sm:$0xff] }
 0x334   : > { %3976 = vst.msk [vmem:[#allocation3 + $0xf9] sm:$0xff] %vm317_vm3, %v3943_v40  ;;  %v3913_v2 = vadd.f32 %v9454_v7, %v11776_v25  ;;  %v3794_v5 = vpop.f32.mrb[21].mxu0  ;;  %v11874_v28 = vld [vmem:[#allocation3 + $0xc1] sm:$0xff] }
 0x335   : > { %3975 = vst.msk [vmem:[#allocation3 + $0xf1] sm:$0xff] %vm317_vm3, %v3942_v41  ;;  %v3912_v30 = vadd.f32 %v11776_v25, %v3794_v5  ;;  %9496 = vmatprep.mubr.msk.f32.mxu1 %vm317_vm3, %v11874_v28  ;;  %v3989_v5 = vld [vmem:[#allocation3] sm:$0xff] }
 0x336   : > { %v3945_v34 = vmax.f32 %v3913_v2, 0.0  ;;  %9497 = vmatmul.mubr.msk.f32.gmra.mrb[16].mxu1 %vm317_vm3, %v11880_v33 }
 0x337   : > { %v3944_v63 = vmax.f32 %v3912_v30, 0.0  ;;  %v9457_v35 = vpop.f32.mrb[22].mxu0  ;;  %v11892_v12 = vld [vmem:[#allocation3 + $0xe1] sm:$0xff] }
 0x338   : > { %3978 = vst.msk [vmem:[#allocation3 + $0x111] sm:$0xff] %vm317_vm3, %v3945_v34  ;;  %v3915_v8 = vadd.f32 %v9457_v35, %v11776_v25  ;;  %v3804_v10 = vpop.f32.mrb[23].mxu0  ;;  %v11886_v11 = vld [vmem:[#allocation3 + $0xd9] sm:$0xff]  ;;  %v3990_v34 = vld [vmem:[#allocation3 + $0x8] sm:$0xff] }
 0x339   : > { %3977 = vst.msk [vmem:[#allocation3 + $0x109] sm:$0xff] %vm317_vm3, %v3944_v63  ;;  %v3914_v6 = vadd.f32 %v11776_v25, %v3804_v10  ;;  %9499 = vmatprep.mubr.msk.f32.mxu1 %vm317_vm3, %v11886_v11  ;;  %v11966_v63 = vld [vmem:[%s12837_s3 + $0x18] sm:$0xff]  ;;  %v11969_v35 = vld [vmem:[#allocation3 + $0x18] sm:$0xff]  ;;  %v11979_v10 = vld [vmem:[#allocation3 + $0x30] sm:$0xff] }
 0x33a   : > { %v3947_v13 = vmax.f32 %v3915_v8, 0.0  ;;  %9500 = vmatmul.mubr.msk.f32.gmra.mrb[18].mxu1 %vm317_vm3, %v11892_v12  ;;  %v11975_v8 = vld [vmem:[#allocation3 + $0x20] sm:$0xff] }
 0x33b   : > { %v3946_v36 = vmax.f32 %v3914_v6, 0.0  ;;  %v9460_v44 = vpop.f32.mrb[24].mxu0  ;;  %v11904_v50 = vld [vmem:[#allocation3 + $0xf9] sm:$0xff] }
 0x33c   : > { %3980 = vst.msk [vmem:[#allocation3 + $0x129] sm:$0xff] %vm317_vm3, %v3947_v13  ;;  %v3917_v45 = vadd.f32 %v9460_v44, %v11776_v25  ;;  %v3814_v46 = vpop.f32.mrb[25].mxu0  ;;  %v11898_v47 = vld [vmem:[#allocation3 + $0xf1] sm:$0xff]  ;;  %v11999_v44 = vld [vmem:[#allocation3 + $0x68] sm:$0xff] }
 0x33d   : > { %3979 = vst.msk [vmem:[#allocation3 + $0x121] sm:$0xff] %vm317_vm3, %v3946_v36  ;;  %v3916_v48 = vadd.f32 %v11776_v25, %v3814_v46  ;;  %9502 = vmatprep.mubr.msk.f32.mxu1 %vm317_vm3, %v11898_v47  ;;  %v11983_v6 = vld [vmem:[#allocation3 + $0x38] sm:$0xff]  ;;  %v11991_v13 = vld [vmem:[#allocation3 + $0x50] sm:$0xff]  ;;  %v11995_v36 = vld [vmem:[#allocation3 + $0x60] sm:$0xff] }
 0x33e   : > { %v3949_v52 = vmax.f32 %v3917_v45, 0.0  ;;  %9503 = vmatmul.mubr.msk.f32.gmra.mrb[20].mxu1 %vm317_vm3, %v11904_v50  ;;  %v12003_v45 = vld [vmem:[#allocation3 + $0x78] sm:$0xff]  ;;  %v12007_v46 = vld [vmem:[#allocation3 + $0x80] sm:$0xff] }
 0x33f   : > { %v3948_v53 = vmax.f32 %v3916_v48, 0.0  ;;  %v9463_v54 = vpop.f32.mrb[26].mxu0  ;;  %v11916_v61 = vld [vmem:[#allocation3 + $0x111] sm:$0xff] }
 0x340   : > { %3982 = vst.msk [vmem:[#allocation3 + $0x141] sm:$0xff] %vm317_vm3, %v3949_v52  ;;  %v3919_v55 = vadd.f32 %v9463_v54, %v11776_v25  ;;  %v3824_v56 = vpop.f32.mrb[27].mxu0  ;;  %v11910_v58 = vld [vmem:[#allocation3 + $0x109] sm:$0xff]  ;;  %v12015_v52 = vld [vmem:[#allocation3 + $0x98] sm:$0xff] }
 0x341   : > { %3981 = vst.msk [vmem:[#allocation3 + $0x139] sm:$0xff] %vm317_vm3, %v3948_v53  ;;  %v3918_v60 = vadd.f32 %v11776_v25, %v3824_v56  ;;  %9505 = vmatprep.mubr.msk.f32.mxu1 %vm317_vm3, %v11910_v58  ;;  %v12011_v48 = vld [vmem:[#allocation3 + $0x90] sm:$0xff]  ;;  %v12019_v53 = vld [vmem:[#allocation3 + $0xa8] sm:$0xff] }
 0x342   : > { %v3951_v15 = vmax.f32 %v3919_v55, 0.0  ;;  %9506 = vmatmul.mubr.msk.f32.gmra.mrb[22].mxu1 %vm317_vm3, %v11916_v61  ;;  %v12023_v54 = vld [vmem:[#allocation3 + $0xb0] sm:$0xff]  ;;  %v12027_v55 = vld [vmem:[#allocation3 + $0xc0] sm:$0xff]  ;;  %v12031_v56 = vld [vmem:[#allocation3 + $0xc8] sm:$0xff] }
 0x343   : > { %v3950_v16 = vmax.f32 %v3918_v60, 0.0  ;;  %v9466_v17 = vpop.f32.mrb[28].mxu0  ;;  %v11928_v21 = vld [vmem:[#allocation3 + $0x129] sm:$0xff]  ;;  %v12035_v60 = vld [vmem:[#allocation3 + $0xd8] sm:$0xff] }
 0x344   : > { %3984 = vst.msk [vmem:[#allocation3 + $0x159] sm:$0xff] %vm317_vm3, %v3951_v15  ;;  %v3921_v19 = vadd.f32 %v9466_v17, %v11776_v25  ;;  %v3834_v1 = vpop.f32.mrb[29].mxu0  ;;  %v11922_v0 = vld [vmem:[#allocation3 + $0x121] sm:$0xff]  ;;  %v12047_v17 = vld [vmem:[#allocation3 + $0xf8] sm:$0xff] }
 0x345   : > { %3983 = vst.msk [vmem:[#allocation3 + $0x151] sm:$0xff] %vm317_vm3, %v3950_v16  ;;  %v3920_v62 = vadd.f32 %v11776_v25, %v3834_v1  ;;  %9508 = vmatprep.mubr.msk.f32.mxu1 %vm317_vm3, %v11922_v0  ;;  %v12039_v15 = vld [vmem:[#allocation3 + $0xe0] sm:$0xff]  ;;  %v12043_v16 = vld [vmem:[#allocation3 + $0xf0] sm:$0xff] }
 0x346   : > { %v3953_v22 = vmax.f32 %v3921_v19, 0.0  ;;  %9509 = vmatmul.mubr.msk.f32.gmra.mrb[24].mxu1 %vm317_vm3, %v11928_v21  ;;  %v12051_v19 = vld [vmem:[#allocation3 + $0x108] sm:$0xff]  ;;  %v12055_v1 = vld [vmem:[#allocation3 + $0x110] sm:$0xff] }
 0x347   : > { %v3952_v26 = vmax.f32 %v3920_v62, 0.0  ;;  %v9469_v31 = vpop.f32.mrb[30].mxu0  ;;  %v11940_v3 = vld [vmem:[#allocation3 + $0x141] sm:$0xff] }
 0x348   : > { %3986 = vst.msk [vmem:[#allocation3 + $0x171] sm:$0xff] %vm317_vm3, %v3953_v22  ;;  %v3923_v32 = vadd.f32 %v9469_v31, %v11776_v25  ;;  %v3844_v37 = vpop.f32.mrb[31].mxu0  ;;  %v11934_v38 = vld [vmem:[#allocation3 + $0x139] sm:$0xff]  ;;  %v12063_v22 = vld [vmem:[#allocation3 + $0x128] sm:$0xff] }
 0x349   : > { %3985 = vst.msk [vmem:[#allocation3 + $0x169] sm:$0xff] %vm317_vm3, %v3952_v26  ;;  %v3922_v39 = vadd.f32 %v11776_v25, %v3844_v37  ;;  %9511 = vmatprep.mubr.msk.f32.mxu1 %vm317_vm3, %v11934_v38  ;;  %v12059_v62 = vld [vmem:[#allocation3 + $0x120] sm:$0xff]  ;;  %v12067_v26 = vld [vmem:[#allocation3 + $0x138] sm:$0xff] }
 0x34a   : > { %v3955_v40 = vmax.f32 %v3923_v32, 0.0  ;;  %9512 = vmatmul.mubr.msk.f32.gmra.mrb[26].mxu1 %vm317_vm3, %v11940_v3  ;;  %v12071_v31 = vld [vmem:[#allocation3 + $0x140] sm:$0xff] }
 0x34b   : > { %v3954_v41 = vmax.f32 %v3922_v39, 0.0  ;;  %v11950_v25 = vld [vmem:[#allocation3 + $0x159] sm:$0xff] }
 0x34c   : > { %3988 = vst.msk [vmem:[#allocation3 + $0x189] sm:$0xff] %vm317_vm3, %v3955_v40  ;;  %v11945_v7 = vld [vmem:[#allocation3 + $0x151] sm:$0xff]  ;;  %v4698_v40 = vld [vmem:[#allocation3 + $0x2] sm:$0xff] }
 0x34d   : > { %3987 = vst.msk [vmem:[#allocation3 + $0x181] sm:$0xff] %vm317_vm3, %v3954_v41  ;;  %9514 = vmatprep.mubr.msk.f32.mxu1 %vm317_vm3, %v11945_v7  ;;  %v12075_v32 = vld [vmem:[#allocation3 + $0x150] sm:$0xff]  ;;  %v12079_v37 = vld [vmem:[#allocation3 + $0x158] sm:$0xff] }
 0x34e   : > { %9515 = vmatmul.mubr.msk.f32.gmra.mrb[28].mxu1 %vm317_vm3, %v11950_v25 }
 0x34f   : > { %v11958_v30 = vld [vmem:[#allocation3 + $0x171] sm:$0xff] }
 0x350   : > { %v11954_v2 = vld [vmem:[#allocation3 + $0x169] sm:$0xff]  ;;  %13044 = vst [vmem:[#allocation16_spill] sm:$0xff] %v11958_v30 }
 0x351   : > { %13043 = vst [vmem:[#allocation15_spill] sm:$0xff] %v11954_v2  ;;  %9517 = vmatprep.mubr.msk.f32.mxu1 %vm317_vm3, %v11954_v2  ;;  %v12083_v39 = vld [vmem:[#allocation3 + $0x168] sm:$0xff]  ;;  %v12087_v41 = vld [vmem:[#allocation3 + $0x170] sm:$0xff] }
 0x352   : > { %9518 = vmatmul.mubr.msk.f32.gmra.mrb[30].mxu1 %vm317_vm3, %v11958_v30  ;;  %v12098_v30 = vld [vmem:[#allocation3 + $0x1a] sm:$0xff]  ;;  %v12104_v2 = vld [vmem:[#allocation3 + $0x22] sm:$0xff] }
 0x353   : > { %9522 = vmatprep.mubr.msk.f32.mxu1 %vm317_vm3, %v3989_v5  ;;  %v4699_v5 = vld [vmem:[#allocation3 + $0xa] sm:$0xff]  ;;  %13045 = vst [vmem:[#allocation30_spill] sm:$0xff] %v12098_v30  ;;  %13046 = vst [vmem:[#allocation32_spill] sm:$0xff] %v12104_v2 }
 0x356   : > { %9523 = vmatmul.mubr.msk.f32.vlgmr.msra.gmra.mrb[0].mxu1 %vm317_vm3, %v3990_v34  ;;  %v12095_v34 = vld [vmem:[%s12837_s3 + $0x20] sm:$0xff] }
 0x357   : > { %9571 = vmatpush3.msra.mxu1 %v11770_v24  ;;  %9525 = vmatprep.mubr.msk.f32.mxu1 %vm317_vm3, %v11969_v35  ;;  %v11987_v24 = vld [vmem:[#allocation3 + $0x48] sm:$0xff] }
 0x358   : > { %9620 = vmatprep.subr.mxu1 %v11966_v63 }
 0x35a   : > { %9526 = vmatmul.mubr.msk.f32.gmra.mrb[2].mxu1 %vm317_vm3, %v11975_v8 }
 0x35b   : > { %9528 = vmatprep.mubr.msk.f32.mxu1 %vm317_vm3, %v11979_v10 }
 0x35e   : > { %9529 = vmatmul.mubr.msk.f32.gmra.mrb[4].mxu1 %vm317_vm3, %v11983_v6 }
 0x35f   : > { %9531 = vmatprep.mubr.msk.f32.mxu1 %vm317_vm3, %v11987_v24 }
 0x362   : > { %9532 = vmatmul.mubr.msk.f32.gmra.mrb[6].mxu1 %vm317_vm3, %v11991_v13 }
 0x363   : > { %9534 = vmatprep.mubr.msk.f32.mxu1 %vm317_vm3, %v11995_v36 }
 0x366   : > { %9535 = vmatmul.mubr.msk.f32.gmra.mrb[8].mxu1 %vm317_vm3, %v11999_v44 }
 0x367   : > { %9537 = vmatprep.mubr.msk.f32.mxu1 %vm317_vm3, %v12003_v45 }
 0x36a   : > { %9538 = vmatmul.mubr.msk.f32.gmra.mrb[10].mxu1 %vm317_vm3, %v12007_v46 }
 0x36b   : > { %9540 = vmatprep.mubr.msk.f32.mxu1 %vm317_vm3, %v12011_v48 }
 0x36e   : > { %9541 = vmatmul.mubr.msk.f32.gmra.mrb[12].mxu1 %vm317_vm3, %v12015_v52 }
 0x36f   : > { %9543 = vmatprep.mubr.msk.f32.mxu1 %vm317_vm3, %v12019_v53 }
 0x372   : > { %9544 = vmatmul.mubr.msk.f32.gmra.mrb[14].mxu1 %vm317_vm3, %v12023_v54 }
 0x373   : > { %9546 = vmatprep.mubr.msk.f32.mxu1 %vm317_vm3, %v12027_v55 }
 0x376   : > { %9547 = vmatmul.mubr.msk.f32.gmra.mrb[16].mxu1 %vm317_vm3, %v12031_v56 }
 0x377   : > { %9549 = vmatprep.mubr.msk.f32.mxu1 %vm317_vm3, %v12035_v60 }
 0x37a   : > { %9550 = vmatmul.mubr.msk.f32.gmra.mrb[18].mxu1 %vm317_vm3, %v12039_v15 }
 0x37b   : > { %9552 = vmatprep.mubr.msk.f32.mxu1 %vm317_vm3, %v12043_v16 }
 0x37e   : > { %9553 = vmatmul.mubr.msk.f32.gmra.mrb[20].mxu1 %vm317_vm3, %v12047_v17 }
 0x37f   : > { %9555 = vmatprep.mubr.msk.f32.mxu1 %vm317_vm3, %v12051_v19 }
 0x382   : > { %9556 = vmatmul.mubr.msk.f32.gmra.mrb[22].mxu1 %vm317_vm3, %v12055_v1 }
 0x383   : > { %9558 = vmatprep.mubr.msk.f32.mxu1 %vm317_vm3, %v12059_v62 }
 0x386   : > { %9559 = vmatmul.mubr.msk.f32.gmra.mrb[24].mxu1 %vm317_vm3, %v12063_v22 }
 0x387   : > { %9561 = vmatprep.mubr.msk.f32.mxu1 %vm317_vm3, %v12067_v26 }
 0x38a   : > { %9562 = vmatmul.mubr.msk.f32.gmra.mrb[26].mxu1 %vm317_vm3, %v12071_v31 }
 0x38b   : > { %9564 = vmatprep.mubr.msk.f32.mxu1 %vm317_vm3, %v12075_v32 }
 0x38e   : > { %9565 = vmatmul.mubr.msk.f32.gmra.mrb[28].mxu1 %vm317_vm3, %v12079_v37 }
 0x38f   : > { %9567 = vmatprep.mubr.msk.f32.mxu1 %vm317_vm3, %v12083_v39 }
 0x392   : > { %9568 = vmatmul.mubr.msk.f32.gmra.mrb[30].mxu1 %vm317_vm3, %v12087_v41 }
 0x393   : > { %9572 = vmatprep.mubr.msk.f32.mxu1 %vm317_vm3, %v4698_v40  ;;  %v12108_v40 = vld [vmem:[#allocation3 + $0x32] sm:$0xff] }
 0x394   : > { %13047 = vst [vmem:[#allocation34_spill] sm:$0xff] %v12108_v40 }
 0x396   : > { %9573 = vmatmul.mubr.msk.f32.vlgmr.msra.gmra.mrb[0].mxu1 %vm317_vm3, %v4699_v5  ;;  %v12112_v5 = vld [vmem:[#allocation3 + $0x3a] sm:$0xff] }
 0x397   : > { %9621 = vmatpush3.msra.mxu1 %v11966_v63  ;;  %9575 = vmatprep.mubr.msk.f32.mxu1 %vm317_vm3, %v12098_v30  ;;  %13048 = vst [vmem:[#allocation35_spill] sm:$0xff] %v12112_v5  ;;  %v12116_v63 = vld [vmem:[#allocation3 + $0x4a] sm:$0xff]  ;;  %v12120_v30 = vld [vmem:[#allocation3 + $0x52] sm:$0xff] }
 0x398   : > { %9670 = vmatprep.subr.mxu1 %v12095_v34  ;;  %13049 = vst [vmem:[#allocation37_spill] sm:$0xff] %v12116_v63  ;;  %13050 = vst [vmem:[#allocation39_spill] sm:$0xff] %v12120_v30 }
 0x39a   : > { %9576 = vmatmul.mubr.msk.f32.gmra.mrb[2].mxu1 %vm317_vm3, %v12104_v2  ;;  %v12124_v2 = vld [vmem:[#allocation3 + $0x62] sm:$0xff] }
 0x39b   : > { %9578 = vmatprep.mubr.msk.f32.mxu1 %vm317_vm3, %v12108_v40  ;;  %13051 = vst [vmem:[#allocation11_spill] sm:$0xff] %v12124_v2  ;;  %v12128_v40 = vld [vmem:[#allocation3 + $0x6a] sm:$0xff] }
 0x39c   : > { %13052 = vst [vmem:[#allocation12_spill] sm:$0xff] %v12128_v40 }
 0x39e   : > { %9579 = vmatmul.mubr.msk.f32.gmra.mrb[4].mxu1 %vm317_vm3, %v12112_v5  ;;  %v12132_v5 = vld [vmem:[#allocation3 + $0x7a] sm:$0xff] }
 0x39f   : > { %9581 = vmatprep.mubr.msk.f32.mxu1 %vm317_vm3, %v12116_v63  ;;  %13053 = vst [vmem:[#allocation13_spill] sm:$0xff] %v12132_v5  ;;  %v12136_v63 = vld [vmem:[#allocation3 + $0x82] sm:$0xff] }
 0x3a0   : > { %13054 = vst [vmem:[#allocation14_spill] sm:$0xff] %v12136_v63 }
 0x3a2   : > { %9582 = vmatmul.mubr.msk.f32.gmra.mrb[6].mxu1 %vm317_vm3, %v12120_v30  ;;  %v12140_v30 = vld [vmem:[#allocation3 + $0x92] sm:$0xff] }
 0x3a3   : > { %9584 = vmatprep.mubr.msk.f32.mxu1 %vm317_vm3, %v12124_v2  ;;  %13055 = vst [vmem:[#allocation41_spill] sm:$0xff] %v12140_v30  ;;  %v12144_v2 = vld [vmem:[#allocation3 + $0x9a] sm:$0xff] }
 0x3a4   : > { %13056 = vst [vmem:[#allocation42_spill] sm:$0xff] %v12144_v2 }
 0x3a6   : > { %9585 = vmatmul.mubr.msk.f32.gmra.mrb[8].mxu1 %vm317_vm3, %v12128_v40  ;;  %v12148_v40 = vld [vmem:[#allocation3 + $0xaa] sm:$0xff] }
 0x3a7   : > { %9587 = vmatprep.mubr.msk.f32.mxu1 %vm317_vm3, %v12132_v5  ;;  %13057 = vst [vmem:[#allocation17_spill] sm:$0xff] %v12148_v40  ;;  %v12152_v5 = vld [vmem:[#allocation3 + $0xb2] sm:$0xff] }
 0x3a8   : > { %13058 = vst [vmem:[#allocation18_spill] sm:$0xff] %v12152_v5 }
 0x3aa   : > { %9588 = vmatmul.mubr.msk.f32.gmra.mrb[10].mxu1 %vm317_vm3, %v12136_v63  ;;  %v12156_v63 = vld [vmem:[#allocation3 + $0xc2] sm:$0xff] }
 0x3ab   : > { %9590 = vmatprep.mubr.msk.f32.mxu1 %vm317_vm3, %v12140_v30  ;;  %13059 = vst [vmem:[#allocation19_spill] sm:$0xff] %v12156_v63  ;;  %v12160_v30 = vld [vmem:[#allocation3 + $0xca] sm:$0xff] }
 0x3ac   : > { %13060 = vst [vmem:[#allocation20_spill] sm:$0xff] %v12160_v30 }
 0x3ae   : > { %9591 = vmatmul.mubr.msk.f32.gmra.mrb[12].mxu1 %vm317_vm3, %v12144_v2  ;;  %v12164_v2 = vld [vmem:[#allocation3 + $0xda] sm:$0xff] }
 0x3af   : > { %9593 = vmatprep.mubr.msk.f32.mxu1 %vm317_vm3, %v12148_v40  ;;  %13061 = vst [vmem:[#allocation21_spill] sm:$0xff] %v12164_v2  ;;  %v12168_v40 = vld [vmem:[#allocation3 + $0xe2] sm:$0xff] }
 0x3b0   : > { %13062 = vst [vmem:[#allocation22_spill] sm:$0xff] %v12168_v40 }
 0x3b2   : > { %9594 = vmatmul.mubr.msk.f32.gmra.mrb[14].mxu1 %vm317_vm3, %v12152_v5  ;;  %v12172_v5 = vld [vmem:[#allocation3 + $0xf2] sm:$0xff] }
 0x3b3   : > { %9596 = vmatprep.mubr.msk.f32.mxu1 %vm317_vm3, %v12156_v63  ;;  %13063 = vst [vmem:[#allocation23_spill] sm:$0xff] %v12172_v5  ;;  %v12176_v63 = vld [vmem:[#allocation3 + $0xfa] sm:$0xff] }
 0x3b4   : > { %13064 = vst [vmem:[#allocation24_spill] sm:$0xff] %v12176_v63 }
 0x3b6   : > { %9597 = vmatmul.mubr.msk.f32.gmra.mrb[16].mxu1 %vm317_vm3, %v12160_v30  ;;  %v12180_v30 = vld [vmem:[#allocation3 + $0x10a] sm:$0xff] }
 0x3b7   : > { %9599 = vmatprep.mubr.msk.f32.mxu1 %vm317_vm3, %v12164_v2  ;;  %13065 = vst [vmem:[#allocation25_spill] sm:$0xff] %v12180_v30  ;;  %v12184_v2 = vld [vmem:[#allocation3 + $0x112] sm:$0xff] }
 0x3b8   : > { %13066 = vst [vmem:[#allocation26_spill] sm:$0xff] %v12184_v2 }
 0x3ba   : > { %9600 = vmatmul.mubr.msk.f32.gmra.mrb[18].mxu1 %vm317_vm3, %v12168_v40  ;;  %v12188_v40 = vld [vmem:[#allocation3 + $0x122] sm:$0xff] }
 0x3bb   : > { %9602 = vmatprep.mubr.msk.f32.mxu1 %vm317_vm3, %v12172_v5  ;;  %13067 = vst [vmem:[#allocation27_spill] sm:$0xff] %v12188_v40  ;;  %v12192_v5 = vld [vmem:[#allocation3 + $0x12a] sm:$0xff] }
 0x3bc   : > { %13068 = vst [vmem:[#allocation28_spill] sm:$0xff] %v12192_v5 }
 0x3be   : > { %9603 = vmatmul.mubr.msk.f32.gmra.mrb[20].mxu1 %vm317_vm3, %v12176_v63  ;;  %v12196_v63 = vld [vmem:[#allocation3 + $0x13a] sm:$0xff] }
 0x3bf   : > { %9605 = vmatprep.mubr.msk.f32.mxu1 %vm317_vm3, %v12180_v30  ;;  %13069 = vst [vmem:[#allocation29_spill] sm:$0xff] %v12196_v63  ;;  %v12200_v30 = vld [vmem:[#allocation3 + $0x142] sm:$0xff] }
 0x3c2   : > { %9606 = vmatmul.mubr.msk.f32.gmra.mrb[22].mxu1 %vm317_vm3, %v12184_v2  ;;  %v12204_v2 = vld [vmem:[#allocation3 + $0x152] sm:$0xff] }
 0x3c3   : > { %9608 = vmatprep.mubr.msk.f32.mxu1 %vm317_vm3, %v12188_v40  ;;  %13070 = vst [vmem:[#allocation31_spill] sm:$0xff] %v12204_v2  ;;  %v12208_v40 = vld [vmem:[#allocation3 + $0x15a] sm:$0xff] }
 0x3c6   : > { %9609 = vmatmul.mubr.msk.f32.gmra.mrb[24].mxu1 %vm317_vm3, %v12192_v5  ;;  %v12212_v5 = vld [vmem:[#allocation3 + $0x16a] sm:$0xff] }
 0x3c7   : > { %9611 = vmatprep.mubr.msk.f32.mxu1 %vm317_vm3, %v12196_v63  ;;  %13071 = vst [vmem:[#allocation33_spill] sm:$0xff] %v12212_v5  ;;  %v12216_v63 = vld [vmem:[#allocation3 + $0x172] sm:$0xff] }
 0x3ca   : > { %9612 = vmatmul.mubr.msk.f32.gmra.mrb[26].mxu1 %vm317_vm3, %v12200_v30 }
 0x3cb   : > { %9614 = vmatprep.mubr.msk.f32.mxu1 %vm317_vm3, %v12204_v2  ;;  %v8284_v2 = vld [vmem:[%s12837_s3 + $0x28] sm:$0xff] }
 0x3ce   : > { %9615 = vmatmul.mubr.msk.f32.gmra.mrb[28].mxu1 %vm317_vm3, %v12208_v40 }
 0x3cf   : > { %9617 = vmatprep.mubr.msk.f32.mxu1 %vm317_vm3, %v12212_v5 }
 0x3d2   : > { %9618 = vmatmul.mubr.msk.f32.gmra.mrb[30].mxu1 %vm317_vm3, %v12216_v63 }
 0x3d3   : > { %9622 = vmatprep.mubr.msk.f32.mxu1 %vm317_vm3, %v11969_v35  ;;  %v12284_v35 = vld [vmem:[#allocation3 + $0x180] sm:$0xff] }
 0x3d6   : > { %9623 = vmatmul.mubr.msk.f32.vlgmr.msra.gmra.mrb[0].mxu1 %vm317_vm3, %v11975_v8  ;;  %v12288_v8 = vld [vmem:[#allocation3 + $0x188] sm:$0xff] }
 0x3d7   : > { %9671 = vmatpush3.msra.mxu1 %v12095_v34  ;;  %9625 = vmatprep.mubr.msk.f32.mxu1 %vm317_vm3, %v11979_v10  ;;  %v8317_v34 = vld [vmem:[%s12837_s3 + $0x30] sm:$0xff] }
 0x3d8   : > { %9720 = vmatprep.subr.mxu1 %v8284_v2 }
 0x3da   : > { %9626 = vmatmul.mubr.msk.f32.gmra.mrb[2].mxu1 %vm317_vm3, %v11983_v6 }
 0x3db   : > { %9628 = vmatprep.mubr.msk.f32.mxu1 %vm317_vm3, %v11987_v24 }
 0x3de   : > { %9629 = vmatmul.mubr.msk.f32.gmra.mrb[4].mxu1 %vm317_vm3, %v11991_v13 }
 0x3df   : > { %9631 = vmatprep.mubr.msk.f32.mxu1 %vm317_vm3, %v11995_v36 }
 0x3e2   : > { %9632 = vmatmul.mubr.msk.f32.gmra.mrb[6].mxu1 %vm317_vm3, %v11999_v44 }
 0x3e3   : > { %9634 = vmatprep.mubr.msk.f32.mxu1 %vm317_vm3, %v12003_v45 }
 0x3e6   : > { %9635 = vmatmul.mubr.msk.f32.gmra.mrb[8].mxu1 %vm317_vm3, %v12007_v46 }
 0x3e7   : > { %9637 = vmatprep.mubr.msk.f32.mxu1 %vm317_vm3, %v12011_v48 }
 0x3ea   : > { %9638 = vmatmul.mubr.msk.f32.gmra.mrb[10].mxu1 %vm317_vm3, %v12015_v52 }
 0x3eb   : > { %9640 = vmatprep.mubr.msk.f32.mxu1 %vm317_vm3, %v12019_v53 }
 0x3ee   : > { %9641 = vmatmul.mubr.msk.f32.gmra.mrb[12].mxu1 %vm317_vm3, %v12023_v54 }
 0x3ef   : > { %9643 = vmatprep.mubr.msk.f32.mxu1 %vm317_vm3, %v12027_v55 }
 0x3f2   : > { %9644 = vmatmul.mubr.msk.f32.gmra.mrb[14].mxu1 %vm317_vm3, %v12031_v56 }
 0x3f3   : > { %9646 = vmatprep.mubr.msk.f32.mxu1 %vm317_vm3, %v12035_v60 }
 0x3f6   : > { %9647 = vmatmul.mubr.msk.f32.gmra.mrb[16].mxu1 %vm317_vm3, %v12039_v15 }
 0x3f7   : > { %9649 = vmatprep.mubr.msk.f32.mxu1 %vm317_vm3, %v12043_v16 }
 0x3fa   : > { %9650 = vmatmul.mubr.msk.f32.gmra.mrb[18].mxu1 %vm317_vm3, %v12047_v17 }
 0x3fb   : > { %9652 = vmatprep.mubr.msk.f32.mxu1 %vm317_vm3, %v12051_v19 }
 0x3fe   : > { %9653 = vmatmul.mubr.msk.f32.gmra.mrb[20].mxu1 %vm317_vm3, %v12055_v1 }
 0x3ff   : > { %9655 = vmatprep.mubr.msk.f32.mxu1 %vm317_vm3, %v12059_v62 }
 0x402   : > { %9656 = vmatmul.mubr.msk.f32.gmra.mrb[22].mxu1 %vm317_vm3, %v12063_v22 }
 0x403   : > { %9658 = vmatprep.mubr.msk.f32.mxu1 %vm317_vm3, %v12067_v26 }
 0x406   : > { %9659 = vmatmul.mubr.msk.f32.gmra.mrb[24].mxu1 %vm317_vm3, %v12071_v31 }
 0x407   : > { %9661 = vmatprep.mubr.msk.f32.mxu1 %vm317_vm3, %v12075_v32 }
 0x40a   : > { %9662 = vmatmul.mubr.msk.f32.gmra.mrb[26].mxu1 %vm317_vm3, %v12079_v37 }
 0x40b   : > { %9664 = vmatprep.mubr.msk.f32.mxu1 %vm317_vm3, %v12083_v39 }
 0x40e   : > { %9665 = vmatmul.mubr.msk.f32.gmra.mrb[28].mxu1 %vm317_vm3, %v12087_v41 }
 0x40f   : > { %9667 = vmatprep.mubr.msk.f32.mxu1 %vm317_vm3, %v12284_v35 }
 0x412   : > { %9668 = vmatmul.mubr.msk.f32.gmra.mrb[30].mxu1 %vm317_vm3, %v12288_v8 }
 0x413   : > { %9672 = vmatprep.mubr.msk.f32.mxu1 %vm317_vm3, %v11790_v29  ;;  %v13072_v29 = vld [vmem:[#allocation15_spill] sm:$0xff] }
 0x416   : > { %9673 = vmatmul.mubr.msk.f32.vlgmr.msra.gmra.mrb[0].mxu1 %vm317_vm3, %v11796_v9  ;;  %v13073_v9 = vld [vmem:[#allocation16_spill] sm:$0xff] }
 0x417   : > { %9721 = vmatpush3.msra.mxu1 %v8284_v2  ;;  %9675 = vmatprep.mubr.msk.f32.mxu1 %vm317_vm3, %v11802_v14  ;;  %v12355_v14 = vld [vmem:[#allocation3 + $0x181] sm:$0xff] }
 0x418   : > { %9770 = vmatprep.subr.mxu1 %v8317_v34  ;;  %v13081_v2 = vld [vmem:[#allocation12_spill] sm:$0xff] }
 0x41a   : > { %9676 = vmatmul.mubr.msk.f32.gmra.mrb[2].mxu1 %vm317_vm3, %v11808_v43  ;;  %v12359_v43 = vld [vmem:[#allocation3 + $0x189] sm:$0xff] }
 0x41b   : > { %9678 = vmatprep.mubr.msk.f32.mxu1 %vm317_vm3, %v11814_v49  ;;  %v13074_v49 = vld [vmem:[#allocation30_spill] sm:$0xff] }
 0x41e   : > { %9679 = vmatmul.mubr.msk.f32.gmra.mrb[4].mxu1 %vm317_vm3, %v11820_v51  ;;  %v8350_v51 = vld [vmem:[%s12837_s3 + $0x38] sm:$0xff] }
 0x41f   : > { %9681 = vmatprep.mubr.msk.f32.mxu1 %vm317_vm3, %v11826_v57  ;;  %v13075_v57 = vld [vmem:[#allocation32_spill] sm:$0xff] }
 0x422   : > { %9682 = vmatmul.mubr.msk.f32.gmra.mrb[6].mxu1 %vm317_vm3, %v11832_v59  ;;  %v13076_v59 = vld [vmem:[#allocation34_spill] sm:$0xff] }
 0x423   : > { %9684 = vmatprep.mubr.msk.f32.mxu1 %vm317_vm3, %v11838_v18  ;;  %v13077_v18 = vld [vmem:[#allocation35_spill] sm:$0xff] }
 0x426   : > { %9685 = vmatmul.mubr.msk.f32.gmra.mrb[8].mxu1 %vm317_vm3, %v11844_v20  ;;  %v13078_v20 = vld [vmem:[#allocation37_spill] sm:$0xff] }
 0x427   : > { %9687 = vmatprep.mubr.msk.f32.mxu1 %vm317_vm3, %v11850_v23  ;;  %v13079_v23 = vld [vmem:[#allocation39_spill] sm:$0xff] }
 0x42a   : > { %9688 = vmatmul.mubr.msk.f32.gmra.mrb[10].mxu1 %vm317_vm3, %v11856_v27  ;;  %v13080_v27 = vld [vmem:[#allocation11_spill] sm:$0xff] }
 0x42b   : > { %9690 = vmatprep.mubr.msk.f32.mxu1 %vm317_vm3, %v11862_v42 }
 0x42e   : > { %9691 = vmatmul.mubr.msk.f32.gmra.mrb[12].mxu1 %vm317_vm3, %v11868_v4 }
 0x42f   : > { %9693 = vmatprep.mubr.msk.f32.mxu1 %vm317_vm3, %v11874_v28 }
 0x432   : > { %9694 = vmatmul.mubr.msk.f32.gmra.mrb[14].mxu1 %vm317_vm3, %v11880_v33 }
 0x433   : > { %9696 = vmatprep.mubr.msk.f32.mxu1 %vm317_vm3, %v11886_v11 }
 0x436   : > { %9697 = vmatmul.mubr.msk.f32.gmra.mrb[16].mxu1 %vm317_vm3, %v11892_v12 }
 0x437   : > { %9699 = vmatprep.mubr.msk.f32.mxu1 %vm317_vm3, %v11898_v47 }
 0x43a   : > { %9700 = vmatmul.mubr.msk.f32.gmra.mrb[18].mxu1 %vm317_vm3, %v11904_v50 }
 0x43b   : > { %9702 = vmatprep.mubr.msk.f32.mxu1 %vm317_vm3, %v11910_v58 }
 0x43e   : > { %9703 = vmatmul.mubr.msk.f32.gmra.mrb[20].mxu1 %vm317_vm3, %v11916_v61 }
 0x43f   : > { %9705 = vmatprep.mubr.msk.f32.mxu1 %vm317_vm3, %v11922_v0 }
 0x442   : > { %9706 = vmatmul.mubr.msk.f32.gmra.mrb[22].mxu1 %vm317_vm3, %v11928_v21 }
 0x443   : > { %9708 = vmatprep.mubr.msk.f32.mxu1 %vm317_vm3, %v11934_v38 }
 0x446   : > { %9709 = vmatmul.mubr.msk.f32.gmra.mrb[24].mxu1 %vm317_vm3, %v11940_v3 }
 0x447   : > { %9711 = vmatprep.mubr.msk.f32.mxu1 %vm317_vm3, %v11945_v7 }
 0x44a   : > { %9712 = vmatmul.mubr.msk.f32.gmra.mrb[26].mxu1 %vm317_vm3, %v11950_v25 }
 0x44b   : > { %9714 = vmatprep.mubr.msk.f32.mxu1 %vm317_vm3, %v13072_v29 }
 0x44e   : > { %9715 = vmatmul.mubr.msk.f32.gmra.mrb[28].mxu1 %vm317_vm3, %v13073_v9 }
 0x44f   : > { %9717 = vmatprep.mubr.msk.f32.mxu1 %vm317_vm3, %v12355_v14 }
 0x452   : > { %9718 = vmatmul.mubr.msk.f32.gmra.mrb[30].mxu1 %vm317_vm3, %v12359_v43 }
 0x453   : > { %9722 = vmatprep.mubr.msk.f32.mxu1 %vm317_vm3, %v13074_v49  ;;  %v13083_v49 = vld [vmem:[#allocation14_spill] sm:$0xff] }
 0x456   : > { %9723 = vmatmul.mubr.msk.f32.vlgmr.msra.gmra.mrb[0].mxu1 %vm317_vm3, %v13075_v57  ;;  %v13084_v57 = vld [vmem:[#allocation41_spill] sm:$0xff] }
 0x457   : > { %9771 = vmatpush3.msra.mxu1 %v8317_v34  ;;  %9725 = vmatprep.mubr.msk.f32.mxu1 %vm317_vm3, %v13076_v59  ;;  %v13082_v34 = vld [vmem:[#allocation13_spill] sm:$0xff] }
 0x458   : > { %9820 = vmatprep.subr.mxu1 %v8350_v51 }
 0x45a   : > { %9726 = vmatmul.mubr.msk.f32.gmra.mrb[2].mxu1 %vm317_vm3, %v13077_v18  ;;  %v13085_v18 = vld [vmem:[#allocation42_spill] sm:$0xff] }
 0x45b   : > { %9728 = vmatprep.mubr.msk.f32.mxu1 %vm317_vm3, %v13078_v20  ;;  %v13086_v20 = vld [vmem:[#allocation17_spill] sm:$0xff] }
 0x45e   : > { %9729 = vmatmul.mubr.msk.f32.gmra.mrb[4].mxu1 %vm317_vm3, %v13079_v23  ;;  %v13087_v23 = vld [vmem:[#allocation18_spill] sm:$0xff] }
 0x45f   : > { %9731 = vmatprep.mubr.msk.f32.mxu1 %vm317_vm3, %v13080_v27  ;;  %v13088_v27 = vld [vmem:[#allocation19_spill] sm:$0xff] }
 0x462   : > { %9732 = vmatmul.mubr.msk.f32.gmra.mrb[6].mxu1 %vm317_vm3, %v13081_v2  ;;  %v13089_v2 = vld [vmem:[#allocation20_spill] sm:$0xff] }
 0x463   : > { %9734 = vmatprep.mubr.msk.f32.mxu1 %vm317_vm3, %v13082_v34  ;;  %v13090_v34 = vld [vmem:[#allocation21_spill] sm:$0xff] }
 0x466   : > { %9735 = vmatmul.mubr.msk.f32.gmra.mrb[8].mxu1 %vm317_vm3, %v13083_v49  ;;  %v13091_v49 = vld [vmem:[#allocation22_spill] sm:$0xff] }
 0x467   : > { %9737 = vmatprep.mubr.msk.f32.mxu1 %vm317_vm3, %v13084_v57  ;;  %v13092_v57 = vld [vmem:[#allocation23_spill] sm:$0xff] }
 0x46a   : > { %9738 = vmatmul.mubr.msk.f32.gmra.mrb[10].mxu1 %vm317_vm3, %v13085_v18  ;;  %v13093_v18 = vld [vmem:[#allocation24_spill] sm:$0xff] }
 0x46b   : > { %9740 = vmatprep.mubr.msk.f32.mxu1 %vm317_vm3, %v13086_v20  ;;  %v13094_v20 = vld [vmem:[#allocation25_spill] sm:$0xff] }
 0x46e   : > { %9741 = vmatmul.mubr.msk.f32.gmra.mrb[12].mxu1 %vm317_vm3, %v13087_v23  ;;  %v13095_v23 = vld [vmem:[#allocation26_spill] sm:$0xff] }
 0x46f   : > { %9743 = vmatprep.mubr.msk.f32.mxu1 %vm317_vm3, %v13088_v27  ;;  %v13096_v27 = vld [vmem:[#allocation27_spill] sm:$0xff] }
 0x472   : > { %9744 = vmatmul.mubr.msk.f32.gmra.mrb[14].mxu1 %vm317_vm3, %v13089_v2  ;;  %v13097_v2 = vld [vmem:[#allocation28_spill] sm:$0xff] }
 0x473   : > { %9746 = vmatprep.mubr.msk.f32.mxu1 %vm317_vm3, %v13090_v34  ;;  %v13098_v34 = vld [vmem:[#allocation29_spill] sm:$0xff] }
 0x476   : > { %9747 = vmatmul.mubr.msk.f32.gmra.mrb[16].mxu1 %vm317_vm3, %v13091_v49 }
 0x477   : > { %9749 = vmatprep.mubr.msk.f32.mxu1 %vm317_vm3, %v13092_v57  ;;  %v13099_v57 = vld [vmem:[#allocation31_spill] sm:$0xff] }
 0x47a   : > { %9750 = vmatmul.mubr.msk.f32.gmra.mrb[18].mxu1 %vm317_vm3, %v13093_v18 }
 0x47b   : > { %9752 = vmatprep.mubr.msk.f32.mxu1 %vm317_vm3, %v13094_v20 }
 0x47e   : > { %9753 = vmatmul.mubr.msk.f32.gmra.mrb[20].mxu1 %vm317_vm3, %v13095_v23 }
 0x47f   : > { %9755 = vmatprep.mubr.msk.f32.mxu1 %vm317_vm3, %v13096_v27  ;;  %v12426_v27 = vld [vmem:[#allocation3 + $0x182] sm:$0xff] }
 0x482   : > { %9756 = vmatmul.mubr.msk.f32.gmra.mrb[22].mxu1 %vm317_vm3, %v13097_v2 }
 0x483   : > { %9758 = vmatprep.mubr.msk.f32.mxu1 %vm317_vm3, %v13098_v34  ;;  %v12430_v34 = vld [vmem:[#allocation3 + $0x18a] sm:$0xff] }
 0x486   : > { %9759 = vmatmul.mubr.msk.f32.gmra.mrb[24].mxu1 %vm317_vm3, %v12200_v30 }
 0x487   : > { %9761 = vmatprep.mubr.msk.f32.mxu1 %vm317_vm3, %v13099_v57 }
 0x48a   : > { %9762 = vmatmul.mubr.msk.f32.gmra.mrb[26].mxu1 %vm317_vm3, %v12208_v40 }
 0x48b   : > { %9764 = vmatprep.mubr.msk.f32.mxu1 %vm317_vm3, %v12212_v5  ;;  %v8383_v5 = vld [vmem:[%s12837_s3 + $0x40] sm:$0xff] }
 0x48e   : > { %9765 = vmatmul.mubr.msk.f32.gmra.mrb[28].mxu1 %vm317_vm3, %v12216_v63 }
 0x48f   : > { %9767 = vmatprep.mubr.msk.f32.mxu1 %vm317_vm3, %v12426_v27 }
 0x492   : > { %9768 = vmatmul.mubr.msk.f32.gmra.mrb[30].mxu1 %vm317_vm3, %v12430_v34 }
 0x493   : > { %9772 = vmatprep.mubr.msk.f32.mxu1 %vm317_vm3, %v11979_v10  ;;  %v6277_v10 = vld [vmem:[#allocation3 + $0x198] sm:$0xff] }
 0x496   : > { %9773 = vmatmul.mubr.msk.f32.vlgmr.msra.gmra.mrb[0].mxu1 %vm317_vm3, %v11983_v6  ;;  %v6278_v6 = vld [vmem:[#allocation3 + $0x1a0] sm:$0xff] }
 0x497   : > { %9821 = vmatpush3.msra.mxu1 %v8350_v51  ;;  %9775 = vmatprep.mubr.msk.f32.mxu1 %vm317_vm3, %v11987_v24  ;;  %v6634_v24 = vld [vmem:[#allocation3 + $0x31] sm:$0xff] }
 0x498   : > { %9870 = vmatprep.subr.mxu1 %v8383_v5 }
 0x49a   : > { %9776 = vmatmul.mubr.msk.f32.gmra.mrb[2].mxu1 %vm317_vm3, %v11991_v13  ;;  %v6635_v13 = vld [vmem:[#allocation3 + $0x39] sm:$0xff] }
 0x49b   : > { %9778 = vmatprep.mubr.msk.f32.mxu1 %vm317_vm3, %v11995_v36  ;;  %v6636_v36 = vld [vmem:[#allocation3 + $0x49] sm:$0xff] }
 0x49e   : > { %9779 = vmatmul.mubr.msk.f32.gmra.mrb[4].mxu1 %vm317_vm3, %v11999_v44  ;;  %v6637_v44 = vld [vmem:[#allocation3 + $0x51] sm:$0xff] }
 0x49f   : > { %9781 = vmatprep.mubr.msk.f32.mxu1 %vm317_vm3, %v12003_v45  ;;  %v6638_v45 = vld [vmem:[#allocation3 + $0x61] sm:$0xff] }
 0x4a2   : > { %9782 = vmatmul.mubr.msk.f32.gmra.mrb[6].mxu1 %vm317_vm3, %v12007_v46  ;;  %v6639_v46 = vld [vmem:[#allocation3 + $0x69] sm:$0xff] }
 0x4a3   : > { %9784 = vmatprep.mubr.msk.f32.mxu1 %vm317_vm3, %v12011_v48  ;;  %v6640_v48 = vld [vmem:[#allocation3 + $0x79] sm:$0xff] }
 0x4a6   : > { %9785 = vmatmul.mubr.msk.f32.gmra.mrb[8].mxu1 %vm317_vm3, %v12015_v52  ;;  %v6641_v52 = vld [vmem:[#allocation3 + $0x81] sm:$0xff] }
 0x4a7   : > { %9787 = vmatprep.mubr.msk.f32.mxu1 %vm317_vm3, %v12019_v53  ;;  %v6642_v53 = vld [vmem:[#allocation3 + $0x91] sm:$0xff] }
 0x4aa   : > { %9788 = vmatmul.mubr.msk.f32.gmra.mrb[10].mxu1 %vm317_vm3, %v12023_v54  ;;  %v6643_v54 = vld [vmem:[#allocation3 + $0x99] sm:$0xff] }
 0x4ab   : > { %9790 = vmatprep.mubr.msk.f32.mxu1 %vm317_vm3, %v12027_v55  ;;  %v13114_v55 = vld [vmem:[#allocation23_spill] sm:$0xff] }
 0x4ae   : > { %9791 = vmatmul.mubr.msk.f32.gmra.mrb[12].mxu1 %vm317_vm3, %v12031_v56  ;;  %v13115_v56 = vld [vmem:[#allocation27_spill] sm:$0xff] }
 0x4af   : > { %9793 = vmatprep.mubr.msk.f32.mxu1 %vm317_vm3, %v12035_v60  ;;  %v13116_v60 = vld [vmem:[#allocation29_spill] sm:$0xff] }
 0x4b2   : > { %9794 = vmatmul.mubr.msk.f32.gmra.mrb[14].mxu1 %vm317_vm3, %v12039_v15  ;;  %v13117_v15 = vld [vmem:[#allocation33_spill] sm:$0xff] }
 0x4b3   : > { %9796 = vmatprep.mubr.msk.f32.mxu1 %vm317_vm3, %v12043_v16  ;;  %v7051_v16 = vld [vmem:[#allocation3 + $0x19a] sm:$0xff] }
 0x4b6   : > { %9797 = vmatmul.mubr.msk.f32.gmra.mrb[16].mxu1 %vm317_vm3, %v12047_v17  ;;  %v12616_v17 = vld [vmem:[%s12838_s4] ss:$0 sm:$0xff] }
 0x4b7   : > { %9799 = vmatprep.mubr.msk.f32.mxu1 %vm317_vm3, %v12051_v19 }
 0x4ba   : > { %9800 = vmatmul.mubr.msk.f32.gmra.mrb[18].mxu1 %vm317_vm3, %v12055_v1 }
 0x4bb   : > { %9802 = vmatprep.mubr.msk.f32.mxu1 %vm317_vm3, %v12059_v62 }
 0x4be   : > { %9803 = vmatmul.mubr.msk.f32.gmra.mrb[20].mxu1 %vm317_vm3, %v12063_v22 }
 0x4bf   : > { %9805 = vmatprep.mubr.msk.f32.mxu1 %vm317_vm3, %v12067_v26 }
 0x4c2   : > { %9806 = vmatmul.mubr.msk.f32.gmra.mrb[22].mxu1 %vm317_vm3, %v12071_v31 }
 0x4c3   : > { %9808 = vmatprep.mubr.msk.f32.mxu1 %vm317_vm3, %v12075_v32 }
 0x4c6   : > { %9809 = vmatmul.mubr.msk.f32.gmra.mrb[24].mxu1 %vm317_vm3, %v12079_v37 }
 0x4c7   : > { %9811 = vmatprep.mubr.msk.f32.mxu1 %vm317_vm3, %v12083_v39 }
 0x4ca   : > { %9812 = vmatmul.mubr.msk.f32.gmra.mrb[26].mxu1 %vm317_vm3, %v12087_v41 }
 0x4cb   : > { %9814 = vmatprep.mubr.msk.f32.mxu1 %vm317_vm3, %v12284_v35 }
 0x4ce   : > { %9815 = vmatmul.mubr.msk.f32.gmra.mrb[28].mxu1 %vm317_vm3, %v12288_v8 }
 0x4cf   : > { %9817 = vmatprep.mubr.msk.f32.mxu1 %vm317_vm3, %v6277_v10 }
 0x4d2   : > { %9818 = vmatmul.mubr.msk.f32.gmra.mrb[30].mxu1 %vm317_vm3, %v6278_v6 }
 0x4d3   : > { %9822 = vmatprep.mubr.msk.f32.mxu1 %vm317_vm3, %v6634_v24 }
 0x4d6   : > { %9823 = vmatmul.mubr.msk.f32.vlgmr.msra.gmra.mrb[0].mxu1 %vm317_vm3, %v6635_v13 }
 0x4d7   : > { %9871 = vmatpush3.msra.mxu1 %v8383_v5  ;;  %9825 = vmatprep.mubr.msk.f32.mxu1 %vm317_vm3, %v6636_v36 }
 0x4da   : > { %9826 = vmatmul.mubr.msk.f32.gmra.mrb[2].mxu1 %vm317_vm3, %v6637_v44 }
 0x4db   : > { %9828 = vmatprep.mubr.msk.f32.mxu1 %vm317_vm3, %v6638_v45 }
 0x4de   : > { %9829 = vmatmul.mubr.msk.f32.gmra.mrb[4].mxu1 %vm317_vm3, %v6639_v46 }
 0x4df   : > { %9831 = vmatprep.mubr.msk.f32.mxu1 %vm317_vm3, %v6640_v48 }
 0x4e2   : > { %9832 = vmatmul.mubr.msk.f32.gmra.mrb[6].mxu1 %vm317_vm3, %v6641_v52 }
 0x4e3   : > { %9834 = vmatprep.mubr.msk.f32.mxu1 %vm317_vm3, %v6642_v53 }
 0x4e6   : > { %9835 = vmatmul.mubr.msk.f32.gmra.mrb[8].mxu1 %vm317_vm3, %v6643_v54 }
 0x4e7   : > { %9837 = vmatprep.mubr.msk.f32.mxu1 %vm317_vm3, %v11862_v42  ;;  %v6664_v42 = vld [vmem:[#allocation3 + $0x199] sm:$0xff] }
 0x4ea   : > { %9838 = vmatmul.mubr.msk.f32.gmra.mrb[10].mxu1 %vm317_vm3, %v11868_v4  ;;  %v6665_v4 = vld [vmem:[#allocation3 + $0x1a1] sm:$0xff] }
 0x4eb   : > { %9840 = vmatprep.mubr.msk.f32.mxu1 %vm317_vm3, %v11874_v28  ;;  %v13100_v28 = vld [vmem:[#allocation35_spill] sm:$0xff] }
 0x4ee   : > { %9841 = vmatmul.mubr.msk.f32.gmra.mrb[12].mxu1 %vm317_vm3, %v11880_v33  ;;  %v13101_v33 = vld [vmem:[#allocation37_spill] sm:$0xff] }
 0x4ef   : > { %9843 = vmatprep.mubr.msk.f32.mxu1 %vm317_vm3, %v11886_v11  ;;  %v13102_v11 = vld [vmem:[#allocation39_spill] sm:$0xff] }
 0x4f2   : > { %9844 = vmatmul.mubr.msk.f32.gmra.mrb[14].mxu1 %vm317_vm3, %v11892_v12  ;;  %v13103_v12 = vld [vmem:[#allocation11_spill] sm:$0xff] }
 0x4f3   : > { %9846 = vmatprep.mubr.msk.f32.mxu1 %vm317_vm3, %v11898_v47  ;;  %v13104_v47 = vld [vmem:[#allocation12_spill] sm:$0xff] }
 0x4f6   : > { %9847 = vmatmul.mubr.msk.f32.gmra.mrb[16].mxu1 %vm317_vm3, %v11904_v50  ;;  %v13105_v50 = vld [vmem:[#allocation13_spill] sm:$0xff] }
 0x4f7   : > { %9849 = vmatprep.mubr.msk.f32.mxu1 %vm317_vm3, %v11910_v58  ;;  %v13106_v58 = vld [vmem:[#allocation14_spill] sm:$0xff] }
 0x4fa   : > { %9850 = vmatmul.mubr.msk.f32.gmra.mrb[18].mxu1 %vm317_vm3, %v11916_v61  ;;  %v13107_v61 = vld [vmem:[#allocation41_spill] sm:$0xff] }
 0x4fb   : > { %9852 = vmatprep.mubr.msk.f32.mxu1 %vm317_vm3, %v11922_v0  ;;  %v13108_v0 = vld [vmem:[#allocation42_spill] sm:$0xff] }
 0x4fe   : > { %9853 = vmatmul.mubr.msk.f32.gmra.mrb[20].mxu1 %vm317_vm3, %v11928_v21  ;;  %v13109_v21 = vld [vmem:[#allocation17_spill] sm:$0xff] }
 0x4ff   : > { %9855 = vmatprep.mubr.msk.f32.mxu1 %vm317_vm3, %v11934_v38  ;;  %v13110_v38 = vld [vmem:[#allocation18_spill] sm:$0xff] }
 0x502   : > { %9856 = vmatmul.mubr.msk.f32.gmra.mrb[22].mxu1 %vm317_vm3, %v11940_v3  ;;  %v13111_v3 = vld [vmem:[#allocation19_spill] sm:$0xff] }
 0x503   : > { %9858 = vmatprep.mubr.msk.f32.mxu1 %vm317_vm3, %v11945_v7  ;;  %v13112_v7 = vld [vmem:[#allocation20_spill] sm:$0xff] }
 0x506   : > { %9859 = vmatmul.mubr.msk.f32.gmra.mrb[24].mxu1 %vm317_vm3, %v11950_v25  ;;  %v13113_v25 = vld [vmem:[#allocation21_spill] sm:$0xff] }
 0x507   : > { %9861 = vmatprep.mubr.msk.f32.mxu1 %vm317_vm3, %v13072_v29 }
 0x50a   : > { %9862 = vmatmul.mubr.msk.f32.gmra.mrb[26].mxu1 %vm317_vm3, %v13073_v9 }
 0x50b   : > { %9864 = vmatprep.mubr.msk.f32.mxu1 %vm317_vm3, %v12355_v14 }
 0x50e   : > { %9865 = vmatmul.mubr.msk.f32.gmra.mrb[28].mxu1 %vm317_vm3, %v12359_v43 }
 0x50f   : > { %9867 = vmatprep.mubr.msk.f32.mxu1 %vm317_vm3, %v6664_v42 }
 0x512   : > { %9868 = vmatmul.mubr.msk.f32.gmra.mrb[30].mxu1 %vm317_vm3, %v6665_v4 }
 0x513   : > { %9872 = vmatprep.mubr.msk.f32.mxu1 %vm317_vm3, %v13076_v59 }
 0x516   : > { %9873 = vmatmul.mubr.msk.f32.vlgmr.msra.gmra.mrb[0].mxu1 %vm317_vm3, %v13100_v28 }
 0x517   : > { %9875 = vmatprep.mubr.msk.f32.mxu1 %vm317_vm3, %v13101_v33 }
 0x51a   : > { %9876 = vmatmul.mubr.msk.f32.gmra.mrb[2].mxu1 %vm317_vm3, %v13102_v11 }
 0x51b   : > { %9878 = vmatprep.mubr.msk.f32.mxu1 %vm317_vm3, %v13103_v12 }
 0x51e   : > { %9879 = vmatmul.mubr.msk.f32.gmra.mrb[4].mxu1 %vm317_vm3, %v13104_v47 }
 0x51f   : > { %9881 = vmatprep.mubr.msk.f32.mxu1 %vm317_vm3, %v13105_v50 }
 0x522   : > { %9882 = vmatmul.mubr.msk.f32.gmra.mrb[6].mxu1 %vm317_vm3, %v13106_v58 }
 0x523   : > { %9884 = vmatprep.mubr.msk.f32.mxu1 %vm317_vm3, %v13107_v61 }
 0x526   : > { %9885 = vmatmul.mubr.msk.f32.gmra.mrb[8].mxu1 %vm317_vm3, %v13108_v0 }
 0x527   : > { %9887 = vmatprep.mubr.msk.f32.mxu1 %vm317_vm3, %v13109_v21 }
 0x52a   : > { %9888 = vmatmul.mubr.msk.f32.gmra.mrb[10].mxu1 %vm317_vm3, %v13110_v38 }
 0x52b   : > { %9890 = vmatprep.mubr.msk.f32.mxu1 %vm317_vm3, %v13111_v3 }
 0x52e   : > { %9891 = vmatmul.mubr.msk.f32.gmra.mrb[12].mxu1 %vm317_vm3, %v13112_v7 }
 0x52f   : > { %9893 = vmatprep.mubr.msk.f32.mxu1 %vm317_vm3, %v13113_v25 }
 0x532   : > { %9894 = vmatmul.mubr.msk.f32.gmra.mrb[14].mxu1 %vm317_vm3, %v13091_v49 }
 0x533   : > { %9896 = vmatprep.mubr.msk.f32.mxu1 %vm317_vm3, %v13114_v55 }
 0x536   : > { %9897 = vmatmul.mubr.msk.f32.gmra.mrb[16].mxu1 %vm317_vm3, %v13093_v18 }
 0x537   : > { %9899 = vmatprep.mubr.msk.f32.mxu1 %vm317_vm3, %v13094_v20 }
 0x53a   : > { %9900 = vmatmul.mubr.msk.f32.gmra.mrb[18].mxu1 %vm317_vm3, %v13095_v23 }
 0x53b   : > { %9902 = vmatprep.mubr.msk.f32.mxu1 %vm317_vm3, %v13115_v56 }
 0x53e   : > { %9903 = vmatmul.mubr.msk.f32.gmra.mrb[20].mxu1 %vm317_vm3, %v13097_v2 }
 0x53f   : > { %9905 = vmatprep.mubr.msk.f32.mxu1 %vm317_vm3, %v13116_v60 }
 0x542   : > { %9906 = vmatmul.mubr.msk.f32.gmra.mrb[22].mxu1 %vm317_vm3, %v12200_v30  ;;  %v7052_v30 = vld [vmem:[#allocation3 + $0x1a2] sm:$0xff] }
 0x543   : > { %9908 = vmatprep.mubr.msk.f32.mxu1 %vm317_vm3, %v13099_v57 }
 0x546   : > { %9909 = vmatmul.mubr.msk.f32.gmra.mrb[24].mxu1 %vm317_vm3, %v12208_v40 }
 0x547   : > { %9911 = vmatprep.mubr.msk.f32.mxu1 %vm317_vm3, %v13117_v15 }
 0x54a   : > { %9912 = vmatmul.mubr.msk.f32.gmra.mrb[26].mxu1 %vm317_vm3, %v12216_v63 }
 0x54b   : > { %9914 = vmatprep.mubr.msk.f32.mxu1 %vm317_vm3, %v12426_v27 }
 0x54e   : > { %9915 = vmatmul.mubr.msk.f32.gmra.mrb[28].mxu1 %vm317_vm3, %v12430_v34 }
 0x54f   : > { %9917 = vmatprep.mubr.msk.f32.mxu1 %vm317_vm3, %v7051_v16 }
 0x552   : > { %9918 = vmatmul.mubr.msk.f32.gmra.mrb[30].mxu1 %vm317_vm3, %v7052_v30 }
 0x5e9   : > { %v9874_v19 = vpop.f32.mrb[0].mxu1 }
 0x5ea   : > { %v7416_v1 = vadd.f32 %v9874_v19, %v12616_v17  ;;  %v7217_v62 = vpop.f32.mrb[1].mxu1 }
 0x5eb   : > { %v7415_v22 = vadd.f32 %v12616_v17, %v7217_v62 }
 0x5ec   : > { %v7448_v32 = vmax.f32 %v7416_v1, 0.0 }
 0x5ed   : > { %v7447_v26 = vmax.f32 %v7415_v22, 0.0  ;;  %v9877_v31 = vpop.f32.mrb[2].mxu1 }
 0x5ee   : > { %v7418_v37 = vadd.f32 %v9877_v31, %v12616_v17  ;;  %v7227_v39 = vpop.f32.mrb[3].mxu1  ;;  %v7548_v35 = vsel %vm317_vm3, %v7448_v32, -inf }
 0x5ef   : > { %v7417_v41 = vadd.f32 %v12616_v17, %v7227_v39  ;;  %7479 = vxpose.xlu0.b32.start [1/16] (narrow) %v7447_v26, 8  ;;  %v7545_v14 = vsel %vm317_vm3, %v7447_v26, -inf }
 0x5f0   : > { %v7450_v40 = vmax.f32 %v7418_v37, 0.0 }
 0x5f1   : > { %v7449_v5 = vmax.f32 %v7417_v41, 0.0  ;;  %v9880_v63 = vpop.f32.mrb[4].mxu1 }
 0x5f2   : > { %v7549_v8 = vsel %vm317_vm3, %v7450_v40, -inf  ;;  %v7420_v29 = vadd.f32 %v9880_v63, %v12616_v17  ;;  %v7237_v9 = vpop.f32.mrb[5].mxu1 }
 0x5f3   : > { %v7550_v43 = vmax.f32 %v7548_v35, %v7549_v8  ;;  %v7546_v51 = vsel %vm317_vm3, %v7449_v5, -inf  ;;  %v7419_v59 = vadd.f32 %v12616_v17, %v7237_v9  ;;  %7480 = vxpose.xlu0.b32.cont [2/16] (narrow) %v7448_v32, 8 }
 0x5f4   : > { %v7547_v18 = vmax.f32 %v7545_v14, %v7546_v51  ;;  %v7452_v23 = vmax.f32 %v7420_v29, 0.0 }
 0x5f5   : > { %7594 = vst.msk [vmem:[#allocation4 + $0x8] sm:$0xff] %vm317_vm3, %v7550_v43  ;;  %v9883_v20 = vpop.f32.mrb[6].mxu1  ;;  %v7451_v34 = vmax.f32 %v7419_v59, 0.0 }
 0x5f6   : > { %7593 = vst.msk [vmem:[#allocation4] sm:$0xff] %vm317_vm3, %v7547_v18  ;;  %v7422_v27 = vadd.f32 %v9883_v20, %v12616_v17  ;;  %v7247_v2 = vpop.f32.mrb[7].mxu1  ;;  %v7554_v24 = vsel %vm317_vm3, %v7452_v23, -inf }
 0x5f7   : > { %v7421_v49 = vadd.f32 %v12616_v17, %v7247_v2  ;;  %7481 = vxpose.xlu0.b32.cont [3/16] (narrow) %v7449_v5, 8  ;;  %v7551_v45 = vsel %vm317_vm3, %v7451_v34, -inf }
 0x5f8   : > { %v7454_v57 = vmax.f32 %v7422_v27, 0.0 }
 0x5f9   : > { %v7453_v10 = vmax.f32 %v7421_v49, 0.0  ;;  %v9886_v6 = vpop.f32.mrb[8].mxu1 }
 0x5fa   : > { %v7555_v13 = vsel %vm317_vm3, %v7454_v57, -inf  ;;  %v12635_v36 = vadd.f32 %v9886_v6, %v12616_v17  ;;  %v7257_v44 = vpop.f32.mrb[9].mxu1 }
 0x5fb   : > { %v7556_v46 = vmax.f32 %v7554_v24, %v7555_v13  ;;  %v7552_v48 = vsel %vm317_vm3, %v7453_v10, -inf  ;;  %v7423_v52 = vadd.f32 %v12616_v17, %v7257_v44  ;;  %7482 = vxpose.xlu0.b32.cont [4/16] (narrow) %v7450_v40, 8 }
 0x5fc   : > { %v7553_v53 = vmax.f32 %v7551_v45, %v7552_v48  ;;  %v7456_v42 = vmax.f32 %v12635_v36, 0.0 }
 0x5fd   : > { %7596 = vst.msk [vmem:[#allocation4 + $0x18] sm:$0xff] %vm317_vm3, %v7556_v46  ;;  %v9889_v54 = vpop.f32.mrb[10].mxu1  ;;  %v7455_v33 = vmax.f32 %v7423_v52, 0.0 }
 0x5fe   : > { %7595 = vst.msk [vmem:[#allocation4 + $0x10] sm:$0xff] %vm317_vm3, %v7553_v53  ;;  %v12644_v4 = vadd.f32 %v9889_v54, %v12616_v17  ;;  %v7267_v28 = vpop.f32.mrb[11].mxu1  ;;  %v7560_v58 = vsel %vm317_vm3, %v7456_v42, -inf }
 0x5ff   : > { %v12647_v11 = vadd.f32 %v12616_v17, %v7267_v28  ;;  %7483 = vxpose.xlu0.b32.cont [5/16] (narrow) %v7451_v34, 8  ;;  %v7557_v38 = vsel %vm317_vm3, %v7455_v33, -inf }
 0x600   : > { %v7458_v12 = vmax.f32 %v12644_v4, 0.0 }
 0x601   : > { %v7457_v47 = vmax.f32 %v12647_v11, 0.0  ;;  %v9892_v50 = vpop.f32.mrb[12].mxu1 }
 0x602   : > { %v7561_v61 = vsel %vm317_vm3, %v7458_v12, -inf  ;;  %v12656_v0 = vadd.f32 %v9892_v50, %v12616_v17  ;;  %v7277_v21 = vpop.f32.mrb[13].mxu1 }
 0x603   : > { %v7562_v3 = vmax.f32 %v7560_v58, %v7561_v61  ;;  %v7558_v7 = vsel %vm317_vm3, %v7457_v47, -inf  ;;  %v12663_v25 = vadd.f32 %v12616_v17, %v7277_v21  ;;  %7484 = vxpose.xlu0.b32.cont [6/16] (narrow) %v7452_v23, 8 }
 0x604   : > { %v7559_v55 = vmax.f32 %v7557_v38, %v7558_v7  ;;  %v7460_v60 = vmax.f32 %v12656_v0, 0.0 }
 0x605   : > { %7598 = vst.msk [vmem:[#allocation4 + $0x28] sm:$0xff] %vm317_vm3, %v7562_v3  ;;  %v9895_v56 = vpop.f32.mrb[14].mxu1  ;;  %v7459_v30 = vmax.f32 %v12663_v25, 0.0 }
 0x606   : > { %7597 = vst.msk [vmem:[#allocation4 + $0x20] sm:$0xff] %vm317_vm3, %v7559_v55  ;;  %v12669_v15 = vadd.f32 %v9895_v56, %v12616_v17  ;;  %v7287_v16 = vpop.f32.mrb[15].mxu1  ;;  %v7566_v26 = vsel %vm317_vm3, %v7460_v60, -inf }
 0x607   : > { %v12673_v19 = vadd.f32 %v12616_v17, %v7287_v16  ;;  %7485 = vxpose.xlu0.b32.cont [7/16] (narrow) %v7453_v10, 8  ;;  %v7563_v39 = vsel %vm317_vm3, %v7459_v30, -inf }
 0x608   : > { %v7462_v1 = vmax.f32 %v12669_v15, 0.0 }
 0x609   : > { %v7461_v62 = vmax.f32 %v12673_v19, 0.0  ;;  %v9898_v22 = vpop.f32.mrb[16].mxu1 }
 0x60a   : > { %v7567_v31 = vsel %vm317_vm3, %v7462_v1, -inf  ;;  %v7432_v32 = vadd.f32 %v9898_v22, %v12616_v17  ;;  %v7297_v37 = vpop.f32.mrb[17].mxu1 }
 0x60b   : > { %v7568_v41 = vmax.f32 %v7566_v26, %v7567_v31  ;;  %v7564_v40 = vsel %vm317_vm3, %v7461_v62, -inf  ;;  %v7431_v5 = vadd.f32 %v12616_v17, %v7297_v37  ;;  %7486 = vxpose.xlu0.b32.cont [8/16] (narrow) %v7454_v57, 8 }
 0x60c   : > { %v7565_v63 = vmax.f32 %v7563_v39, %v7564_v40  ;;  %v7464_v29 = vmax.f32 %v7432_v32, 0.0 }
 0x60d   : > { %7600 = vst.msk [vmem:[#allocation4 + $0x38] sm:$0xff] %vm317_vm3, %v7568_v41  ;;  %v7463_v35 = vmax.f32 %v7431_v5, 0.0  ;;  %v9901_v8 = vpop.f32.mrb[18].mxu1 }
 0x60e   : > { %7599 = vst.msk [vmem:[#allocation4 + $0x30] sm:$0xff] %vm317_vm3, %v7565_v63  ;;  %v7434_v9 = vadd.f32 %v9901_v8, %v12616_v17  ;;  %v7307_v14 = vpop.f32.mrb[19].mxu1  ;;  %v7572_v20 = vsel %vm317_vm3, %v7464_v29, -inf }
 0x60f   : > { %v7433_v43 = vadd.f32 %v12616_v17, %v7307_v14  ;;  %7487 = vxpose.xlu0.b32.cont [9/16] (narrow) %v7455_v33, 8  ;;  %7511 = vxpose.xlu1.b32.start [1/16] (narrow) %v7463_v35, 8  ;;  %v7569_v34 = vsel %vm317_vm3, %v7463_v35, -inf }
 0x610   : > { %v7466_v51 = vmax.f32 %v7434_v9, 0.0 }
 0x611   : > { %v7465_v59 = vmax.f32 %v7433_v43, 0.0  ;;  %v9904_v18 = vpop.f32.mrb[20].mxu1  ;;  %v7609_v43 = vld [vmem:[#allocation4] ss:$2 sm:$0xff] }
 0x612   : > { %v7573_v23 = vsel %vm317_vm3, %v7466_v51, -inf  ;;  %v7436_v27 = vadd.f32 %v9904_v18, %v12616_v17  ;;  %v7317_v2 = vpop.f32.mrb[21].mxu1 }
 0x613   : > { %v7574_v49 = vmax.f32 %v7572_v20, %v7573_v23  ;;  %v7570_v57 = vsel %vm317_vm3, %v7465_v59, -inf  ;;  %v7435_v10 = vadd.f32 %v12616_v17, %v7317_v2  ;;  %7488 = vxpose.xlu0.b32.cont [10/16] (narrow) %v7456_v42, 8  ;;  %7512 = vxpose.xlu1.b32.cont [2/16] (narrow) %v7464_v29, 8  ;;  %v7627_v23 = vld [vmem:[#allocation4 + $0x11] ss:$2 sm:$0xff] }
 0x614   : > { %v7571_v6 = vmax.f32 %v7569_v34, %v7570_v57  ;;  %v7468_v13 = vmax.f32 %v7436_v27, 0.0  ;;  %v7613_v2 = vld [vmem:[#allocation4 + $0x20] ss:$2 sm:$0xff]  ;;  %v7629_v34 = vld [vmem:[#allocation4 + $0x21] ss:$2 sm:$0xff] }
 0x615   : > { %7602 = vst.msk [vmem:[#allocation4 + $0x48] sm:$0xff] %vm317_vm3, %v7574_v49  ;;  %v9907_v24 = vpop.f32.mrb[22].mxu1  ;;  %v7467_v45 = vmax.f32 %v7435_v10, 0.0  ;;  %v7642_v49 = vmax.f32 %v7613_v2, %v7629_v34  ;;  %v7615_v57 = vld [vmem:[#allocation4 + $0x30] ss:$2 sm:$0xff] }
 0x616   : > { %7601 = vst.msk [vmem:[#allocation4 + $0x40] sm:$0xff] %vm317_vm3, %v7571_v6  ;;  %v12704_v36 = vadd.f32 %v9907_v24, %v12616_v17  ;;  %v7327_v44 = vpop.f32.mrb[23].mxu1  ;;  %v7578_v54 = vsel %vm317_vm3, %v7468_v13, -inf  ;;  %v7631_v15 = vld [vmem:[#allocation4 + $0x31] ss:$2 sm:$0xff] }
 0x617   : > { %v7437_v46 = vadd.f32 %v12616_v17, %v7327_v44  ;;  %7489 = vxpose.xlu0.b32.cont [11/16] (narrow) %v7457_v47, 8  ;;  %7513 = vxpose.xlu1.b32.cont [3/16] (narrow) %v7465_v59, 8  ;;  %v7575_v50 = vsel %vm317_vm3, %v7467_v45, -inf }
 0x618   : > { %v7470_v48 = vmax.f32 %v12704_v36, 0.0 }
 0x619   : > { %v7469_v52 = vmax.f32 %v7437_v46, 0.0  ;;  %v9910_v53 = vpop.f32.mrb[24].mxu1 }
 0x61a   : > { %v7579_v42 = vsel %vm317_vm3, %v7470_v48, -inf  ;;  %v12713_v28 = vadd.f32 %v9910_v53, %v12616_v17  ;;  %v7337_v33 = vpop.f32.mrb[25].mxu1 }
 0x61b   : > { %v7580_v58 = vmax.f32 %v7578_v54, %v7579_v42  ;;  %v7576_v61 = vsel %vm317_vm3, %v7469_v52, -inf  ;;  %v7439_v11 = vadd.f32 %v12616_v17, %v7337_v33  ;;  %7490 = vxpose.xlu0.b32.cont [12/16] (narrow) %v7458_v12, 8  ;;  %7514 = vxpose.xlu1.b32.cont [4/16] (narrow) %v7466_v51, 8  ;;  %v7625_v51 = vld [vmem:[#allocation4 + $0x1] ss:$2 sm:$0xff] }
 0x61c   : > { %v7577_v47 = vmax.f32 %v7575_v50, %v7576_v61  ;;  %v7472_v38 = vmax.f32 %v12713_v28, 0.0  ;;  %v7640_v19 = vmax.f32 %v7609_v43, %v7625_v51 }
 0x61d   : > { %7604 = vst.msk [vmem:[#allocation4 + $0x58] sm:$0xff] %vm317_vm3, %v7580_v58  ;;  %v9913_v21 = vpop.f32.mrb[26].mxu1  ;;  %v7471_v55 = vmax.f32 %v7439_v11, 0.0  ;;  %v7617_v10 = vld [vmem:[#allocation4 + $0x40] ss:$2 sm:$0xff] }
 0x61e   : > { %7603 = vst.msk [vmem:[#allocation4 + $0x50] sm:$0xff] %vm317_vm3, %v7577_v47  ;;  %v12724_v3 = vadd.f32 %v9913_v21, %v12616_v17  ;;  %v7347_v7 = vpop.f32.mrb[27].mxu1  ;;  %v7584_v22 = vsel %vm317_vm3, %v7472_v38, -inf  ;;  %v7633_v6 = vld [vmem:[#allocation4 + $0x41] ss:$2 sm:$0xff] }
 0x61f   : > { %v7441_v56 = vadd.f32 %v12616_v17, %v7347_v7  ;;  %7491 = vxpose.xlu0.b32.cont [13/16] (narrow) %v7459_v30, 8  ;;  %7515 = vxpose.xlu1.b32.cont [5/16] (narrow) %v7467_v45, 8  ;;  %v7581_v37 = vsel %vm317_vm3, %v7471_v55, -inf  ;;  %v7644_v24 = vmax.f32 %v7617_v10, %v7633_v6 }
 0x620   : > { %v7474_v4 = vmax.f32 %v12724_v3, 0.0 }
 0x621   : > { %v7473_v12 = vmax.f32 %v7441_v56, 0.0  ;;  %v9916_v16 = vpop.f32.mrb[28].mxu1 }
 0x622   : > { %v7585_v26 = vsel %vm317_vm3, %v7474_v4, -inf  ;;  %v7444_v31 = vadd.f32 %v9916_v16, %v12616_v17  ;;  %v7357_v32 = vpop.f32.mrb[29].mxu1 }
 0x623   : > { %v7586_v39 = vmax.f32 %v7584_v22, %v7585_v26  ;;  %v7582_v41 = vsel %vm317_vm3, %v7473_v12, -inf  ;;  %v7443_v25 = vadd.f32 %v12616_v17, %v7357_v32  ;;  %7492 = vxpose.xlu0.b32.cont [14/16] (narrow) %v7460_v60, 8  ;;  %7516 = vxpose.xlu1.b32.cont [6/16] (narrow) %v7468_v13, 8 }
 0x624   : > { %v7583_v30 = vmax.f32 %v7581_v37, %v7582_v41  ;;  %v7476_v5 = vmax.f32 %v7444_v31, 0.0 }
 0x625   : > { %7606 = vst.msk [vmem:[#allocation4 + $0x68] sm:$0xff] %vm317_vm3, %v7586_v39  ;;  %v9919_v40 = vpop.f32.mrb[30].mxu1  ;;  %v7475_v8 = vmax.f32 %v7443_v25, 0.0  ;;  %v7619_v13 = vld [vmem:[#allocation4 + $0x50] ss:$2 sm:$0xff] }
 0x626   : > { %7605 = vst.msk [vmem:[#allocation4 + $0x60] sm:$0xff] %vm317_vm3, %v7583_v30  ;;  %v7446_v63 = vadd.f32 %v9919_v40, %v12616_v17  ;;  %v7367_v35 = vpop.f32.mrb[31].mxu1  ;;  %v7590_v9 = vsel %vm317_vm3, %v7476_v5, -inf  ;;  %v7635_v36 = vld [vmem:[#allocation4 + $0x51] ss:$2 sm:$0xff] }
 0x627   : > { %v7445_v29 = vadd.f32 %v12616_v17, %v7367_v35  ;;  %7493 = vxpose.xlu0.b32.cont [15/16] (narrow) %v7461_v62, 8  ;;  %7517 = vxpose.xlu1.b32.cont [7/16] (narrow) %v7469_v52, 8  ;;  %v7587_v59 = vsel %vm317_vm3, %v7475_v8, -inf  ;;  %v7611_v62 = vld [vmem:[#allocation4 + $0x10] ss:$2 sm:$0xff]  ;;  %v7645_v44 = vmax.f32 %v7619_v13, %v7635_v36 }
 0x628   : > { %v7478_v0 = vmax.f32 %v7446_v63, 0.0  ;;  %v7641_v27 = vmax.f32 %v7611_v62, %v7627_v23 }
 0x629   : > { %v7477_v60 = vmax.f32 %v7445_v29, 0.0 }
 0x62a   : > { %v7591_v14 = vsel %vm317_vm3, %v7478_v0, -inf }
 0x62b   : > { %v7592_v18 = vmax.f32 %v7590_v9, %v7591_v14  ;;  %v7588_v20 = vsel %vm317_vm3, %v7477_v60, -inf  ;;  %7494 = vxpose.xlu0.b32.end [16/16] (narrow) %v7462_v1, 8  ;;  %7518 = vxpose.xlu1.b32.cont [8/16] (narrow) %v7470_v48, 8  ;;  %v7643_v1 = vmax.f32 %v7615_v57, %v7631_v15 }
 0x62c   : > { %v7589_v17 = vmax.f32 %v7587_v59, %v7588_v20 }
 0x62d   : > { %7608 = vst.msk [vmem:[#allocation4 + $0x78] sm:$0xff] %vm317_vm3, %v7592_v18  ;;  %v7621_v45 = vld [vmem:[#allocation4 + $0x60] ss:$2 sm:$0xff]  ;;  %v7637_v46 = vld [vmem:[#allocation4 + $0x61] ss:$2 sm:$0xff] }
 0x62e   : > { %7607 = vst.msk [vmem:[#allocation4 + $0x70] sm:$0xff] %vm317_vm3, %v7589_v17  ;;  %v7646_v48 = vmax.f32 %v7621_v45, %v7637_v46 }
 0x62f   : > { %7648 = vxpose.xlu0.b32.start [1/8] (short) (narrow) %v7640_v19, 8  ;;  %7519 = vxpose.xlu1.b32.cont [9/16] (narrow) %v7471_v55, 8 }
 0x633   : > { %7649 = vxpose.xlu0.b32.cont [2/8] (short) (narrow) %v7641_v27, 8  ;;  %7520 = vxpose.xlu1.b32.cont [10/16] (narrow) %v7472_v38, 8 }
 0x635   : > { %v7623_v52 = vld [vmem:[#allocation4 + $0x70] ss:$2 sm:$0xff]  ;;  %v7639_v53 = vld [vmem:[#allocation4 + $0x71] ss:$2 sm:$0xff] }
 0x636   : > { %v7647_v54 = vmax.f32 %v7623_v52, %v7639_v53 }
 0x637   : > { %7650 = vxpose.xlu0.b32.cont [3/8] (short) (narrow) %v7642_v49, 8  ;;  %7521 = vxpose.xlu1.b32.cont [11/16] (narrow) %v7473_v12, 8 }
 0x63b   : > { %7651 = vxpose.xlu0.b32.cont [4/8] (short) (narrow) %v7643_v1, 8  ;;  %7522 = vxpose.xlu1.b32.cont [12/16] (narrow) %v7474_v4, 8 }
 0x63f   : > { %7652 = vxpose.xlu0.b32.cont [5/8] (short) (narrow) %v7644_v24, 8  ;;  %7523 = vxpose.xlu1.b32.cont [13/16] (narrow) %v7475_v8, 8 }
 0x643   : > { %7653 = vxpose.xlu0.b32.cont [6/8] (short) (narrow) %v7645_v44, 8  ;;  %7524 = vxpose.xlu1.b32.cont [14/16] (narrow) %v7476_v5, 8 }
 0x647   : > { %7654 = vxpose.xlu0.b32.cont [7/8] (short) (narrow) %v7646_v48, 8  ;;  %7525 = vxpose.xlu1.b32.cont [15/16] (narrow) %v7477_v60, 8 }
 0x64b   : > { %7526 = vxpose.xlu1.b32.end [16/16] (narrow) %v7478_v0, 8  ;;  %7655 = vxpose.xlu0.b32.end [8/8] (short) (narrow) %v7647_v54, 8 }
 0x66f   : > { %v7495_v42 = vpop.trf.xlu0 }
 0x670   : > { %7543 = vst [vmem:[%s248_s11] sm:$0xff] %v7495_v42 }
 0x68f   : > { %v7527_v28 = vpop.trf.xlu1 }
 0x690   : > { %7544 = vst [vmem:[%s248_s11 + $0x8] sm:$0xff] %v7527_v28 }
 0x691   : > { %10490 = shalt.err (!%p10487_p3)
}
 0x692   : > { %s10491_s28 = scalar_lea.hbm %s12762_s16, 256  ;;  %s10495_s11 = scalar_lea.hbm %s12839_s5, 512 }
 0x693   : > { %p10492_p4 = scmp.ne.s32.totalorder %s12762_s16, %s10491_s28  ;;  %p10496_p9 = scmp.lt.u32.totalorder %s12762_s16, %s12839_s5 }
 0x694   : > { %p10497_p10 = scmp.lt.u32.totalorder %s10495_s11, %s10491_s28  ;;  %p10499_p12 = scmp.lt.u32.totalorder %s10491_s28, %s12762_s16 }
 0x695   : > { %p10493_p7 = pnand %p10492_p4, %p10649_p5 }
 0x696   : > { %p10498_p11 = por %p10497_p10, %p10496_p9 }
 0x697   : > { %p10494_p8 = pneg %p10493_p7 }
 0x698   : > { %p10500_p13 = por %p10499_p12, %p10498_p11 }
 0x69a   : > { %p10501_p0 = pnand %p10500_p13, %p10494_p8 }
 0x69c   : > { %10504 = shalt.err (!%p10501_p0)
}
 0x69d   : > { %10432 = dma.vmem_to_hbm [thread:$0]  (%p10649_p5), %s12757_s12, 256, %s12762_s16, %s7683_s17   ;;  %vm7680_vm5 = vcmask 523264  }
 0x69e   : > { %s7811_s15 = sshll.u32 %s12753_s9, 3  ;;  %s8421_s18 = sshll.u32 %s10632_s25, 7 }
 0x69f   : > { %s255_s19 = scalar_lea.vmem [#allocation7], %s7811_s15  ;;  %s12791_s28 = scalar_lea.hbm %s12840_s6, %s8421_s18 }
 0x6a0   : > { %s7715_s20 = sshll.u32 %s255_s19, 4  ;;  %s7688_s10 = scalar_lea.sflag [#allocation8], %s12753_s9  ;;  %s12793_s20 = int_to_ptr.vmem [resolvable:$true] %s7715_s20 }
 0x6a1   : > { %s10505_s11 = scalar_lea.vmem %s12793_s20, 128  ;;  %s10575_s25 = smov [#allocation7]  }
 0x6a2   : > { %p10506_p1 = scmp.ne.s32.totalorder %s12793_s20, %s10505_s11  ;;  %s10509_s12 = sshll.u32 %s10575_s25, 4  ;;  %s10510_s12 = int_to_ptr.vmem [resolvable:$false] %s10509_s12 }
 0x6a3   : > { %s10511_s16 = scalar_lea.vmem %s10510_s12, 256  ;;  %p10512_p4 = scmp.lt.s32.totalorder %s12793_s20, %s10510_s12 }
 0x6a4   : > { %p10507_p2 = pnand %p10506_p1, %p10649_p5  ;;  %p10513_p7 = scmp.lt.s32.totalorder %s10511_s16, %s10505_s11 }
 0x6a6   : > { %p10508_p3 = pneg %p10507_p2  ;;  %p10514_p8 = por %p10513_p7, %p10512_p4 }
 0x6a8   : > { %p10515_p9 = pnand %p10514_p8, %p10508_p3 }
 0x6af   : > { %v7664_v33 = vpop.trf.xlu0 }
 0x6b0   : > { %7681 = vst.msk [vmem:[%s255_s19] sm:$0xff] %vm7680_vm5, %v7664_v33 }
 0x6b1   : > { %10518 = shalt.err (!%p10515_p9)
}
 0x6b2   : > { %s10519_s9 = scalar_lea.hbm %s12791_s28, 128  ;;  %s10523_s14 = scalar_lea.hbm %s12840_s6, 256 }
 0x6b3   : > { %p10520_p10 = scmp.ne.s32.totalorder %s12791_s28, %s10519_s9  ;;  %p10524_p13 = scmp.lt.u32.totalorder %s12791_s28, %s12840_s6 }
 0x6b4   : > { %p10525_p0 = scmp.lt.u32.totalorder %s10523_s14, %s10519_s9  ;;  %p10527_p2 = scmp.lt.u32.totalorder %s10519_s9, %s12791_s28 }
 0x6b5   : > { %p10521_p11 = pnand %p10520_p10, %p10649_p5 }
 0x6b6   : > { %p10526_p1 = por %p10525_p0, %p10524_p13 }
 0x6b7   : > { %p10522_p12 = pneg %p10521_p11 }
 0x6b8   : > { %p10528_p3 = por %p10527_p2, %p10526_p1 }
 0x6ba   : > { %p10529_p4 = pnand %p10528_p3, %p10522_p12 }
 0x6bc   : > { %10532 = shalt.err (!%p10529_p4)
}
 0x6bd   : > { %10433 = dma.vmem_to_hbm [thread:$0]  (%p10649_p5), %s12793_s20, 128, %s12791_s28, %s7688_s10  }
 0x6be PF: > { %p10443_p7 = scmp.ge.s32.totalorder %s10571_s24, 2  ;;  %s7727_s19 = sand.u32 1, %s10559_s21  }
 0x6bf   : > { %s7728_s26 = scalar_lea.sflag [#allocation6], %s7727_s19 }
 0x6c0   : > { %p10437_p8 = pnand %p10443_p7, %p10653_p6 }
 0x6c2   : > { %10550 = dma.done.wait (!%p10437_p8), %s7728_s26, 256  }
 0x6c3   : > { %10552 = vsyncadd (!%p10437_p8), %s7728_s26, 4294967040  ;;  %s7737_s29 = scalar_lea.sflag [#allocation8], %s7727_s19 }
 0x6c4   : > { %10554 = dma.done.wait (!%p10437_p8), %s7737_s29, 128  }
 0x6c5   : > { %10556 = vsyncadd (!%p10437_p8), %s7737_s29, 4294967168  ;;  %p20_p5 = scmp.ge.s32.totalorder %s10636_s27, 4   ;;  %s13118_s21 = smov %s10563_s22 }
 0x6c6   : > { %s13119_s22 = smov %s10567_s23  ;;  %s13120_s23 = smov %s10647_s30 }
 0x6c7   : > { %s13121_s24 = smov %s10636_s27  ;;  %22 = sbr.rel (!%p20_p5) target bundleno = 5 (0x5), region = 127 }
 0x6ce   :  { %7742 = vsyncpa [#allocation6], 1 }
 0x6cf   :  { %7744 = vsyncpa [#allocation6 + $0x1], 1 }
 0x6d0   :  { %7745 = vsyncpa [#allocation8], 1 }
 0x6d1   :  { %7747 = vsyncpa [#allocation8 + $0x1], 1 }

</bundles_post_ra>
